<compile_context>
chip_gen: v5e
topology: v5e:2x2
jax: 0.10.0
libtpu: 0.0.40
codegen_flags: <defaults>
</compile_context>

<pallas_src>
import functools
import math

import jax
import jax.numpy as jnp
import numpy as np
from jax import lax
from jax.experimental import pallas as pl
from jax.experimental.pallas import tpu as pltpu


def _round_up(x: int, m: int) -> int:
    return (x + m - 1) // m * m


def _mha_fwd_kernel(q_ref, k_ref, v_ref, o_ref, m_sc, l_sc, acc_sc, *,
                    scale, block_k, num_kv, sk_actual, sk_padded):
    """One (batch*head, q-tile) grid step.

    q_ref : (block_q, d)  bf16 query tile
    k_ref : (Sk_pad, d)   bf16 keys, VMEM-resident for this head
    v_ref : (Sk_pad, d)   bf16 values, VMEM-resident for this head
    o_ref : (block_q, d)  bf16 output tile
    """
    # Fold 1/sqrt(d) into q once (cheaper than scaling every score tile).
    q = q_ref[...] * scale                         # stays bf16 (weak scalar)

    m_sc[...] = jnp.full_like(m_sc, -jnp.inf)
    l_sc[...] = jnp.zeros_like(l_sc)
    acc_sc[...] = jnp.zeros_like(acc_sc)

    @pl.loop(0, num_kv)
    def _(ki):
        start = pl.multiple_of(ki * block_k, block_k)
        k = k_ref[pl.ds(start, block_k), :]        # (block_k, d)
        v = v_ref[pl.ds(start, block_k), :]        # (block_k, d)

        # scores (block_q, block_k): contract over head_dim, f32 acc on MXU.
        s = lax.dot_general(q, k, (((1,), (1,)), ((), ())),
                            preferred_element_type=jnp.float32)

        if sk_actual != sk_padded:                 # static: mask padded keys
            kv_pos = start + lax.broadcasted_iota(jnp.int32, (1, block_k), 1)
            s = jnp.where(kv_pos < sk_actual, s, jnp.float32(-jnp.inf))

        m_prev = m_sc[...]                                      # (block_q, 1)
        m_new = jnp.maximum(m_prev, jnp.max(s, axis=-1, keepdims=True))
        alpha = jnp.exp(m_prev - m_new)                         # rescale
        p = jnp.exp(s - m_new)                                  # (block_q, block_k)

        l_sc[...] = alpha * l_sc[...] + jnp.sum(p, axis=-1, keepdims=True)
        acc_sc[...] = alpha * acc_sc[...] + jnp.dot(
            p.astype(v.dtype), v, preferred_element_type=jnp.float32)
        m_sc[...] = m_new

    # NOTE: approx reciprocal (EUP, ~free) adds ~1e-3 relative error; fine for
    # a bf16 output.
    inv_l = pl.reciprocal(l_sc[...], approx=True)
    o_ref[...] = (acc_sc[...] * inv_l).astype(o_ref.dtype)


def multihead_attention(q, k, v, num_heads, *, block_q=256, block_k=512,
                        compute_dtype=jnp.bfloat16):
    """Pallas implementation of AttentionModule.forward (no mask, p=0.0)."""
    B, Sq, HD = q.shape
    Sk = k.shape[1]
    assert HD % num_heads == 0, "hidden dim must be divisible by num_heads"
    H = num_heads
    d = HD // H
    scale = 1.0 / math.sqrt(d)

    # Mirror the PyTorch fp16 cast with bf16 on TPU (accumulation stays f32).
    q = q.astype(compute_dtype)
    k = k.astype(compute_dtype)
    v = v.astype(compute_dtype)

    # Tile sizes, clamped and kept sublane-friendly (multiples of 8).
    block_q = min(block_q, _round_up(Sq, 8))
    block_k = min(block_k, _round_up(Sk, 8))
    Sq_pad = _round_up(Sq, block_q)
    Sk_pad = _round_up(Sk, block_k)
    num_kv = Sk_pad // block_k

    def to_heads(t, S, S_pad):
        # (B, S, H*d) -> (B*H, S_pad, d); d stays the lane axis of every block.
        t = t.reshape(B, S, H, d).transpose(0, 2, 1, 3).reshape(B * H, S, d)
        if S_pad != S:
            t = jnp.pad(t, ((0, 0), (0, S_pad - S), (0, 0)))
        return t

    qh = to_heads(q, Sq, Sq_pad)
    kh = to_heads(k, Sk, Sk_pad)
    vh = to_heads(v, Sk, Sk_pad)

    grid = (B * H, Sq_pad // block_q)

    itemsize = jnp.dtype(compute_dtype).itemsize
    cost = pl.CostEstimate(
        flops=4 * B * H * Sq_pad * Sk_pad * d,
        transcendentals=B * H * Sq_pad * Sk_pad,
        # K/V are VMEM-resident per head -> each tensor crosses HBM once.
        bytes_accessed=(qh.size + kh.size + vh.size + B * H * Sq_pad * d)
        * itemsize,
    )

    # VMEM budget: double-buffered q/out blocks, double-buffered resident K/V,
    # f32 scratch, plus headroom for the f32 score/p temporaries. Capped at
    # 64 MiB so the same tiling fits v7x's VMEM.
    vmem_need = (
        2 * itemsize * 2 * block_q * d            # q + out blocks (x2 buffers)
        + 2 * itemsize * 2 * Sk_pad * d           # k + v blocks  (x2 buffers)
        + 4 * block_q * (d + 2)                   # f32 m/l/acc scratch
        + 2 * 4 * block_q * block_k               # f32 score/p temporaries
    )
    vmem_limit = int(min(max(2 * vmem_need, 32 * 1024 * 1024),
                         64 * 1024 * 1024))

    kernel = functools.partial(
        _mha_fwd_kernel, scale=scale, block_k=block_k, num_kv=num_kv,
        sk_actual=Sk, sk_padded=Sk_pad)

    out = pl.pallas_call(
        kernel,
        out_shape=jax.ShapeDtypeStruct((B * H, Sq_pad, d), compute_dtype),
        grid_spec=pltpu.PrefetchScalarGridSpec(
            num_scalar_prefetch=0,
            grid=grid,
            in_specs=[
                # q tile: changes with the q-tile axis.
                pl.BlockSpec((None, block_q, d), lambda bh, qi: (bh, qi, 0)),
                # K/V: full key length per head; index does not depend on qi,
                # so Pallas keeps them resident across q-tiles (no re-DMA).
                pl.BlockSpec((None, Sk_pad, d), lambda bh, qi: (bh, 0, 0)),
                pl.BlockSpec((None, Sk_pad, d), lambda bh, qi: (bh, 0, 0)),
            ],
            out_specs=pl.BlockSpec((None, block_q, d),
                                   lambda bh, qi: (bh, qi, 0)),
            scratch_shapes=[
                pltpu.VMEM((block_q, 1), jnp.float32),   # running max m
                pltpu.VMEM((block_q, 1), jnp.float32),   # running denom l
                pltpu.VMEM((block_q, d), jnp.float32),   # output accumulator
            ],
        ),
        compiler_params=pltpu.CompilerParams(
            dimension_semantics=("parallel", "parallel"),
            vmem_limit_bytes=vmem_limit),
        cost_estimate=cost,
    )(qh, kh, vh)

    # (B*H, Sq_pad, d) -> (B, Sq, H*d); like the PyTorch path, the low-precision
    # (bf16) result is returned.
    out = out[:, :Sq, :]
    return out.reshape(B, H, Sq, d).transpose(0, 2, 1, 3).reshape(B, Sq, HD)


def _reference(q, k, v, num_heads):
    """Pure-JAX reference mirroring the PyTorch forward (f32)."""
    B, Sq, HD = q.shape
    Sk = k.shape[1]
    d = HD // num_heads
    qh = q.reshape(B, Sq, num_heads, d)
    kh = k.reshape(B, Sk, num_heads, d)
    vh = v.reshape(B, Sk, num_heads, d)
    s = jnp.einsum("bqhd,bkhd->bhqk", qh, kh) / jnp.sqrt(jnp.float32(d))
    p = jax.nn.softmax(s, axis=-1)
    o = jnp.einsum("bhqk,bkhd->bqhd", p, vh)
    return o.reshape(B, Sq, HD)


def _check(B, S, H, d, seed, **kw):
    key = jax.random.PRNGKey(seed)
    kq, kk, kv = jax.random.split(key, 3)
    q = jax.random.normal(kq, (B, S, H * d), dtype=jnp.float32)
    k = jax.random.normal(kk, (B, S, H * d), dtype=jnp.float32)
    v = jax.random.normal(kv, (B, S, H * d), dtype=jnp.float32)

    out = multihead_attention(q, k, v, num_heads=H, **kw)
    out = jax.block_until_ready(out)

    ref = _reference(q, k, v, H)
    np.testing.assert_allclose(np.asarray(out.astype(jnp.float32)),
                               np.asarray(ref), rtol=2e-2, atol=2e-2)


if __name__ == "__main__":
    # Default tiling: 2 q-tiles per head, resident K/V, single kv chunk.
    _check(B=2, S=512, H=2, d=64, seed=0)
    # Ragged length + small tiles: exercises padding/masking and the in-kernel
    # multi-chunk kv loop (Sq_pad=Sk_pad=384, 3 q-tiles, 3 kv chunks).
    _check(B=1, S=300, H=2, d=64, seed=0, block_q=128, block_k=128)
    print("KERNEL_OK")
</pallas_src>

<mosaic_0001>
module attributes {stable_mosaic.version = 11 : i64} {
  func.func @_mha_fwd_kernel(%arg0: i32, %arg1: i32, %arg2: memref<1x256x64xbf16, #tpu.memory_space<vmem>>, %arg3: memref<1x512x64xbf16, #tpu.memory_space<vmem>>, %arg4: memref<1x512x64xbf16, #tpu.memory_space<vmem>>, %arg5: memref<1x256x64xbf16, #tpu.memory_space<vmem>>, %arg6: memref<256x1xf32, #tpu.memory_space<vmem>>, %arg7: memref<256x1xf32, #tpu.memory_space<vmem>>, %arg8: memref<256x64xf32, #tpu.memory_space<vmem>>) attributes {dimension_semantics = [#tpu.dimension_semantics<parallel>, #tpu.dimension_semantics<parallel>], iteration_bounds = array<i64: 4, 2>, scalar_prefetch = 0 : i64, scratch_operands = 3 : i64, tpu.core_type = #tpu.core_type<tc>, window_params = [{transform_indices = @transform_0, window_bounds = array<i64: 1, 256, 64>}, {transform_indices = @transform_1, window_bounds = array<i64: 1, 512, 64>}, {transform_indices = @transform_2, window_bounds = array<i64: 1, 512, 64>}, {transform_indices = @transform_3, window_bounds = array<i64: 1, 256, 64>}]} {
    %c0 = arith.constant 0 : index
    %c0_0 = arith.constant 0 : index
    %c0_1 = arith.constant 0 : index
    %0 = vector.load %arg2[%c0, %c0_0, %c0_1] : memref<1x256x64xbf16, #tpu.memory_space<vmem>>, vector<1x256x64xbf16>
    %1 = vector.shape_cast %0 : vector<1x256x64xbf16> to vector<256x64xbf16>
    %cst = arith.constant 1.250000e-01 : bf16
    %2 = vector.broadcast %cst : bf16 to vector<256x64xbf16>
    %3 = arith.mulf %1, %2 : vector<256x64xbf16>
    %cst_2 = arith.constant 0xFF800000 : f32
    %4 = vector.broadcast %cst_2 : f32 to vector<256x1xf32>
    %c0_3 = arith.constant 0 : index
    %c0_4 = arith.constant 0 : index
    %5 = vector.load %arg6[%c0_3, %c0_4] : memref<256x1xf32, #tpu.memory_space<vmem>>, vector<256x1xf32>
    tpu.vector_store %arg6[%c0_3, %c0_4], %4 {strides = array<i32>} : memref<256x1xf32, #tpu.memory_space<vmem>>, vector<256x1xf32>,
    %cst_5 = arith.constant 0.000000e+00 : f32
    %6 = vector.broadcast %cst_5 : f32 to vector<256x1xf32>
    %c0_6 = arith.constant 0 : index
    %c0_7 = arith.constant 0 : index
    %7 = vector.load %arg7[%c0_6, %c0_7] : memref<256x1xf32, #tpu.memory_space<vmem>>, vector<256x1xf32>
    tpu.vector_store %arg7[%c0_6, %c0_7], %6 {strides = array<i32>} : memref<256x1xf32, #tpu.memory_space<vmem>>, vector<256x1xf32>,
    %cst_8 = arith.constant 0.000000e+00 : f32
    %8 = vector.broadcast %cst_8 : f32 to vector<256x64xf32>
    %c0_9 = arith.constant 0 : index
    %c0_10 = arith.constant 0 : index
    %9 = vector.load %arg8[%c0_9, %c0_10] : memref<256x64xf32, #tpu.memory_space<vmem>>, vector<256x64xf32>
    tpu.vector_store %arg8[%c0_9, %c0_10], %8 {strides = array<i32>} : memref<256x64xf32, #tpu.memory_space<vmem>>, vector<256x64xf32>,
    %c0_i32 = arith.constant 0 : i32
    %c1_i32 = arith.constant 1 : i32
    %10 = arith.muli %c0_i32, %c1_i32 : i32
    %c0_i32_11 = arith.constant 0 : i32
    %11 = arith.addi %c0_i32_11, %10 : i32
    %c512_i32 = arith.constant 512 : i32
    %12 = arith.muli %11, %c512_i32 : i32
    %13 = tpu.assume_multiple %12, 512 : i32
    %c0_12 = arith.constant 0 : index
    %14 = arith.index_cast %13 : i32 to index
    %c0_13 = arith.constant 0 : index
    %15 = vector.load %arg3[%c0_12, %14, %c0_13] : memref<1x512x64xbf16, #tpu.memory_space<vmem>>, vector<1x512x64xbf16>
    %16 = vector.shape_cast %15 : vector<1x512x64xbf16> to vector<512x64xbf16>
    %c0_14 = arith.constant 0 : index
    %17 = arith.index_cast %13 : i32 to index
    %c0_15 = arith.constant 0 : index
    %18 = vector.load %arg4[%c0_14, %17, %c0_15] : memref<1x512x64xbf16, #tpu.memory_space<vmem>>, vector<1x512x64xbf16>
    %19 = vector.shape_cast %18 : vector<1x512x64xbf16> to vector<512x64xbf16>
    %cst_16 = arith.constant dense<0.000000e+00> : vector<256x512xf32>
    %20 = tpu.matmul %3, %16, %cst_16 {dimension_numbers = #tpu.dot_dimension_numbers<[1], [1], [0], [0], [0, 0, 1, 0], [], []>} : vector<256x64xbf16>, vector<512x64xbf16>, vector<256x512xf32> -> vector<256x512xf32>
    %c0_17 = arith.constant 0 : index
    %c0_18 = arith.constant 0 : index
    %21 = vector.load %arg6[%c0_17, %c0_18] : memref<256x1xf32, #tpu.memory_space<vmem>>, vector<256x1xf32>
    %cst_19 = arith.constant dense<0xFF800000> : vector<256xf32>
    %22 = vector.multi_reduction <maximumf>, %20, %cst_19 [1] : vector<256x512xf32> to vector<256xf32>
    %23 = vector.shape_cast %22 : vector<256xf32> to vector<256x1xf32>
    %24 = arith.maximumf %21, %23 : vector<256x1xf32>
    %25 = arith.subf %21, %24 : vector<256x1xf32>
    %26 = math.exp %25 : vector<256x1xf32>
    %27 = vector.broadcast %24 : vector<256x1xf32> to vector<256x512xf32>
    %28 = arith.subf %20, %27 : vector<256x512xf32>
    %29 = math.exp %28 : vector<256x512xf32>
    %c0_20 = arith.constant 0 : index
    %c0_21 = arith.constant 0 : index
    %30 = vector.load %arg7[%c0_20, %c0_21] : memref<256x1xf32, #tpu.memory_space<vmem>>, vector<256x1xf32>
    %31 = arith.mulf %26, %30 : vector<256x1xf32>
    %cst_22 = arith.constant dense<0.000000e+00> : vector<256xf32>
    %32 = vector.multi_reduction <add>, %29, %cst_22 [1] : vector<256x512xf32> to vector<256xf32>
    %33 = vector.shape_cast %32 : vector<256xf32> to vector<256x1xf32>
    %34 = arith.addf %31, %33 : vector<256x1xf32>
    %c0_23 = arith.constant 0 : index
    %c0_24 = arith.constant 0 : index
    %35 = vector.load %arg7[%c0_23, %c0_24] : memref<256x1xf32, #tpu.memory_space<vmem>>, vector<256x1xf32>
    tpu.vector_store %arg7[%c0_23, %c0_24], %34 {strides = array<i32>} : memref<256x1xf32, #tpu.memory_space<vmem>>, vector<256x1xf32>,
    %c0_25 = arith.constant 0 : index
    %c0_26 = arith.constant 0 : index
    %36 = vector.load %arg8[%c0_25, %c0_26] : memref<256x64xf32, #tpu.memory_space<vmem>>, vector<256x64xf32>
    %37 = vector.broadcast %26 : vector<256x1xf32> to vector<256x64xf32>
    %38 = arith.mulf %37, %36 : vector<256x64xf32>
    %39 = arith.truncf %29 : vector<256x512xf32> to vector<256x512xbf16>
    %cst_27 = arith.constant dense<0.000000e+00> : vector<256x64xf32>
    %40 = tpu.matmul %39, %19, %cst_27 {dimension_numbers = #tpu.dot_dimension_numbers<[1], [0], [0], [1], [0, 0, 1, 1], [], []>} : vector<256x512xbf16>, vector<512x64xbf16>, vector<256x64xf32> -> vector<256x64xf32>
    %41 = arith.addf %38, %40 : vector<256x64xf32>
    %c0_28 = arith.constant 0 : index
    %c0_29 = arith.constant 0 : index
    %42 = vector.load %arg8[%c0_28, %c0_29] : memref<256x64xf32, #tpu.memory_space<vmem>>, vector<256x64xf32>
    tpu.vector_store %arg8[%c0_28, %c0_29], %41 {strides = array<i32>} : memref<256x64xf32, #tpu.memory_space<vmem>>, vector<256x64xf32>,
    %c0_30 = arith.constant 0 : index
    %c0_31 = arith.constant 0 : index
    %43 = vector.load %arg6[%c0_30, %c0_31] : memref<256x1xf32, #tpu.memory_space<vmem>>, vector<256x1xf32>
    tpu.vector_store %arg6[%c0_30, %c0_31], %24 {strides = array<i32>} : memref<256x1xf32, #tpu.memory_space<vmem>>, vector<256x1xf32>,
    %c1_i32_32 = arith.constant 1 : i32
    %c0_33 = arith.constant 0 : index
    %c0_34 = arith.constant 0 : index
    %44 = vector.load %arg7[%c0_33, %c0_34] : memref<256x1xf32, #tpu.memory_space<vmem>>, vector<256x1xf32>
    %45 = tpu.reciprocal %44 {approx = true} : vector<256x1xf32> -> vector<256x1xf32>
    %c0_35 = arith.constant 0 : index
    %c0_36 = arith.constant 0 : index
    %46 = vector.load %arg8[%c0_35, %c0_36] : memref<256x64xf32, #tpu.memory_space<vmem>>, vector<256x64xf32>
    %47 = vector.broadcast %45 : vector<256x1xf32> to vector<256x64xf32>
    %48 = arith.mulf %46, %47 : vector<256x64xf32>
    %49 = arith.truncf %48 : vector<256x64xf32> to vector<256x64xbf16>
    %c0_37 = arith.constant 0 : index
    %c0_38 = arith.constant 0 : index
    %c0_39 = arith.constant 0 : index
    %50 = vector.load %arg5[%c0_37, %c0_38, %c0_39] : memref<1x256x64xbf16, #tpu.memory_space<vmem>>, vector<1x256x64xbf16>
    %51 = vector.shape_cast %50 : vector<1x256x64xbf16> to vector<256x64xbf16>
    %52 = vector.shape_cast %49 : vector<256x64xbf16> to vector<1x256x64xbf16>
    tpu.vector_store %arg5[%c0_37, %c0_38, %c0_39], %52 {strides = array<i32>} : memref<1x256x64xbf16, #tpu.memory_space<vmem>>, vector<1x256x64xbf16>,
    return
  }
  func.func @transform_0(%arg0: i32, %arg1: i32) -> (i32, i32, i32) {
    %c0_i32 = arith.constant 0 : i32
    %c0_i32_0 = arith.constant 0 : i32
    return %arg0, %arg1, %c0_i32 : i32, i32, i32
  }
  func.func @transform_1(%arg0: i32, %arg1: i32) -> (i32, i32, i32) {
    %c0_i32 = arith.constant 0 : i32
    %c0_i32_0 = arith.constant 0 : i32
    %c0_i32_1 = arith.constant 0 : i32
    return %arg0, %c0_i32, %c0_i32_0 : i32, i32, i32
  }
  func.func @transform_2(%arg0: i32, %arg1: i32) -> (i32, i32, i32) {
    %c0_i32 = arith.constant 0 : i32
    %c0_i32_0 = arith.constant 0 : i32
    %c0_i32_1 = arith.constant 0 : i32
    return %arg0, %c0_i32, %c0_i32_0 : i32, i32, i32
  }
  func.func @transform_3(%arg0: i32, %arg1: i32) -> (i32, i32, i32) {
    %c0_i32 = arith.constant 0 : i32
    %c0_i32_0 = arith.constant 0 : i32
    return %arg0, %arg1, %c0_i32 : i32, i32, i32
  }
}

</mosaic_0001>

<bundles_post_ra>
// kernel: tpu_custom_call.1
= control target key start
LH: loop header
LB: loop body
LE: loop exit
PB: predicated region body
PF: predicated region fallthrough
CT: control target
= control target key end

     0   :  { %s4774_s12 = smov 0   ;;  %s4776_s13 = smov 0   ;;  %s6705_s0 = inlined_call_operand.vmem [shape: bf16[4,512,64], index: 0, kind: input, shape index: {}]   ;;  %s6706_s1 = inlined_call_operand.vmem [shape: bf16[4,512,64], index: 1, kind: input, shape index: {}]   ;;  %s6707_s2 = inlined_call_operand.vmem [shape: bf16[4,512,64], index: 2, kind: input, shape index: {}]   ;;  %s6708_s3 = inlined_call_operand.vmem [shape: bf16[4,512,64], index: 3, kind: output, shape index: {}]  }
   0x1   :  { %s4778_s14 = smov 0   ;;  %s4780_s15 = smov 0  }
   0x2   :  { %s4782_s16 = smov 0  }
   0x3 LB: > { %s22_s17 = sadd.s32 1, %s4741_s14  ;;  %s25_s18 = sadd.s32 1, %s4745_s15  ;;  %s4749_s16 = sphi %s4782_s16, %s13_s16   ;;  %s4745_s15 = sphi %s4780_s15, %s7120_s15   ;;  %s4741_s14 = sphi %s4778_s14, %s7119_s14   ;;  %s4737_s13 = sphi %s4776_s13, %s7118_s13   ;;  %s4733_s12 = sphi %s4774_s12, %s7117_s12  }
   0x4   : > { %p23_p0 = scmp.ge.s32.totalorder %s22_s17, 2  ;;  %p3803_p1 = scmp.ge.s32.totalorder %s4749_s16, 1 }
   0x5   : > { %p178_p2 = scmp.lt.s32.totalorder %s4749_s16, 9 }
   0x6   : > { %s7122_s17 = smov (%p23_p0, %s22_s17), 0  ;;  %s7124_s18 = smov (!%p23_p0, %s25_s18), %s4745_s15 }
   0x7   : > { %p179_p3 = pnand %p3803_p1, %p178_p2  ;;  %p27_p4 = scmp.ge.s32.totalorder %s7124_s18, 4 }
   0x9   : > { %s7126_s18 = smov (%p27_p4, %s7124_s18), 0  ;;  %182 = sbr.rel (%p179_p3) target bundleno = 1699 (0x6a3), region = 32 }
   0xe   : > { %p221_p5 = scmp.lt.s32.totalorder %s4737_s13, 3  ;;  %vm427_vm0 = vcmask 523264   ;;  %s3804_s23 = sshll.u32 %s4733_s12, 5  ;;  %vm362_vm1 = vcmask 7168   ;;  %vm3652_vm2 = vcmask 519168  }
   0xf   : > { %p223_p6 = scmp.lt.s32.totalorder %s3804_s23, 63 }
  0x10   : > { %s7128_s13 = smov (!%p221_p5, %s4737_s13), 3 }
  0x11   : > { %s4136_s19 = sshll.u32 %s7128_s13, 8  ;;  %s7130_s23 = smov (!%p223_p6, %s3804_s23), 63 }
  0x12   : > { %s4814_s22 = scalar_lea.vmem %s6706_s1, %s4136_s19  ;;  %s3805_s24 = sshll.u32 %s7128_s13, 6 }
  0x13   : > { %v4145_v0 = vld [vmem:[%s4814_s22 + $0x38] sm:$0xff]  ;;  %v4144_v8 = vld [vmem:[%s4814_s22 + $0x30] sm:$0xff]  ;;  %v4143_v16 = vld [vmem:[%s4814_s22 + $0x28] sm:$0xff]  ;;  %s4866_s25 = sadd.s32 %s3805_s24, %s7130_s23  ;;  %s5493_s5 = scalar_lea.vmem %s6707_s2, %s4136_s19 }
  0x14   : > { %v4153_v1 = vld [vmem:[%s4814_s22 + $0x78] sm:$0xff]  ;;  %v818_v4 = vsel %vm427_vm0, %v4145_v0, 0  ;;  %v4152_v9 = vld [vmem:[%s4814_s22 + $0x70] sm:$0xff]  ;;  %v815_v12 = vsel %vm427_vm0, %v4144_v8, 0  ;;  %v4151_v17 = vld [vmem:[%s4814_s22 + $0x68] sm:$0xff]  ;;  %v812_v20 = vsel %vm427_vm0, %v4143_v16, 0 }
  0x15   : > { %v4161_v2 = vld [vmem:[%s4814_s22 + $0xb8] sm:$0xff]  ;;  %v842_v5 = vsel %vm427_vm0, %v4153_v1, 0  ;;  %892 = vmatpush.bf16.xpose.msra.mxu0 %v818_v4  ;;  %v4160_v10 = vld [vmem:[%s4814_s22 + $0xb0] sm:$0xff]  ;;  %v839_v13 = vsel %vm427_vm0, %v4152_v9, 0  ;;  %v4159_v18 = vld [vmem:[%s4814_s22 + $0xa8] sm:$0xff]  ;;  %v836_v21 = vsel %vm427_vm0, %v4151_v17, 0 }
  0x16   : > { %v4169_v3 = vld [vmem:[%s4814_s22 + $0xf8] sm:$0xff]  ;;  %v866_v6 = vsel %vm427_vm0, %v4161_v2, 0  ;;  %981 = vmatpush.bf16.xpose.msra.mxu1 %v842_v5  ;;  %v4168_v11 = vld [vmem:[%s4814_s22 + $0xf0] sm:$0xff]  ;;  %v863_v14 = vsel %vm427_vm0, %v4160_v10, 0  ;;  %v4167_v19 = vld [vmem:[%s4814_s22 + $0xe8] sm:$0xff]  ;;  %v860_v22 = vsel %vm427_vm0, %v4159_v18, 0 }
  0x17   : > { %v890_v7 = vsel %vm427_vm0, %v4169_v3, 0  ;;  %1070 = vmatpush.bf16.xpose.msra.mxu2 %v866_v6  ;;  %v887_v15 = vsel %vm427_vm0, %v4168_v11, 0  ;;  %v884_v23 = vsel %vm427_vm0, %v4167_v19, 0  ;;  %v4142_v24 = vld [vmem:[%s4814_s22 + $0x20] sm:$0xff]  ;;  %v4141_v32 = vld [vmem:[%s4814_s22 + $0x18] sm:$0xff]  ;;  %v4140_v40 = vld [vmem:[%s4814_s22 + $0x10] sm:$0xff] }
  0x18   : > { %1159 = vmatpush.bf16.xpose.msra.mxu3 %v890_v7  ;;  %v4150_v25 = vld [vmem:[%s4814_s22 + $0x60] sm:$0xff]  ;;  %v809_v28 = vsel %vm427_vm0, %v4142_v24, 0  ;;  %v4149_v33 = vld [vmem:[%s4814_s22 + $0x58] sm:$0xff]  ;;  %v806_v36 = vsel %vm427_vm0, %v4141_v32, 0  ;;  %v4148_v41 = vld [vmem:[%s4814_s22 + $0x50] sm:$0xff]  ;;  %v803_v44 = vsel %vm427_vm0, %v4140_v40, 0 }
  0x19   : > { %v4158_v26 = vld [vmem:[%s4814_s22 + $0xa0] sm:$0xff]  ;;  %v833_v29 = vsel %vm427_vm0, %v4150_v25, 0  ;;  %v4157_v34 = vld [vmem:[%s4814_s22 + $0x98] sm:$0xff]  ;;  %v830_v37 = vsel %vm427_vm0, %v4149_v33, 0  ;;  %v4156_v42 = vld [vmem:[%s4814_s22 + $0x90] sm:$0xff]  ;;  %v827_v45 = vsel %vm427_vm0, %v4148_v41, 0 }
  0x1a   : > { %v4166_v27 = vld [vmem:[%s4814_s22 + $0xe0] sm:$0xff]  ;;  %v857_v30 = vsel %vm427_vm0, %v4158_v26, 0  ;;  %v4165_v35 = vld [vmem:[%s4814_s22 + $0xd8] sm:$0xff]  ;;  %v854_v38 = vsel %vm427_vm0, %v4157_v34, 0  ;;  %v4164_v43 = vld [vmem:[%s4814_s22 + $0xd0] sm:$0xff]  ;;  %v851_v46 = vsel %vm427_vm0, %v4156_v42, 0 }
  0x1b   : > { %v881_v31 = vsel %vm427_vm0, %v4166_v27, 0  ;;  %v878_v39 = vsel %vm427_vm0, %v4165_v35, 0  ;;  %v875_v47 = vsel %vm427_vm0, %v4164_v43, 0  ;;  %v4139_v48 = vld [vmem:[%s4814_s22 + $0x8] sm:$0xff]  ;;  %s3806_s26 = sshll.u32 %s4866_s25, 2  ;;  %v4138_v57 = vld [vmem:[%s4814_s22] sm:$0xff] }
  0x1c   : > { %v4147_v49 = vld [vmem:[%s4814_s22 + $0x48] sm:$0xff]  ;;  %v800_v52 = vsel %vm427_vm0, %v4139_v48, 0  ;;  %s4880_s29 = scalar_lea.vmem %s6705_s0, %s3806_s26  ;;  %v4146_v58 = vld [vmem:[%s4814_s22 + $0x40] sm:$0xff]  ;;  %v797_v63 = vsel %vm427_vm0, %v4138_v57, 0  ;;  %s6516_s8 = scalar_lea.vmem %s6708_s3, %s3806_s26 }
  0x1d   : > { %893 = vmatpush.bf16.xpose.msra.mxu0 %v815_v12  ;;  %v4155_v50 = vld [vmem:[%s4814_s22 + $0x88] sm:$0xff]  ;;  %v824_v53 = vsel %vm427_vm0, %v4147_v49, 0  ;;  %v4203_v56 = vld [vmem:[%s4880_s29] sm:$0xff]   ;;  %v821_v0 = vsel %vm427_vm0, %v4146_v58, 0  ;;  %v4267_v12 = vld [vmem:[%s4880_s29 + $0x10] sm:$0xff]  }
  0x1e   : > { %982 = vmatpush.bf16.xpose.msra.mxu1 %v839_v13  ;;  %v4163_v51 = vld [vmem:[%s4814_s22 + $0xc8] sm:$0xff]  ;;  %v848_v54 = vsel %vm427_vm0, %v4155_v50, 0  ;;  %v4154_v59 = vld [vmem:[%s4814_s22 + $0x80] sm:$0xff]  ;;  %v4204_v61 = vunpack.c.l.bf16 %v4203_v56  ;;  %v4205_v62 = vunpack.c.h.bf16 %v4203_v56  ;;  %v4212_v13 = vunpack.c.l.bf16 %v4267_v12  ;;  %v4268_v18 = vld [vmem:[%s4880_s29 + $0x18] sm:$0xff]  }
  0x1f   : > { %1071 = vmatpush.bf16.xpose.msra.mxu2 %v863_v14  ;;  %v872_v55 = vsel %vm427_vm0, %v4163_v51, 0  ;;  %v4162_v60 = vld [vmem:[%s4814_s22 + $0xc0] sm:$0xff]  ;;  %v845_v1 = vsel %vm427_vm0, %v4154_v59, 0  ;;  %v4266_v6 = vld [vmem:[%s4880_s29 + $0x8] sm:$0xff]   ;;  %v4213_v14 = vunpack.c.h.bf16 %v4267_v12  ;;  %v4216_v19 = vunpack.c.l.bf16 %v4268_v18  ;;  %v4272_v42 = vld [vmem:[%s4880_s29 + $0x38] sm:$0xff]  }
  0x20   : > { %1160 = vmatpush.bf16.xpose.msra.mxu3 %v887_v15  ;;  %v869_v2 = vsel %vm427_vm0, %v4162_v60, 0  ;;  %v314_v3 = vmul.f32 0.125, %v4204_v61  ;;  %v315_v4 = vmul.f32 0.125, %v4205_v62  ;;  %v4208_v7 = vunpack.c.l.bf16 %v4266_v6  ;;  %v4269_v24 = vld [vmem:[%s4880_s29 + $0x20] sm:$0xff]  }
  0x21   : > { %v4209_v8 = vunpack.c.h.bf16 %v4266_v6  ;;  %v318_v15 = vmul.f32 0.125, %v4212_v13  ;;  %v319_v16 = vmul.f32 0.125, %v4213_v14  ;;  %v4220_v25 = vunpack.c.l.bf16 %v4269_v24  ;;  %v4273_v48 = vld [vmem:[%s4880_s29 + $0x40] sm:$0xff]   ;;  %v4274_v6 = vld [vmem:[%s4880_s29 + $0x48] sm:$0xff]  }
  0x22   : > { %v346_v5 = vpack.c.bf16 %v315_v4, %v314_v3  ;;  %v316_v9 = vmul.f32 0.125, %v4208_v7  ;;  %v4221_v26 = vunpack.c.h.bf16 %v4269_v24  ;;  %v4232_v43 = vunpack.c.l.bf16 %v4272_v42 }
  0x23   : > { %v317_v10 = vmul.f32 0.125, %v4209_v8  ;;  %v348_v17 = vpack.c.bf16 %v319_v16, %v318_v15  ;;  %v322_v27 = vmul.f32 0.125, %v4220_v25  ;;  %v4236_v49 = vunpack.c.l.bf16 %v4273_v48 }
  0x24   : > { %v4237_v50 = vunpack.c.h.bf16 %v4273_v48  ;;  %v4240_v8 = vunpack.c.l.bf16 %v4274_v6 }
  0x25   : > { %894 = vmatpush.bf16.xpose.msra.mxu0 %v812_v20  ;;  %v347_v11 = vpack.c.bf16 %v317_v10, %v316_v9  ;;  %v4217_v20 = vunpack.c.h.bf16 %v4268_v18  ;;  %v330_v51 = vmul.f32 0.125, %v4236_v49  ;;  %v4241_v9 = vunpack.c.h.bf16 %v4274_v6 }
  0x26   : > { %983 = vmatpush.bf16.xpose.msra.mxu1 %v836_v21  ;;  %v320_v21 = vmul.f32 0.125, %v4216_v19  ;;  %v332_v10 = vmul.f32 0.125, %v4240_v8 }
  0x27   : > { %1072 = vmatpush.bf16.xpose.msra.mxu2 %v860_v22  ;;  %v321_v22 = vmul.f32 0.125, %v4217_v20 }
  0x28   : > { %1161 = vmatpush.bf16.xpose.msra.mxu3 %v884_v23 }
  0x29   : > { %v349_v23 = vpack.c.bf16 %v321_v22, %v320_v21 }
  0x2d   : > { %895 = vmatpush.bf16.xpose.msra.mxu0 %v809_v28  ;;  %v323_v28 = vmul.f32 0.125, %v4221_v26 }
  0x2e   : > { %984 = vmatpush.bf16.xpose.msra.mxu1 %v833_v29 }
  0x2f   : > { %1073 = vmatpush.bf16.xpose.msra.mxu2 %v857_v30  ;;  %v350_v29 = vpack.c.bf16 %v323_v28, %v322_v27  ;;  %v4270_v30 = vld [vmem:[%s4880_s29 + $0x28] sm:$0xff]  }
  0x30   : > { %1162 = vmatpush.bf16.xpose.msra.mxu3 %v881_v31  ;;  %v4224_v31 = vunpack.c.l.bf16 %v4270_v30  ;;  %v4225_v32 = vunpack.c.h.bf16 %v4270_v30 }
  0x32   : > { %v324_v33 = vmul.f32 0.125, %v4224_v31  ;;  %v325_v34 = vmul.f32 0.125, %v4225_v32 }
  0x34   : > { %v351_v35 = vpack.c.bf16 %v325_v34, %v324_v33 }
  0x35   : > { %896 = vmatpush.bf16.xpose.msra.mxu0 %v806_v36  ;;  %v4271_v36 = vld [vmem:[%s4880_s29 + $0x30] sm:$0xff]  }
  0x36   : > { %985 = vmatpush.bf16.xpose.msra.mxu1 %v830_v37  ;;  %v4228_v37 = vunpack.c.l.bf16 %v4271_v36 }
  0x37   : > { %1074 = vmatpush.bf16.xpose.msra.mxu2 %v854_v38  ;;  %v4229_v38 = vunpack.c.h.bf16 %v4271_v36 }
  0x38   : > { %1163 = vmatpush.bf16.xpose.msra.mxu3 %v878_v39  ;;  %v326_v39 = vmul.f32 0.125, %v4228_v37 }
  0x39   : > { %v327_v40 = vmul.f32 0.125, %v4229_v38 }
  0x3b   : > { %v352_v41 = vpack.c.bf16 %v327_v40, %v326_v39 }
  0x3d   : > { %897 = vmatpush.bf16.xpose.msra.mxu0 %v803_v44  ;;  %v4233_v44 = vunpack.c.h.bf16 %v4272_v42 }
  0x3e   : > { %986 = vmatpush.bf16.xpose.msra.mxu1 %v827_v45  ;;  %v328_v45 = vmul.f32 0.125, %v4232_v43 }
  0x3f   : > { %1075 = vmatpush.bf16.xpose.msra.mxu2 %v851_v46  ;;  %v329_v46 = vmul.f32 0.125, %v4233_v44 }
  0x40   : > { %1164 = vmatpush.bf16.xpose.msra.mxu3 %v875_v47 }
  0x41   : > { %v353_v47 = vpack.c.bf16 %v329_v46, %v328_v45 }
  0x45   : > { %898 = vmatpush.bf16.xpose.msra.mxu0 %v800_v52  ;;  %v331_v52 = vmul.f32 0.125, %v4237_v50 }
  0x46   : > { %987 = vmatpush.bf16.xpose.msra.mxu1 %v824_v53 }
  0x47   : > { %1076 = vmatpush.bf16.xpose.msra.mxu2 %v848_v54  ;;  %v354_v53 = vpack.c.bf16 %v331_v52, %v330_v51 }
  0x48   : > { %1165 = vmatpush.bf16.xpose.msra.mxu3 %v872_v55 }
  0x4d   : > { %899 = vmatpush.bf16.xpose.msra.mxu0 %v797_v63 }
  0x4e   : > { %988 = vmatpush.bf16.xpose.msra.mxu1 %v821_v0 }
  0x4f   : > { %1077 = vmatpush.bf16.xpose.msra.mxu2 %v845_v1 }
  0x50   : > { %1166 = vmatpush.bf16.xpose.msra.mxu3 %v869_v2 }
  0x54   : > { %3942 = vmatmul.msk.bf16.vlgmr.msra.gmra.mxu0 %vm427_vm0, %v346_v5 }
  0x55   : > { %3958 = vmatmul.msk.bf16.vlgmr.msra.gmra.mxu1 %vm427_vm0, %v346_v5 }
  0x56   : > { %3974 = vmatmul.msk.bf16.vlgmr.msra.gmra.mxu2 %vm427_vm0, %v346_v5 }
  0x57   : > { %3990 = vmatmul.msk.bf16.vlgmr.msra.gmra.mxu3 %vm427_vm0, %v346_v5 }
  0x64   : > { %3943 = vmatmul.msk.bf16.gmra.mxu0 %vm427_vm0, %v347_v11 }
  0x65   : > { %3959 = vmatmul.msk.bf16.gmra.mxu1 %vm427_vm0, %v347_v11 }
  0x66   : > { %3975 = vmatmul.msk.bf16.gmra.mxu2 %vm427_vm0, %v347_v11 }
  0x67   : > { %3991 = vmatmul.msk.bf16.gmra.mxu3 %vm427_vm0, %v347_v11  ;;  %v333_v11 = vmul.f32 0.125, %v4241_v9 }
  0x74   : > { %3944 = vmatmul.msk.bf16.gmra.mxu0 %vm427_vm0, %v348_v17 }
  0x75   : > { %3960 = vmatmul.msk.bf16.gmra.mxu1 %vm427_vm0, %v348_v17 }
  0x76   : > { %3976 = vmatmul.msk.bf16.gmra.mxu2 %vm427_vm0, %v348_v17 }
  0x77   : > { %3992 = vmatmul.msk.bf16.gmra.mxu3 %vm427_vm0, %v348_v17  ;;  %v355_v17 = vpack.c.bf16 %v333_v11, %v332_v10 }
  0x84   : > { %3945 = vmatmul.msk.bf16.gmra.mxu0 %vm427_vm0, %v349_v23 }
  0x85   : > { %3961 = vmatmul.msk.bf16.gmra.mxu1 %vm427_vm0, %v349_v23 }
  0x86   : > { %3977 = vmatmul.msk.bf16.gmra.mxu2 %vm427_vm0, %v349_v23 }
  0x87   : > { %3993 = vmatmul.msk.bf16.gmra.mxu3 %vm427_vm0, %v349_v23 }
  0x94   : > { %3946 = vmatmul.msk.bf16.gmra.mxu0 %vm427_vm0, %v350_v29 }
  0x95   : > { %3962 = vmatmul.msk.bf16.gmra.mxu1 %vm427_vm0, %v350_v29 }
  0x96   : > { %3978 = vmatmul.msk.bf16.gmra.mxu2 %vm427_vm0, %v350_v29 }
  0x97   : > { %3994 = vmatmul.msk.bf16.gmra.mxu3 %vm427_vm0, %v350_v29 }
  0xa4   : > { %3947 = vmatmul.msk.bf16.gmra.mxu0 %vm427_vm0, %v351_v35 }
  0xa5   : > { %3963 = vmatmul.msk.bf16.gmra.mxu1 %vm427_vm0, %v351_v35 }
  0xa6   : > { %3979 = vmatmul.msk.bf16.gmra.mxu2 %vm427_vm0, %v351_v35 }
  0xa7   : > { %3995 = vmatmul.msk.bf16.gmra.mxu3 %vm427_vm0, %v351_v35 }
  0xb4   : > { %3948 = vmatmul.msk.bf16.gmra.mxu0 %vm427_vm0, %v352_v41 }
  0xb5   : > { %3964 = vmatmul.msk.bf16.gmra.mxu1 %vm427_vm0, %v352_v41 }
  0xb6   : > { %3980 = vmatmul.msk.bf16.gmra.mxu2 %vm427_vm0, %v352_v41 }
  0xb7   : > { %3996 = vmatmul.msk.bf16.gmra.mxu3 %vm427_vm0, %v352_v41 }
  0xc4   : > { %3949 = vmatmul.msk.bf16.gmra.mxu0 %vm427_vm0, %v353_v47 }
  0xc5   : > { %3965 = vmatmul.msk.bf16.gmra.mxu1 %vm427_vm0, %v353_v47 }
  0xc6   : > { %3981 = vmatmul.msk.bf16.gmra.mxu2 %vm427_vm0, %v353_v47 }
  0xc7   : > { %3997 = vmatmul.msk.bf16.gmra.mxu3 %vm427_vm0, %v353_v47 }
  0xd1   : > { %v4933_v54 = vpop.f32.mrf.mxu0 }
  0xd2   : > { %v4935_v55 = vpop.f32.mrf.mxu1 }
  0xd3   : > { %v1280_v56 = vmax.f32 %v4933_v54, %v4935_v55 }
  0xd4   : > { %3950 = vmatmul.msk.bf16.gmra.mxu0 %vm427_vm0, %v354_v53 }
  0xd5   : > { %3966 = vmatmul.msk.bf16.gmra.mxu1 %vm427_vm0, %v354_v53 }
  0xd6   : > { %3982 = vmatmul.msk.bf16.gmra.mxu2 %vm427_vm0, %v354_v53 }
  0xd7   : > { %3998 = vmatmul.msk.bf16.gmra.mxu3 %vm427_vm0, %v354_v53 }
  0xd9   : > { %v4943_v57 = vpop.f32.mrf.mxu2  ;;  %v4948_v60 = vpop.f32.mrf.mxu0 }
  0xda   : > { %v4945_v58 = vpop.f32.mrf.mxu3  ;;  %v1281_v59 = vmax.f32 %v1280_v56, %v4943_v57  ;;  %v4950_v61 = vpop.f32.mrf.mxu1 }
  0xdb   : > { %v1285_v63 = vmax.f32 %v4948_v60, %v4950_v61 }
  0xdc   : > { %v1282_v62 = vmax.f32 %v1281_v59, %v4945_v58 }
  0xde   : > { %1283 = vmax.xlane.f32.xlu0 %v1282_v62 }
  0xe1   : > { %v4955_v0 = vpop.f32.mrf.mxu2  ;;  %v4959_v2 = vpop.f32.mrf.mxu0 }
  0xe2   : > { %v4957_v1 = vpop.f32.mrf.mxu3  ;;  %v4961_v3 = vpop.f32.mrf.mxu1  ;;  %v1286_v4 = vmax.f32 %v1285_v63, %v4955_v0 }
  0xe3   : > { %v1290_v7 = vmax.f32 %v4959_v2, %v4961_v3 }
  0xe4   : > { %v1287_v5 = vmax.f32 %v1286_v4, %v4957_v1  ;;  %3951 = vmatmul.msk.bf16.gmra.mxu0 %vm427_vm0, %v355_v17 }
  0xe5   : > { %3967 = vmatmul.msk.bf16.gmra.mxu1 %vm427_vm0, %v355_v17 }
  0xe6   : > { %1288 = vmax.xlane.f32.xlu0 %v1287_v5  ;;  %3983 = vmatmul.msk.bf16.gmra.mxu2 %vm427_vm0, %v355_v17 }
  0xe7   : > { %3999 = vmatmul.msk.bf16.gmra.mxu3 %vm427_vm0, %v355_v17  ;;  %v4275_v17 = vld [vmem:[%s4880_s29 + $0x50] sm:$0xff]  }
  0xe9   : > { %v4968_v12 = vpop.f32.mrf.mxu2  ;;  %v4973_v15 = vpop.f32.mrf.mxu0 }
  0xea   : > { %v4970_v13 = vpop.f32.mrf.mxu3  ;;  %v1291_v14 = vmax.f32 %v1290_v7, %v4968_v12  ;;  %v4975_v16 = vpop.f32.mrf.mxu1 }
  0xeb   : > { %v1295_v19 = vmax.f32 %v4973_v15, %v4975_v16 }
  0xec   : > { %v1292_v18 = vmax.f32 %v1291_v14, %v4970_v13 }
  0xee   : > { %1293 = vmax.xlane.f32.xlu1 %v1292_v18 }
  0xf1   : > { %v4984_v20 = vpop.f32.mrf.mxu2  ;;  %v4988_v22 = vpop.f32.mrf.mxu0 }
  0xf2   : > { %v4986_v21 = vpop.f32.mrf.mxu3  ;;  %v4990_v23 = vpop.f32.mrf.mxu1  ;;  %v1296_v24 = vmax.f32 %v1295_v19, %v4984_v20  ;;  %v4244_v19 = vunpack.c.l.bf16 %v4275_v17 }
  0xf3   : > { %v1300_v26 = vmax.f32 %v4988_v22, %v4990_v23 }
  0xf4   : > { %v1297_v25 = vmax.f32 %v1296_v24, %v4986_v21  ;;  %v4245_v24 = vunpack.c.h.bf16 %v4275_v17 }
  0xf6   : > { %1298 = vmax.xlane.f32.xlu1 %v1297_v25 }
  0xf9   : > { %v4996_v27 = vpop.f32.mrf.mxu2  ;;  %v5001_v30 = vpop.f32.mrf.mxu0 }
  0xfa   : > { %v4998_v28 = vpop.f32.mrf.mxu3  ;;  %v1301_v29 = vmax.f32 %v1300_v26, %v4996_v27  ;;  %v5003_v31 = vpop.f32.mrf.mxu1  ;;  %v334_v26 = vmul.f32 0.125, %v4244_v19 }
  0xfb   : > { %v1305_v33 = vmax.f32 %v5001_v30, %v5003_v31 }
  0xfc   : > { %v1302_v32 = vmax.f32 %v1301_v29, %v4998_v28  ;;  %v335_v29 = vmul.f32 0.125, %v4245_v24 }
  0xfe   : > { %1303 = vmax.xlane.f32.xlu2 %v1302_v32  ;;  %v356_v32 = vpack.c.bf16 %v335_v29, %v334_v26 }
 0x100   : > { %3984 = vmatmul.msk.bf16.gmra.mxu2 %vm427_vm0, %v356_v32  ;;  %4000 = vmatmul.msk.bf16.gmra.mxu3 %vm427_vm0, %v356_v32 }
 0x101   : > { %v5008_v34 = vpop.f32.mrf.mxu2  ;;  %v5012_v36 = vpop.f32.mrf.mxu0  ;;  %3952 = vmatmul.msk.bf16.gmra.mxu0 %vm427_vm0, %v356_v32  ;;  %3968 = vmatmul.msk.bf16.gmra.mxu1 %vm427_vm0, %v356_v32 }
 0x102   : > { %v5010_v35 = vpop.f32.mrf.mxu3  ;;  %v5014_v37 = vpop.f32.mrf.mxu1  ;;  %v1306_v38 = vmax.f32 %v1305_v33, %v5008_v34 }
 0x103   : > { %v1310_v40 = vmax.f32 %v5012_v36, %v5014_v37 }
 0x104   : > { %v1307_v39 = vmax.f32 %v1306_v38, %v5010_v35 }
 0x106   : > { %1308 = vmax.xlane.f32.xlu2 %v1307_v39 }
 0x109   : > { %v5020_v41 = vpop.f32.mrf.mxu2  ;;  %v5025_v44 = vpop.f32.mrf.mxu0 }
 0x10a   : > { %v5022_v42 = vpop.f32.mrf.mxu3  ;;  %v1311_v43 = vmax.f32 %v1310_v40, %v5020_v41  ;;  %v5027_v45 = vpop.f32.mrf.mxu1 }
 0x10b   : > { %6846 = vst [vmem:[#allocation5_spill] sm:$0xff] %v5022_v42  ;;  %v1315_v47 = vmax.f32 %v5025_v44, %v5027_v45 }
 0x10c   : > { %v1312_v46 = vmax.f32 %v1311_v43, %v5022_v42 }
 0x10e   : > { %1313 = vmax.xlane.f32.xlu0 %v1312_v46  ;;  %v4751_v46 = vmov -inf  }
 0x10f   : > { %363 = vst.msk [vmem:[#allocation2] sm:$0xff] %vm362_vm1, %v4751_v46 }
 0x110   : > { %364 = vst.msk [vmem:[#allocation2 + $0x8] sm:$0xff] %vm362_vm1, %v4751_v46 }
 0x111   : > { %v5032_v48 = vpop.f32.mrf.mxu2  ;;  %v5036_v50 = vpop.f32.mrf.mxu0  ;;  %365 = vst.msk [vmem:[#allocation2 + $0x10] sm:$0xff] %vm362_vm1, %v4751_v46 }
 0x112   : > { %v5034_v49 = vpop.f32.mrf.mxu3  ;;  %6847 = vst [vmem:[#allocation6_spill] sm:$0xff] %v5036_v50  ;;  %v5038_v51 = vpop.f32.mrf.mxu1  ;;  %v1316_v52 = vmax.f32 %v1315_v47, %v5032_v48 }
 0x113   : > { %6848 = vst [vmem:[#allocation7_spill] sm:$0xff] %v5038_v51  ;;  %v1320_v56 = vmax.f32 %v5036_v50, %v5038_v51 }
 0x114   : > { %v1317_v53 = vmax.f32 %v1316_v52, %v5034_v49  ;;  %366 = vst.msk [vmem:[#allocation2 + $0x18] sm:$0xff] %vm362_vm1, %v4751_v46 }
 0x115   : > { %367 = vst.msk [vmem:[#allocation2 + $0x20] sm:$0xff] %vm362_vm1, %v4751_v46 }
 0x116   : > { %1318 = vmax.xlane.f32.xlu1 %v1317_v53  ;;  %368 = vst.msk [vmem:[#allocation2 + $0x28] sm:$0xff] %vm362_vm1, %v4751_v46 }
 0x117   : > { %369 = vst.msk [vmem:[#allocation2 + $0x30] sm:$0xff] %vm362_vm1, %v4751_v46 }
 0x118   : > { %370 = vst.msk [vmem:[#allocation2 + $0x38] sm:$0xff] %vm362_vm1, %v4751_v46 }
 0x119   : > { %v5044_v59 = vpop.f32.mrf.mxu2  ;;  %v5049_v4 = vpop.f32.mrf.mxu0  ;;  %371 = vst.msk [vmem:[#allocation2 + $0x40] sm:$0xff] %vm362_vm1, %v4751_v46 }
 0x11a   : > { %6849 = vst [vmem:[#allocation8_spill] sm:$0xff] %v5044_v59  ;;  %v5046_v62 = vpop.f32.mrf.mxu3  ;;  %v1321_v63 = vmax.f32 %v1320_v56, %v5044_v59  ;;  %v5051_v5 = vpop.f32.mrf.mxu1 }
 0x11b   : > { %6850 = vst [vmem:[#allocation9_spill] sm:$0xff] %v5046_v62  ;;  %v1325_v7 = vmax.f32 %v5049_v4, %v5051_v5 }
 0x11c   : > { %6851 = vst [vmem:[#allocation10_spill] sm:$0xff] %v5049_v4  ;;  %v1322_v6 = vmax.f32 %v1321_v63, %v5046_v62 }
 0x11d   : > { %6852 = vst [vmem:[#allocation11_spill] sm:$0xff] %v5051_v5 }
 0x11e   : > { %1323 = vmax.xlane.f32.xlu2 %v1322_v6  ;;  %372 = vst.msk [vmem:[#allocation2 + $0x48] sm:$0xff] %vm362_vm1, %v4751_v46 }
 0x11f   : > { %373 = vst.msk [vmem:[#allocation2 + $0x50] sm:$0xff] %vm362_vm1, %v4751_v46 }
 0x120   : > { %374 = vst.msk [vmem:[#allocation2 + $0x58] sm:$0xff] %vm362_vm1, %v4751_v46 }
 0x121   : > { %v5056_v8 = vpop.f32.mrf.mxu2  ;;  %v5060_v10 = vpop.f32.mrf.mxu0  ;;  %375 = vst.msk [vmem:[#allocation2 + $0x60] sm:$0xff] %vm362_vm1, %v4751_v46 }
 0x122   : > { %6853 = vst [vmem:[#allocation12_spill] sm:$0xff] %v5056_v8  ;;  %v5058_v9 = vpop.f32.mrf.mxu3  ;;  %v5062_v11 = vpop.f32.mrf.mxu1  ;;  %v1326_v14 = vmax.f32 %v1325_v7, %v5056_v8 }
 0x123   : > { %6854 = vst [vmem:[#allocation13_spill] sm:$0xff] %v5058_v9  ;;  %v1330_v25 = vmax.f32 %v5060_v10, %v5062_v11 }
 0x124   : > { %6855 = vst [vmem:[#allocation14_spill] sm:$0xff] %v5060_v10  ;;  %v1327_v18 = vmax.f32 %v1326_v14, %v5058_v9  ;;  %v5397_v9 = vld [vmem:[#allocation2 + $0x38] sm:$0xff] }
 0x125   : > { %6856 = vst [vmem:[#allocation15_spill] sm:$0xff] %v5062_v11  ;;  %v4198_v11 = vld [vmem:[%s5493_s5 + $0xe0] sm:$0xff] }
 0x126   : > { %1328 = vmax.xlane.f32.xlu0 %v1327_v18  ;;  %376 = vst.msk [vmem:[#allocation2 + $0x68] sm:$0xff] %vm362_vm1, %v4751_v46 }
 0x127   : > { %377 = vst.msk [vmem:[#allocation2 + $0x70] sm:$0xff] %vm362_vm1, %v4751_v46 }
 0x128   : > { %378 = vst.msk [vmem:[#allocation2 + $0x78] sm:$0xff] %vm362_vm1, %v4751_v46 }
 0x129   : > { %v5069_v33 = vpop.f32.mrf.mxu2  ;;  %v5074_v40 = vpop.f32.mrf.mxu0  ;;  %379 = vst.msk [vmem:[#allocation2 + $0x80] sm:$0xff] %vm362_vm1, %v4751_v46 }
 0x12a   : > { %6857 = vst [vmem:[#allocation16_spill] sm:$0xff] %v5069_v33  ;;  %v5071_v38 = vpop.f32.mrf.mxu3  ;;  %v1331_v39 = vmax.f32 %v1330_v25, %v5069_v33  ;;  %v5076_v43 = vpop.f32.mrf.mxu1  ;;  %v4182_v33 = vld [vmem:[%s5493_s5 + $0x60] sm:$0xff] }
 0x12b   : > { %6858 = vst [vmem:[#allocation17_spill] sm:$0xff] %v5071_v38  ;;  %v1335_v52 = vmax.f32 %v5074_v40, %v5076_v43 }
 0x12c   : > { %6859 = vst [vmem:[#allocation18_spill] sm:$0xff] %v5074_v40  ;;  %v1332_v47 = vmax.f32 %v1331_v39, %v5071_v38 }
 0x12d   : > { %6860 = vst [vmem:[#allocation19_spill] sm:$0xff] %v5076_v43 }
 0x12e   : > { %1333 = vmax.xlane.f32.xlu1 %v1332_v47  ;;  %380 = vst.msk [vmem:[#allocation2 + $0x88] sm:$0xff] %vm362_vm1, %v4751_v46 }
 0x12f   : > { %381 = vst.msk [vmem:[#allocation2 + $0x90] sm:$0xff] %vm362_vm1, %v4751_v46 }
 0x130   : > { %382 = vst.msk [vmem:[#allocation2 + $0x98] sm:$0xff] %vm362_vm1, %v4751_v46 }
 0x131   : > { %v5099_v53 = vpop.f32.mrf.mxu2  ;;  %v5105_v63 = vpop.f32.mrf.mxu0  ;;  %383 = vst.msk [vmem:[#allocation2 + $0xa0] sm:$0xff] %vm362_vm1, %v4751_v46 }
 0x132   : > { %6861 = vst [vmem:[#allocation20_spill] sm:$0xff] %v5099_v53  ;;  %v5101_v56 = vpop.f32.mrf.mxu3  ;;  %v5107_v6 = vpop.f32.mrf.mxu1  ;;  %v1336_v7 = vmax.f32 %v1335_v52, %v5099_v53 }
 0x133   : > { %6862 = vst [vmem:[#allocation21_spill] sm:$0xff] %v5101_v56  ;;  %v1340_v17 = vmax.f32 %v5105_v63, %v5107_v6 }
 0x134   : > { %6863 = vst [vmem:[#allocation22_spill] sm:$0xff] %v5105_v63  ;;  %v1337_v14 = vmax.f32 %v1336_v7, %v5101_v56  ;;  %v4753_v63 = vmov 0.0  }
 0x135   : > { %6864 = vst [vmem:[#allocation23_spill] sm:$0xff] %v5107_v6 }
 0x136   : > { %1338 = vmax.xlane.f32.xlu2 %v1337_v14  ;;  %384 = vst.msk [vmem:[#allocation2 + $0xa8] sm:$0xff] %vm362_vm1, %v4751_v46 }
 0x137   : > { %385 = vst.msk [vmem:[#allocation2 + $0xb0] sm:$0xff] %vm362_vm1, %v4751_v46 }
 0x138   : > { %386 = vst.msk [vmem:[#allocation2 + $0xb8] sm:$0xff] %vm362_vm1, %v4751_v46 }
 0x139   : > { %v5127_v18 = vpop.f32.mrf.mxu2  ;;  %v5134_v25 = vpop.f32.mrf.mxu0  ;;  %387 = vst.msk [vmem:[#allocation2 + $0xc0] sm:$0xff] %vm362_vm1, %v4751_v46 }
 0x13a   : > { %6865 = vst [vmem:[#allocation24_spill] sm:$0xff] %v5127_v18  ;;  %v5129_v19 = vpop.f32.mrf.mxu3  ;;  %v1341_v24 = vmax.f32 %v1340_v17, %v5127_v18  ;;  %v5136_v26 = vpop.f32.mrf.mxu1 }
 0x13b   : > { %6866 = vst [vmem:[#allocation25_spill] sm:$0xff] %v5129_v19  ;;  %v1345_v32 = vmax.f32 %v5134_v25, %v5136_v26 }
 0x13c   : > { %6867 = vst [vmem:[#allocation26_spill] sm:$0xff] %v5134_v25  ;;  %v1342_v29 = vmax.f32 %v1341_v24, %v5129_v19 }
 0x13d   : > { %6868 = vst [vmem:[#allocation27_spill] sm:$0xff] %v5136_v26 }
 0x13e   : > { %1343 = vmax.xlane.f32.xlu0 %v1342_v29  ;;  %388 = vst.msk [vmem:[#allocation2 + $0xc8] sm:$0xff] %vm362_vm1, %v4751_v46  ;;  %v4752_v29 = vmov 0  }
 0x13f   : > { %389 = vst.msk [vmem:[#allocation2 + $0xd0] sm:$0xff] %vm362_vm1, %v4751_v46  ;;  %4324 = vset.pattern.permute.xlu2 %v4752_v29  ;;  %4325 = vset.pattern.permute.xlu0 %v4752_v29 }
 0x140   : > { %390 = vst.msk [vmem:[#allocation2 + $0xd8] sm:$0xff] %vm362_vm1, %v4751_v46  ;;  %4326 = vset.pattern.permute.xlu1 %v4752_v29 }
 0x141   : > { %v5155_v39 = vpop.f32.mrf.mxu2  ;;  %v5161_v52 = vpop.f32.mrf.mxu0  ;;  %391 = vst.msk [vmem:[#allocation2 + $0xe0] sm:$0xff] %vm362_vm1, %v4751_v46 }
 0x142   : > { %6869 = vst [vmem:[#allocation28_spill] sm:$0xff] %v5155_v39  ;;  %v5157_v47 = vpop.f32.mrf.mxu3  ;;  %v5163_v7 = vpop.f32.mrf.mxu1  ;;  %v1346_v14 = vmax.f32 %v1345_v32, %v5155_v39  ;;  %v4276_v32 = vld [vmem:[%s4880_s29 + $0x58] sm:$0xff]  }
 0x143   : > { %6870 = vst [vmem:[#allocation29_spill] sm:$0xff] %v5157_v47  ;;  %v1350_v24 = vmax.f32 %v5161_v52, %v5163_v7  ;;  %v4249_v19 = vunpack.c.h.bf16 %v4276_v32 }
 0x144   : > { %6871 = vst [vmem:[#allocation30_spill] sm:$0xff] %v5161_v52  ;;  %v1347_v17 = vmax.f32 %v1346_v14, %v5157_v47  ;;  %v4248_v14 = vunpack.c.l.bf16 %v4276_v32 }
 0x145   : > { %6872 = vst [vmem:[#allocation31_spill] sm:$0xff] %v5163_v7  ;;  %v337_v52 = vmul.f32 0.125, %v4249_v19 }
 0x146   : > { %1348 = vmax.xlane.f32.xlu1 %v1347_v17  ;;  %392 = vst.msk [vmem:[#allocation2 + $0xe8] sm:$0xff] %vm362_vm1, %v4751_v46  ;;  %v336_v17 = vmul.f32 0.125, %v4248_v14 }
 0x147   : > { %393 = vst.msk [vmem:[#allocation2 + $0xf0] sm:$0xff] %vm362_vm1, %v4751_v46 }
 0x148   : > { %394 = vst.msk [vmem:[#allocation2 + $0xf8] sm:$0xff] %vm362_vm1, %v4751_v46  ;;  %v357_v47 = vpack.c.bf16 %v337_v52, %v336_v17 }
 0x149   : > { %v5184_v18 = vpop.f32.mrf.mxu2  ;;  %428 = vst.msk [vmem:[#allocation4] sm:$0xff] %vm427_vm0, %v4753_v63  ;;  %v5193_v32 = vpop.f32.mrf.mxu0 }
 0x14a   : > { %6873 = vst [vmem:[#allocation32_spill] sm:$0xff] %v5184_v18  ;;  %v5186_v7 = vpop.f32.mrf.mxu3  ;;  %v1351_v6 = vmax.f32 %v1350_v24, %v5184_v18  ;;  %v5195_v29 = vpop.f32.mrf.mxu1  ;;  %3985 = vmatmul.msk.bf16.gmra.mxu2 %vm427_vm0, %v357_v47  ;;  %4001 = vmatmul.msk.bf16.gmra.mxu3 %vm427_vm0, %v357_v47  ;;  %v5291_v18 = vld [vmem:[#allocation2 + $0x18] sm:$0xff] }
 0x14b   : > { %6874 = vst [vmem:[#allocation33_spill] sm:$0xff] %v5186_v7  ;;  %3953 = vmatmul.msk.bf16.gmra.mxu0 %vm427_vm0, %v357_v47  ;;  %3969 = vmatmul.msk.bf16.gmra.mxu1 %vm427_vm0, %v357_v47  ;;  %v1355_v46 = vmax.f32 %v5193_v32, %v5195_v29 }
 0x14c   : > { %6875 = vst [vmem:[#allocation34_spill] sm:$0xff] %v5193_v32  ;;  %v1352_v39 = vmax.f32 %v1351_v6, %v5186_v7  ;;  %v1248_v6 = vld [vmem:[#allocation2] sm:$0xff] }
 0x14d   : > { %6876 = vst [vmem:[#allocation35_spill] sm:$0xff] %v5195_v29 }
 0x14e   : > { %395 = vst.msk [vmem:[#allocation3] sm:$0xff] %vm362_vm1, %v4753_v63  ;;  %1353 = vmax.xlane.f32.xlu2 %v1352_v39 }
 0x14f   : > { %396 = vst.msk [vmem:[#allocation3 + $0x8] sm:$0xff] %vm362_vm1, %v4753_v63 }
 0x150   : > { %397 = vst.msk [vmem:[#allocation3 + $0x10] sm:$0xff] %vm362_vm1, %v4753_v63 }
 0x151   : > { %398 = vst.msk [vmem:[#allocation3 + $0x18] sm:$0xff] %vm362_vm1, %v4753_v63  ;;  %v5216_v19 = vpop.f32.mrf.mxu2  ;;  %v1284_v52 = vpop.xlane.xlu0 %1283 }
 0x152   : > { %399 = vst.msk [vmem:[#allocation3 + $0x20] sm:$0xff] %vm362_vm1, %v4753_v63  ;;  %v5218_v39 = vpop.f32.mrf.mxu3  ;;  %v1356_v47 = vmax.f32 %v1355_v46, %v5216_v19  ;;  %v1440_v24 = vmax.f32 %v1248_v6, %v1284_v52  ;;  %v5231_v17 = vpop.f32.mrf.mxu0  ;;  %v5241_v52 = vld [vmem:[#allocation2 + $0x8] sm:$0xff] }
 0x153   : > { %400 = vst.msk [vmem:[#allocation3 + $0x28] sm:$0xff] %vm362_vm1, %v4753_v63  ;;  %v5233_v29 = vpop.f32.mrf.mxu1 }
 0x154   : > { %6877 = vst [vmem:[#allocation36_spill] sm:$0xff] %v5216_v19  ;;  %v1357_v14 = vmax.f32 %v1356_v47, %v5218_v39  ;;  %v1360_v46 = vmax.f32 %v5231_v17, %v5233_v29 }
 0x155   : > { %6878 = vst [vmem:[#allocation37_spill] sm:$0xff] %v5218_v39 }
 0x156   : > { %401 = vst.msk [vmem:[#allocation3 + $0x30] sm:$0xff] %vm362_vm1, %v4753_v63  ;;  %1358 = vmax.xlane.f32.xlu0 %v1357_v14 }
 0x157   : > { %402 = vst.msk [vmem:[#allocation3 + $0x38] sm:$0xff] %vm362_vm1, %v4753_v63 }
 0x158   : > { %403 = vst.msk [vmem:[#allocation3 + $0x40] sm:$0xff] %vm362_vm1, %v4753_v63 }
 0x159   : > { %404 = vst.msk [vmem:[#allocation3 + $0x48] sm:$0xff] %vm362_vm1, %v4753_v63  ;;  %v5245_v47 = vpop.f32.mrf.mxu2  ;;  %v1289_v19 = vpop.xlane.xlu0 %1288 }
 0x15a   : > { %3300 = vst.msk [vmem:[#allocation2] sm:$0xff] %vm362_vm1, %v1440_v24  ;;  %v1361_v39 = vmax.f32 %v1360_v46, %v5245_v47  ;;  %v5252_v14 = vpop.f32.mrf.mxu3  ;;  %v5255_v32 = vmax.f32 %v5241_v52, %v1289_v19  ;;  %v5270_v19 = vld [vmem:[#allocation2 + $0x10] sm:$0xff]  ;;  %v1472_v46 = vsub.f32 %v1248_v6, %v1440_v24 }
 0x15b   : > { %6879 = vst [vmem:[#allocation38_spill] sm:$0xff] %v5231_v17 }
 0x15c   : > { %6880 = vst [vmem:[#allocation39_spill] sm:$0xff] %v5233_v29  ;;  %v1362_v7 = vmax.f32 %v1361_v39, %v5252_v14  ;;  %v1504_v6 = vmul.f32 1.442695, %v1472_v46 }
 0x15d   : > { %405 = vst.msk [vmem:[#allocation3 + $0x50] sm:$0xff] %vm362_vm1, %v4753_v63 }
 0x15e   : > { %406 = vst.msk [vmem:[#allocation3 + $0x58] sm:$0xff] %vm362_vm1, %v4753_v63  ;;  %1363 = vmax.xlane.f32.xlu1 %v1362_v7  ;;  %4327 = vpow2.f32 %v1504_v6 }
 0x15f   : > { %407 = vst.msk [vmem:[#allocation3 + $0x60] sm:$0xff] %vm362_vm1, %v4753_v63 }
 0x160   : > { %6881 = vst [vmem:[#allocation40_spill] sm:$0xff] %v5245_v47  ;;  %v4277_v47 = vld [vmem:[%s4880_s29 + $0x60] sm:$0xff]  }
 0x161   : > { %408 = vst.msk [vmem:[#allocation3 + $0x68] sm:$0xff] %vm362_vm1, %v4753_v63  ;;  %v1294_v39 = vpop.xlane.xlu1 %1293  ;;  %v4252_v29 = vunpack.c.l.bf16 %v4277_v47  ;;  %v4253_v17 = vunpack.c.h.bf16 %v4277_v47 }
 0x162   : > { %409 = vst.msk [vmem:[#allocation3 + $0x70] sm:$0xff] %vm362_vm1, %v4753_v63  ;;  %v5279_v7 = vmax.f32 %v5270_v19, %v1294_v39  ;;  %v5383_v53 = vpop.f32.mrf.mxu3 }
 0x163   : > { %6882 = vst [vmem:[#allocation41_spill] sm:$0xff] %v5252_v14  ;;  %v338_v6 = vmul.f32 0.125, %v4252_v29  ;;  %v339_v26 = vmul.f32 0.125, %v4253_v17 }
 0x164   : > { %410 = vst.msk [vmem:[#allocation3 + $0x78] sm:$0xff] %vm362_vm1, %v4753_v63  ;;  %v5331_v25 = vpop.eup %4327  ;;  %v1474_v59 = vsub.f32 %v5270_v19, %v5279_v7  ;;  %v5464_v19 = vld [vmem:[#allocation2 + $0x50] sm:$0xff] }
 0x165   : > { %411 = vst.msk [vmem:[#allocation3 + $0x80] sm:$0xff] %vm362_vm1, %v4753_v63  ;;  %v358_v47 = vpack.c.bf16 %v339_v26, %v338_v6  ;;  %v5357_v26 = vpop.f32.mrf.mxu0  ;;  %v5359_v6 = vpop.f32.mrf.mxu1 }
 0x166   : > { %3301 = vst.msk [vmem:[#allocation2 + $0x8] sm:$0xff] %vm362_vm1, %v5255_v32  ;;  %1570 = vperm.xlu2 %4324, %v1440_v24   ;;  %v5311_v24 = vld [vmem:[#allocation2 + $0x20] sm:$0xff] }
 0x167   : > { %412 = vst.msk [vmem:[#allocation3 + $0x88] sm:$0xff] %vm362_vm1, %v4753_v63  ;;  %3986 = vmatmul.msk.bf16.gmra.mxu2 %vm427_vm0, %v358_v47  ;;  %4002 = vmatmul.msk.bf16.gmra.mxu3 %vm427_vm0, %v358_v47 }
 0x168   : > { %413 = vst.msk [vmem:[#allocation3 + $0x90] sm:$0xff] %vm362_vm1, %v4753_v63  ;;  %3954 = vmatmul.msk.bf16.gmra.mxu0 %vm427_vm0, %v358_v47  ;;  %3970 = vmatmul.msk.bf16.gmra.mxu1 %vm427_vm0, %v358_v47  ;;  %v5366_v47 = vld [vmem:[#allocation2 + $0x30] sm:$0xff] }
 0x169   : > { %414 = vst.msk [vmem:[#allocation3 + $0x98] sm:$0xff] %vm362_vm1, %v4753_v63  ;;  %v1299_v39 = vpop.xlane.xlu1 %1298 }
 0x16a   : > { %415 = vst.msk [vmem:[#allocation3 + $0xa0] sm:$0xff] %vm362_vm1, %v4753_v63  ;;  %1575 = vperm.xlu0 %4325, %v5255_v32   ;;  %v5301_v14 = vmax.f32 %v5291_v18, %v1299_v39 }
 0x16b   : > { %416 = vst.msk [vmem:[#allocation3 + $0xa8] sm:$0xff] %vm362_vm1, %v4753_v63 }
 0x16c   : > { %417 = vst.msk [vmem:[#allocation3 + $0xb0] sm:$0xff] %vm362_vm1, %v4753_v63 }
 0x16d   : > { %418 = vst.msk [vmem:[#allocation3 + $0xb8] sm:$0xff] %vm362_vm1, %v4753_v63  ;;  %v5387_v43 = vpop.f32.mrf.mxu0  ;;  %v5389_v40 = vpop.f32.mrf.mxu1 }
 0x16e   : > { %3302 = vst.msk [vmem:[#allocation2 + $0x10] sm:$0xff] %vm362_vm1, %v5279_v7  ;;  %v1370_v8 = vmax.f32 %v5387_v43, %v5389_v40 }
 0x16f   : > { %419 = vst.msk [vmem:[#allocation3 + $0xc0] sm:$0xff] %vm362_vm1, %v4753_v63 }
 0x170   : > { %420 = vst.msk [vmem:[#allocation3 + $0xc8] sm:$0xff] %vm362_vm1, %v4753_v63 }
 0x171   : > { %421 = vst.msk [vmem:[#allocation3 + $0xd0] sm:$0xff] %vm362_vm1, %v4753_v63  ;;  %v1304_v39 = vpop.xlane.xlu2 %1303 }
 0x172   : > { %422 = vst.msk [vmem:[#allocation3 + $0xd8] sm:$0xff] %vm362_vm1, %v4753_v63  ;;  %v5320_v46 = vmax.f32 %v5311_v24, %v1304_v39  ;;  %v5336_v39 = vld [vmem:[#allocation2 + $0x28] sm:$0xff] }
 0x173   : > { %423 = vst.msk [vmem:[#allocation3 + $0xe0] sm:$0xff] %vm362_vm1, %v4753_v63 }
 0x174   : > { %424 = vst.msk [vmem:[#allocation3 + $0xe8] sm:$0xff] %vm362_vm1, %v4753_v63 }
 0x175   : > { %425 = vst.msk [vmem:[#allocation3 + $0xf0] sm:$0xff] %vm362_vm1, %v4753_v63 }
 0x176   : > { %3303 = vst.msk [vmem:[#allocation2 + $0x18] sm:$0xff] %vm362_vm1, %v5301_v14 }
 0x177   : > { %426 = vst.msk [vmem:[#allocation3 + $0xf8] sm:$0xff] %vm362_vm1, %v4753_v63  ;;  %2434 = vperm.xlu1 %4326, %v5331_v25  }
 0x178   : > { %429 = vst.msk [vmem:[#allocation4 + $0x8] sm:$0xff] %vm427_vm0, %v4753_v63 }
 0x179   : > { %430 = vst.msk [vmem:[#allocation4 + $0x10] sm:$0xff] %vm427_vm0, %v4753_v63  ;;  %v1309_v29 = vpop.xlane.xlu2 %1308 }
 0x17a   : > { %431 = vst.msk [vmem:[#allocation4 + $0x18] sm:$0xff] %vm427_vm0, %v4753_v63  ;;  %v5347_v17 = vmax.f32 %v5336_v39, %v1309_v29  ;;  %v5372_v29 = vpop.f32.mrf.mxu2 }
 0x17b   : > { %432 = vst.msk [vmem:[#allocation4 + $0x20] sm:$0xff] %vm427_vm0, %v4753_v63 }
 0x17c   : > { %433 = vst.msk [vmem:[#allocation4 + $0x28] sm:$0xff] %vm427_vm0, %v4753_v63 }
 0x17d   : > { %3304 = vst.msk [vmem:[#allocation2 + $0x20] sm:$0xff] %vm362_vm1, %v5320_v46 }
 0x17e   : > { %434 = vst.msk [vmem:[#allocation4 + $0x30] sm:$0xff] %vm427_vm0, %v4753_v63 }
 0x17f   : > { %6883 = vst [vmem:[#allocation42_spill] sm:$0xff] %v5331_v25  ;;  %1580 = vperm.xlu1 %4326, %v5279_v7  }
 0x180   : > { %435 = vst.msk [vmem:[#allocation4 + $0x38] sm:$0xff] %vm427_vm0, %v4753_v63 }
 0x181   : > { %436 = vst.msk [vmem:[#allocation4 + $0x40] sm:$0xff] %vm427_vm0, %v4753_v63  ;;  %v1314_v25 = vpop.xlane.xlu0 %1313 }
 0x182   : > { %437 = vst.msk [vmem:[#allocation4 + $0x48] sm:$0xff] %vm427_vm0, %v4753_v63  ;;  %v5377_v56 = vmax.f32 %v5366_v47, %v1314_v25  ;;  %v1365_v25 = vmax.f32 %v5357_v26, %v5359_v6  ;;  %v5405_v4 = vpop.f32.mrf.mxu2 }
 0x183   : > { %438 = vst.msk [vmem:[#allocation4 + $0x50] sm:$0xff] %vm427_vm0, %v4753_v63 }
 0x184   : > { %439 = vst.msk [vmem:[#allocation4 + $0x58] sm:$0xff] %vm427_vm0, %v4753_v63  ;;  %v1366_v62 = vmax.f32 %v1365_v25, %v5372_v29 }
 0x185   : > { %440 = vst.msk [vmem:[#allocation4 + $0x60] sm:$0xff] %vm427_vm0, %v4753_v63 }
 0x186   : > { %3305 = vst.msk [vmem:[#allocation2 + $0x28] sm:$0xff] %vm362_vm1, %v5347_v17  ;;  %v1367_v25 = vmax.f32 %v1366_v62, %v5383_v53 }
 0x187   : > { %6884 = vst [vmem:[#allocation43_spill] sm:$0xff] %v5357_v26  ;;  %v5442_v26 = vld [vmem:[#allocation2 + $0x48] sm:$0xff] }
 0x188   : > { %6885 = vst [vmem:[#allocation44_spill] sm:$0xff] %v5359_v6 }
 0x189   : > { %441 = vst.msk [vmem:[#allocation4 + $0x68] sm:$0xff] %vm427_vm0, %v4753_v63  ;;  %v1319_v5 = vpop.xlane.xlu1 %1318 }
 0x18a   : > { %442 = vst.msk [vmem:[#allocation4 + $0x70] sm:$0xff] %vm427_vm0, %v4753_v63  ;;  %v5411_v6 = vmax.f32 %v5397_v9, %v1319_v5  ;;  %v5427_v5 = vld [vmem:[#allocation2 + $0x40] sm:$0xff] }
 0x18b   : > { %443 = vst.msk [vmem:[#allocation4 + $0x78] sm:$0xff] %vm427_vm0, %v4753_v63 }
 0x18c   : > { %444 = vst.msk [vmem:[#allocation4 + $0x80] sm:$0xff] %vm427_vm0, %v4753_v63 }
 0x18d   : > { %6886 = vst [vmem:[#allocation45_spill] sm:$0xff] %v5372_v29 }
 0x18e   : > { %445 = vst.msk [vmem:[#allocation4 + $0x88] sm:$0xff] %vm427_vm0, %v4753_v63 }
 0x18f   : > { %446 = vst.msk [vmem:[#allocation4 + $0x90] sm:$0xff] %vm427_vm0, %v4753_v63  ;;  %1368 = vmax.xlane.f32.xlu2 %v1367_v25  ;;  %v4278_v25 = vld [vmem:[%s4880_s29 + $0x68] sm:$0xff]  }
 0x190   : > { %447 = vst.msk [vmem:[#allocation4 + $0x98] sm:$0xff] %vm427_vm0, %v4753_v63 }
 0x191   : > { %6887 = vst [vmem:[#allocation46_spill] sm:$0xff] %v5383_v53  ;;  %v1324_v62 = vpop.xlane.xlu2 %1323  ;;  %v4257_v53 = vunpack.c.h.bf16 %v4278_v25 }
 0x192   : > { %3306 = vst.msk [vmem:[#allocation2 + $0x30] sm:$0xff] %vm362_vm1, %v5377_v56 }
 0x193   : > { %6888 = vst [vmem:[#allocation47_spill] sm:$0xff] %v5387_v43  ;;  %v5421_v43 = vpop.f32.mrf.mxu3 }
 0x194   : > { %6889 = vst [vmem:[#allocation48_spill] sm:$0xff] %v5389_v40  ;;  %v1371_v40 = vmax.f32 %v1370_v8, %v5405_v4  ;;  %v5437_v8 = vmax.f32 %v5427_v5, %v1324_v62 }
 0x195   : > { %448 = vst.msk [vmem:[#allocation4 + $0xa0] sm:$0xff] %vm427_vm0, %v4753_v63 }
 0x196   : > { %449 = vst.msk [vmem:[#allocation4 + $0xa8] sm:$0xff] %vm427_vm0, %v4753_v63  ;;  %v1372_v29 = vmax.f32 %v1371_v40, %v5421_v43 }
 0x197   : > { %450 = vst.msk [vmem:[#allocation4 + $0xb0] sm:$0xff] %vm427_vm0, %v4753_v63 }
 0x198   : > { %451 = vst.msk [vmem:[#allocation4 + $0xb8] sm:$0xff] %vm427_vm0, %v4753_v63  ;;  %1373 = vmax.xlane.f32.xlu0 %v1372_v29  ;;  %v6892_v29 = vsub.f32 %v5241_v52, %v5255_v32  ;;  %v5466_v32 = vpop.f32.mrf.mxu2  ;;  %v1476_v52 = vsub.f32 %v5311_v24, %v5320_v46  ;;  %v5484_v24 = vld [vmem:[#allocation2 + $0x58] sm:$0xff] }
 0x199   : > { %6890 = vst [vmem:[#allocation49_spill] sm:$0xff] %v5405_v4  ;;  %v4256_v4 = vunpack.c.l.bf16 %v4278_v25  ;;  %v1329_v51 = vpop.xlane.xlu0 %1328 }
 0x19a   : > { %452 = vst.msk [vmem:[#allocation4 + $0xc0] sm:$0xff] %vm427_vm0, %v4753_v63  ;;  %v1506_v62 = vmul.f32 1.442695, %v6892_v29 }
 0x19b   : > { %453 = vst.msk [vmem:[#allocation4 + $0xc8] sm:$0xff] %vm427_vm0, %v4753_v63  ;;  %v340_v40 = vmul.f32 0.125, %v4256_v4  ;;  %v5456_v4 = vpop.f32.mrf.mxu0 }
 0x19c   : > { %454 = vst.msk [vmem:[#allocation4 + $0xd0] sm:$0xff] %vm427_vm0, %v4753_v63  ;;  %4329 = vpow2.f32 %v1506_v62  ;;  %v4279_v62 = vld [vmem:[%s4880_s29 + $0x70] sm:$0xff]  }
 0x19d   : > { %3307 = vst.msk [vmem:[#allocation2 + $0x38] sm:$0xff] %vm362_vm1, %v5411_v6 }
 0x19e   : > { %6891 = vst [vmem:[#allocation50_spill] sm:$0xff] %v5421_v43  ;;  %v341_v43 = vmul.f32 0.125, %v4257_v53  ;;  %v5458_v53 = vpop.f32.mrf.mxu1 }
 0x19f   : > { %455 = vst.msk [vmem:[#allocation4 + $0xd8] sm:$0xff] %vm427_vm0, %v4753_v63 }
 0x1a0   : > { %456 = vst.msk [vmem:[#allocation4 + $0xe0] sm:$0xff] %vm427_vm0, %v4753_v63  ;;  %v359_v50 = vpack.c.bf16 %v341_v43, %v340_v40  ;;  %v1375_v43 = vmax.f32 %v5456_v4, %v5458_v53 }
 0x1a1   : > { %457 = vst.msk [vmem:[#allocation4 + $0xe8] sm:$0xff] %vm427_vm0, %v4753_v63  ;;  %v1334_v7 = vpop.xlane.xlu1 %1333 }
 0x1a2   : > { %458 = vst.msk [vmem:[#allocation4 + $0xf0] sm:$0xff] %vm427_vm0, %v4753_v63  ;;  %3955 = vmatmul.msk.bf16.gmra.mxu0 %vm427_vm0, %v359_v50  ;;  %3971 = vmatmul.msk.bf16.gmra.mxu1 %vm427_vm0, %v359_v50  ;;  %v5471_v25 = vmax.f32 %v5464_v19, %v1334_v7  ;;  %v1376_v40 = vmax.f32 %v1375_v43, %v5466_v32  ;;  %v5478_v29 = vpop.eup %4329  ;;  %v4261_v43 = vunpack.c.h.bf16 %v4279_v62 }
 0x1a3   : > { %459 = vst.msk [vmem:[#allocation4 + $0xf8] sm:$0xff] %vm427_vm0, %v4753_v63  ;;  %v5447_v63 = vmax.f32 %v5442_v26, %v1329_v51  ;;  %3987 = vmatmul.msk.bf16.gmra.mxu2 %vm427_vm0, %v359_v50  ;;  %4003 = vmatmul.msk.bf16.gmra.mxu3 %vm427_vm0, %v359_v50  ;;  %v1508_v51 = vmul.f32 1.442695, %v1474_v59  ;;  %v5474_v50 = vpop.f32.mrf.mxu3  ;;  %v1512_v59 = vmul.f32 1.442695, %v1476_v52 }
 0x1a4   : > { %3308 = vst.msk [vmem:[#allocation2 + $0x40] sm:$0xff] %vm362_vm1, %v5437_v8  ;;  %v1377_v7 = vmax.f32 %v1376_v40, %v5474_v50  ;;  %v343_v52 = vmul.f32 0.125, %v4261_v43  ;;  %v4201_v43 = vld [vmem:[%s5493_s5 + $0xf8] sm:$0xff] }
 0x1a5   : > { %3309 = vst.msk [vmem:[#allocation2 + $0x48] sm:$0xff] %vm362_vm1, %v5447_v63  ;;  %4331 = vpow2.f32 %v1508_v51  ;;  %3147 = vmatpush.bf16.msrb.mxu3 %v4201_v43  ;;  %v4199_v43 = vld [vmem:[%s5493_s5 + $0xe8] sm:$0xff] }
 0x1a6   : > { %6893 = vst [vmem:[#allocation51_spill] sm:$0xff] %v5456_v4  ;;  %4333 = vpow2.f32 %v1512_v59  ;;  %v4185_v59 = vld [vmem:[%s5493_s5 + $0x78] sm:$0xff] }
 0x1a7   : > { %6894 = vst [vmem:[#allocation52_spill] sm:$0xff] %v5458_v53  ;;  %2439 = vperm.xlu2 %4324, %v5478_v29   ;;  %v4260_v53 = vunpack.c.l.bf16 %v4279_v62  ;;  %2969 = vmatpush.bf16.msrb.mxu1 %v4185_v59  ;;  %v4175_v59 = vld [vmem:[%s5493_s5 + $0x28] sm:$0xff] }
 0x1a8   : > { %6895 = vst [vmem:[#allocation53_spill] sm:$0xff] %v5466_v32 }
 0x1a9   : > { %6896 = vst [vmem:[#allocation54_spill] sm:$0xff] %v5474_v50  ;;  %v1339_v32 = vpop.xlane.xlu2 %1338  ;;  %1378 = vmax.xlane.f32.xlu1 %v1377_v7  ;;  %v342_v4 = vmul.f32 0.125, %v4260_v53  ;;  %v4177_v53 = vld [vmem:[%s5493_s5 + $0x38] sm:$0xff]  ;;  %v4184_v50 = vld [vmem:[%s5493_s5 + $0x70] sm:$0xff] }
 0x1aa   : > { %3310 = vst.msk [vmem:[#allocation2 + $0x50] sm:$0xff] %vm362_vm1, %v5471_v25  ;;  %v5496_v40 = vmax.f32 %v5484_v24, %v1339_v32  ;;  %v4193_v7 = vld [vmem:[%s5493_s5 + $0xb8] sm:$0xff]  ;;  %v5511_v32 = vld [vmem:[#allocation2 + $0x60] sm:$0xff]  ;;  %2880 = vmatpush.bf16.msrb.mxu0 %v4177_v53  ;;  %v1475_v53 = vsub.f32 %v5291_v18, %v5301_v14  ;;  %v5531_v18 = vld [vmem:[#allocation2 + $0x68] sm:$0xff] }
 0x1ab   : > { %6897 = vst [vmem:[#allocation55_spill] sm:$0xff] %v5478_v29  ;;  %v5481_v51 = vpop.eup %4331  ;;  %v360_v62 = vpack.c.bf16 %v343_v52, %v342_v4  ;;  %v4176_v52 = vld [vmem:[%s5493_s5 + $0x30] sm:$0xff]  ;;  %3058 = vmatpush.bf16.msrb.mxu2 %v4193_v7  ;;  %2970 = vmatpush.bf16.msrb.mxu1 %v4184_v50  ;;  %v4191_v7 = vld [vmem:[%s5493_s5 + $0xa8] sm:$0xff]  ;;  %v4174_v50 = vld [vmem:[%s5493_s5 + $0x20] sm:$0xff] }
 0x1ac   : > { %6898 = vst [vmem:[#allocation56_spill] sm:$0xff] %v5481_v51  ;;  %2444 = vperm.xlu0 %4325, %v5481_v51   ;;  %v5508_v4 = vpop.eup %4333  ;;  %v4200_v29 = vld [vmem:[%s5493_s5 + $0xf0] sm:$0xff] }
 0x1ad   : > { %6899 = vst [vmem:[#allocation57_spill] sm:$0xff] %v5484_v24  ;;  %3148 = vmatpush.bf16.msrb.mxu3 %v4200_v29  ;;  %v4190_v29 = vld [vmem:[%s5493_s5 + $0xa0] sm:$0xff] }
 0x1ae   : > { %3311 = vst.msk [vmem:[#allocation2 + $0x58] sm:$0xff] %vm362_vm1, %v5496_v40  ;;  %2881 = vmatpush.bf16.msrb.mxu0 %v4176_v52  ;;  %v4186_v24 = vld [vmem:[%s5493_s5 + $0x80] sm:$0xff] }
 0x1af   : > { %6900 = vst [vmem:[#allocation58_spill] sm:$0xff] %v5508_v4  ;;  %1585 = vperm.xlu2 %4324, %v5301_v14  }
 0x1b0   : > { %6901 = vst [vmem:[#allocation59_spill] sm:$0xff] %v5511_v32 }
 0x1b1   : > { %v1344_v51 = vpop.xlane.xlu0 %1343  ;;  %6903 = vst [vmem:[#allocation61_spill] sm:$0xff] %v5531_v18  ;;  %3149 = vmatpush.bf16.msrb.mxu3 %v4199_v43  ;;  %v4189_v43 = vld [vmem:[%s5493_s5 + $0x98] sm:$0xff] }
 0x1b2   : > { %3956 = vmatmul.msk.bf16.gmra.mxu0 %vm427_vm0, %v360_v62  ;;  %3972 = vmatmul.msk.bf16.gmra.mxu1 %vm427_vm0, %v360_v62  ;;  %v5519_v38 = vmax.f32 %v5511_v32, %v1344_v51  ;;  %v4280_v51 = vld [vmem:[%s4880_s29 + $0x78] sm:$0xff]   ;;  %v1510_v32 = vmul.f32 1.442695, %v1475_v53 }
 0x1b3   : > { %3988 = vmatmul.msk.bf16.gmra.mxu2 %vm427_vm0, %v360_v62  ;;  %4004 = vmatmul.msk.bf16.gmra.mxu3 %vm427_vm0, %v360_v62  ;;  %v4192_v62 = vld [vmem:[%s5493_s5 + $0xb0] sm:$0xff]  ;;  %v4264_v14 = vunpack.c.l.bf16 %v4280_v51  ;;  %v4265_v52 = vunpack.c.h.bf16 %v4280_v51  ;;  %v4197_v51 = vld [vmem:[%s5493_s5 + $0xd8] sm:$0xff] }
 0x1b4   : > { %2454 = vperm.xlu0 %4325, %v5508_v4   ;;  %6902 = vst [vmem:[#allocation60_spill] sm:$0xff] %v5519_v38  ;;  %v4183_v4 = vld [vmem:[%s5493_s5 + $0x68] sm:$0xff]  ;;  %3059 = vmatpush.bf16.msrb.mxu2 %v4192_v62  ;;  %4335 = vpow2.f32 %v1510_v32  ;;  %v5548_v32 = vld [vmem:[#allocation2 + $0x70] sm:$0xff] }
 0x1b5   : > { %3312 = vst.msk [vmem:[#allocation2 + $0x60] sm:$0xff] %vm362_vm1, %v5519_v38  ;;  %2882 = vmatpush.bf16.msrb.mxu0 %v4175_v59  ;;  %2971 = vmatpush.bf16.msrb.mxu1 %v4183_v4  ;;  %v344_v53 = vmul.f32 0.125, %v4264_v14  ;;  %v345_v10 = vmul.f32 0.125, %v4265_v52  ;;  %v4173_v4 = vld [vmem:[%s5493_s5 + $0x18] sm:$0xff]  ;;  %v4178_v38 = vld [vmem:[%s5493_s5 + $0x40] sm:$0xff] }
 0x1b6   : > { %3150 = vmatpush.bf16.msrb.mxu3 %v4198_v11  ;;  %6905 = vst [vmem:[#allocation63_spill] sm:$0xff] %v5548_v32  ;;  %v4172_v11 = vld [vmem:[%s5493_s5 + $0x10] sm:$0xff] }
 0x1b7   : > { %1590 = vperm.xlu2 %4324, %v5320_v46   ;;  %v361_v59 = vpack.c.bf16 %v345_v10, %v344_v53  ;;  %v5552_v10 = vpop.f32.mrf.mxu0 }
 0x1b8   : > { %3060 = vmatpush.bf16.msrb.mxu2 %v4191_v7  ;;  %v4181_v7 = vld [vmem:[%s5493_s5 + $0x58] sm:$0xff]  ;;  %6906 = vst [vmem:[#allocation64_spill] sm:$0xff] %v5552_v10 }
 0x1b9   : > { %v1349_v62 = vpop.xlane.xlu1 %1348  ;;  %2883 = vmatpush.bf16.msrb.mxu0 %v4174_v50  ;;  %2972 = vmatpush.bf16.msrb.mxu1 %v4182_v33  ;;  %v4180_v33 = vld [vmem:[%s5493_s5 + $0x50] sm:$0xff]  ;;  %v5558_v50 = vpop.f32.mrf.mxu1 }
 0x1ba   : > { %v5538_v46 = vmax.f32 %v5531_v18, %v1349_v62  ;;  %v5556_v14 = vpop.eup %4335  ;;  %6908 = vst [vmem:[#allocation66_spill] sm:$0xff] %v5558_v50  ;;  %3151 = vmatpush.bf16.msrb.mxu3 %v4197_v51  ;;  %v4188_v62 = vld [vmem:[%s5493_s5 + $0x90] sm:$0xff]  ;;  %v4195_v51 = vld [vmem:[%s5493_s5 + $0xc8] sm:$0xff] }
 0x1bb   : > { %6907 = vst [vmem:[#allocation65_spill] sm:$0xff] %v5556_v14 }
 0x1bc   : > { %6904 = vst [vmem:[#allocation62_spill] sm:$0xff] %v5538_v46  ;;  %3061 = vmatpush.bf16.msrb.mxu2 %v4190_v29  ;;  %v4196_v29 = vld [vmem:[%s5493_s5 + $0xd0] sm:$0xff] }
 0x1bd   : > { %3313 = vst.msk [vmem:[#allocation2 + $0x68] sm:$0xff] %vm362_vm1, %v5538_v46  ;;  %2884 = vmatpush.bf16.msrb.mxu0 %v4173_v4  ;;  %2973 = vmatpush.bf16.msrb.mxu1 %v4181_v7  ;;  %v4179_v4 = vld [vmem:[%s5493_s5 + $0x48] sm:$0xff]  ;;  %v5570_v7 = vpop.f32.mrf.mxu2 }
 0x1be   : > { %6910 = vst [vmem:[#allocation68_spill] sm:$0xff] %v5570_v7  ;;  %3152 = vmatpush.bf16.msrb.mxu3 %v4196_v29 }
 0x1c0   : > { %3062 = vmatpush.bf16.msrb.mxu2 %v4189_v43  ;;  %v4187_v43 = vld [vmem:[%s5493_s5 + $0x88] sm:$0xff] }
 0x1c1   : > { %v1354_v52 = vpop.xlane.xlu2 %1353  ;;  %2885 = vmatpush.bf16.msrb.mxu0 %v4172_v11  ;;  %2974 = vmatpush.bf16.msrb.mxu1 %v4180_v33  ;;  %v5592_v42 = vpop.f32.mrf.mxu1 }
 0x1c2   : > { %3957 = vmatmul.msk.bf16.gmra.mxu0 %vm427_vm0, %v361_v59  ;;  %3973 = vmatmul.msk.bf16.gmra.mxu1 %vm427_vm0, %v361_v59  ;;  %v5563_v53 = vmax.f32 %v5548_v32, %v1354_v52  ;;  %v5574_v52 = vld [vmem:[#allocation2 + $0x78] sm:$0xff]  ;;  %v5576_v32 = vpop.f32.mrf.mxu3  ;;  %6914 = vst [vmem:[#allocation72_spill] sm:$0xff] %v5592_v42 }
 0x1c3   : > { %3989 = vmatmul.msk.bf16.gmra.mxu2 %vm427_vm0, %v361_v59  ;;  %4005 = vmatmul.msk.bf16.gmra.mxu3 %vm427_vm0, %v361_v59  ;;  %v4171_v59 = vld [vmem:[%s5493_s5 + $0x8] sm:$0xff]  ;;  %6911 = vst [vmem:[#allocation69_spill] sm:$0xff] %v5574_v52 }
 0x1c4   : > { %6909 = vst [vmem:[#allocation67_spill] sm:$0xff] %v5563_v53  ;;  %2449 = vperm.xlu1 %4326, %v5556_v14   ;;  %3063 = vmatpush.bf16.msrb.mxu2 %v4188_v62  ;;  %v4170_v14 = vld [vmem:[%s5493_s5] sm:$0xff] }
 0x1c5   : > { %3314 = vst.msk [vmem:[#allocation2 + $0x70] sm:$0xff] %vm362_vm1, %v5563_v53  ;;  %2886 = vmatpush.bf16.msrb.mxu0 %v4171_v59  ;;  %2975 = vmatpush.bf16.msrb.mxu1 %v4179_v4  ;;  %v4194_v53 = vld [vmem:[%s5493_s5 + $0xc0] sm:$0xff]  ;;  %v5590_v4 = vpop.f32.mrf.mxu0 }
 0x1c6   : > { %6912 = vst [vmem:[#allocation70_spill] sm:$0xff] %v5576_v32  ;;  %3153 = vmatpush.bf16.msrb.mxu3 %v4195_v51 }
 0x1c7   : > { %6913 = vst [vmem:[#allocation71_spill] sm:$0xff] %v5590_v4 }
 0x1c8   : > { %3064 = vmatpush.bf16.msrb.mxu2 %v4187_v43 }
 0x1c9   : > { %v1571_v11 = vpop.permute.xlu2 %1570  ;;  %v1359_v33 = vpop.xlane.xlu0 %1358  ;;  %2887 = vmatpush.bf16.msrb.mxu0 %v4170_v14  ;;  %2976 = vmatpush.bf16.msrb.mxu1 %v4178_v38 }
 0x1ca   : > { %v1728_v18 = vsub.f32 %v4933_v54, %v1571_v11  ;;  %v1729_v62 = vsub.f32 %v4935_v55, %v1571_v11  ;;  %v1730_v29 = vsub.f32 %v4943_v57, %v1571_v11  ;;  %v1731_v46 = vsub.f32 %v4945_v58, %v1571_v11  ;;  %3154 = vmatpush.bf16.msrb.mxu3 %v4194_v53  ;;  %v5598_v58 = vld [vmem:[#allocation2 + $0x80] sm:$0xff]  ;;  %v5600_v11 = vpop.f32.mrf.mxu2  ;;  %v5607_v14 = vpop.f32.mrf.mxu3 }
 0x1cb   : > { %v5588_v59 = vmax.f32 %v5574_v52, %v1359_v33  ;;  %v1385_v55 = vmax.f32 %v5590_v4, %v5592_v42  ;;  %6915 = vst [vmem:[#allocation73_spill] sm:$0xff] %v5600_v11 }
 0x1cc   : > { %1595 = vperm.xlu1 %4326, %v5347_v17   ;;  %v1856_v43 = vmul.f32 1.442695, %v1728_v18  ;;  %v1858_v51 = vmul.f32 1.442695, %v1729_v62  ;;  %v1860_v54 = vmul.f32 1.442695, %v1730_v29  ;;  %3065 = vmatpush.bf16.msrb.mxu2 %v4186_v24 }
 0x1cd   : > { %3315 = vst.msk [vmem:[#allocation2 + $0x78] sm:$0xff] %vm362_vm1, %v5588_v59  ;;  %v1862_v57 = vmul.f32 1.442695, %v1731_v46  ;;  %v1386_v24 = vmax.f32 %v1385_v55, %v5600_v11  ;;  %v1380_v46 = vmax.f32 %v5552_v10, %v5558_v50 }
 0x1ce   : > { %4337 = vpow2.f32 %v1856_v43  ;;  %6916 = vst [vmem:[#allocation74_spill] sm:$0xff] %v5607_v14 }
 0x1cf   : > { %4339 = vpow2.f32 %v1858_v51  ;;  %v1387_v62 = vmax.f32 %v1386_v24, %v5607_v14  ;;  %v1381_v51 = vmax.f32 %v1380_v46, %v5570_v7 }
 0x1d0   : > { %4341 = vpow2.f32 %v1860_v54 }
 0x1d1   : > { %v1364_v18 = vpop.xlane.xlu1 %1363  ;;  %4343 = vpow2.f32 %v1862_v57  ;;  %v1382_v11 = vmax.f32 %v1381_v51, %v5576_v32 }
 0x1d2   : > { %v5603_v38 = vmax.f32 %v5598_v58, %v1364_v18 }
 0x1d4   : > { %1605 = vperm.xlu1 %4326, %v5411_v6   ;;  %v4338_v53 = vpop.eup %4337  ;;  %3316 = vst.msk [vmem:[#allocation2 + $0x80] sm:$0xff] %vm362_vm1, %v5603_v38 }
 0x1d5   : > { %v4340_v33 = vpop.eup %4339 }
 0x1d6   : > { %v2176_v29 = vadd.f32 %v4340_v33, %v4338_v53  ;;  %v4342_v43 = vpop.eup %4341 }
 0x1d7   : > { %v4344_v18 = vpop.eup %4343 }
 0x1d8   : > { %v2177_v54 = vadd.f32 %v4342_v43, %v2176_v29  ;;  %v1479_v29 = vsub.f32 %v5397_v9, %v5411_v6  ;;  %v5629_v9 = vpop.f32.mrf.mxu0  ;;  %v5631_v6 = vpop.f32.mrf.mxu1 }
 0x1d9   : > { %6917 = vst [vmem:[#allocation75_spill] sm:$0xff] %v5629_v9 }
 0x1da   : > { %v5615_v55 = vadd.f32 %v4344_v18, %v2177_v54  ;;  %6918 = vst [vmem:[#allocation76_spill] sm:$0xff] %v5631_v6 }
 0x1dc   : > { %v1576_v57 = vpop.permute.xlu0 %1575 }
 0x1dd   : > { %v1732_v42 = vsub.f32 %v4948_v60, %v1576_v57  ;;  %v1733_v4 = vsub.f32 %v4950_v61, %v1576_v57  ;;  %v1734_v50 = vsub.f32 %v4955_v0, %v1576_v57  ;;  %v1735_v24 = vsub.f32 %v4957_v1, %v1576_v57 }
 0x1de   : > { %1388 = vmax.xlane.f32.xlu0 %v1387_v62 }
 0x1df   : > { %v1864_v14 = vmul.f32 1.442695, %v1732_v42  ;;  %v1866_v10 = vmul.f32 1.442695, %v1733_v4  ;;  %v1868_v52 = vmul.f32 1.442695, %v1734_v50 }
 0x1e0   : > { %v1870_v46 = vmul.f32 1.442695, %v1735_v24  ;;  %1383 = vmax.xlane.f32.xlu2 %v1382_v11  ;;  %v1518_v4 = vmul.f32 1.442695, %v1479_v29  ;;  %v5640_v24 = vpop.f32.mrf.mxu2 }
 0x1e1   : > { %4345 = vpow2.f32 %v1864_v14  ;;  %v1477_v14 = vsub.f32 %v5336_v39, %v5347_v17  ;;  %6919 = vst [vmem:[#allocation77_spill] sm:$0xff] %v5640_v24 }
 0x1e2   : > { %4347 = vpow2.f32 %v1866_v10 }
 0x1e3   : > { %4349 = vpow2.f32 %v1868_v52 }
 0x1e4   : > { %4351 = vpow2.f32 %v1870_v46 }
 0x1e5   : > { %4353 = vpow2.f32 %v1518_v4 }
 0x1e7   : > { %v4346_v62 = vpop.eup %4345 }
 0x1e8   : > { %v4348_v60 = vpop.eup %4347  ;;  %v2624_v51 = vpack.c.bf16 %v4346_v62, %v4338_v53  ;;  %v1390_v53 = vmax.f32 %v5629_v9, %v5631_v6 }
 0x1e9   : > { %v4350_v61 = vpop.eup %4349  ;;  %v5624_v54 = vpop.permute.xlu1 %2434  ;;  %v2625_v0 = vpack.c.bf16 %v4348_v60, %v4340_v33  ;;  %v2181_v1 = vadd.f32 %v4348_v60, %v4346_v62  ;;  %v1514_v62 = vmul.f32 1.442695, %v1477_v14 }
 0x1ea   : > { %v4352_v42 = vpop.eup %4351  ;;  %2888 = vmatmul.bf16.vlgmr.msrb.gmra.mxu0 %v2624_v51  ;;  %v2626_v50 = vpack.c.bf16 %v4350_v61, %v4342_v43  ;;  %v1391_v29 = vmax.f32 %v1390_v53, %v5640_v24 }
 0x1eb   : > { %2977 = vmatmul.bf16.vlgmr.msrb.gmra.mxu1 %v2625_v0  ;;  %v2627_v11 = vpack.c.bf16 %v4352_v42, %v4344_v18  ;;  %v2182_v10 = vadd.f32 %v4350_v61, %v2181_v1  ;;  %v5644_v39 = vpop.eup %4353 }
 0x1ec   : > { %3066 = vmatmul.bf16.vlgmr.msrb.gmra.mxu2 %v2626_v50  ;;  %6920 = vst [vmem:[#allocation78_spill] sm:$0xff] %v5644_v39  ;;  %v5662_v50 = vld [vmem:[#allocation2 + $0x88] sm:$0xff] }
 0x1ed   : > { %3155 = vmatmul.bf16.vlgmr.msrb.gmra.mxu3 %v2627_v11  ;;  %v5626_v52 = vadd.f32 %v4352_v42, %v2182_v10 }
 0x1f1   : > { %v1581_v33 = vpop.permute.xlu1 %1580 }
 0x1f2   : > { %1610 = vperm.xlu0 %4325, %v5437_v8   ;;  %v1736_v43 = vsub.f32 %v4959_v2, %v1581_v33  ;;  %v1737_v18 = vsub.f32 %v4961_v3, %v1581_v33  ;;  %v1738_v57 = vsub.f32 %v4968_v12, %v1581_v33  ;;  %v1739_v46 = vsub.f32 %v4970_v13, %v1581_v33  ;;  %v5647_v2 = vpop.f32.mrf.mxu3  ;;  %v5675_v33 = vld [vmem:[#allocation2 + $0x90] sm:$0xff] }
 0x1f3   : > { %6921 = vst [vmem:[#allocation79_spill] sm:$0xff] %v5647_v2  ;;  %v1392_v12 = vmax.f32 %v1391_v29, %v5647_v2 }
 0x1f4   : > { %v1872_v60 = vmul.f32 1.442695, %v1736_v43  ;;  %v1874_v51 = vmul.f32 1.442695, %v1737_v18  ;;  %v1876_v17 = vmul.f32 1.442695, %v1738_v57  ;;  %v1478_v43 = vsub.f32 %v5366_v47, %v5377_v56 }
 0x1f5   : > { %v1878_v3 = vmul.f32 1.442695, %v1739_v46  ;;  %v5682_v46 = vpop.f32.mrf.mxu0 }
 0x1f6   : > { %4355 = vpow2.f32 %v1872_v60  ;;  %6923 = vst [vmem:[#allocation81_spill] sm:$0xff] %v5682_v46  ;;  %v1516_v29 = vmul.f32 1.442695, %v1478_v43 }
 0x1f7   : > { %4357 = vpow2.f32 %v1874_v51  ;;  %v5690_v51 = vpop.f32.mrf.mxu2 }
 0x1f8   : > { %4359 = vpow2.f32 %v1514_v62  ;;  %1600 = vperm.xlu2 %4324, %v5377_v56   ;;  %v5684_v62 = vpop.f32.mrf.mxu1  ;;  %6925 = vst [vmem:[#allocation83_spill] sm:$0xff] %v5690_v51 }
 0x1f9   : > { %4361 = vpow2.f32 %v1876_v17  ;;  %6924 = vst [vmem:[#allocation82_spill] sm:$0xff] %v5684_v62 }
 0x1fa   : > { %2469 = vperm.xlu0 %4325, %v5644_v39   ;;  %4363 = vpow2.f32 %v1878_v3  ;;  %v5692_v17 = vpop.f32.mrf.mxu3 }
 0x1fb   : > { %4365 = vpow2.f32 %v1516_v29  ;;  %6926 = vst [vmem:[#allocation84_spill] sm:$0xff] %v5692_v17 }
 0x1fc   : > { %v5651_v13 = vpop.eup %4355 }
 0x1fd   : > { %v5653_v61 = vpop.eup %4357  ;;  %v5694_v56 = vpop.f32.mrf.mxu0 }
 0x1fe   : > { %1393 = vmax.xlane.f32.xlu1 %v1392_v12  ;;  %v5655_v0 = vpop.eup %4359  ;;  %v2186_v1 = vadd.f32 %v5653_v61, %v5651_v13  ;;  %6927 = vst [vmem:[#allocation85_spill] sm:$0xff] %v5694_v56 }
 0x1ff   : > { %6922 = vst [vmem:[#allocation80_spill] sm:$0xff] %v5655_v0  ;;  %v5659_v42 = vpop.eup %4361  ;;  %v5707_v6 = vpop.f32.mrf.mxu2 }
 0x200   : > { %2459 = vperm.xlu2 %4324, %v5655_v0   ;;  %v2187_v4 = vadd.f32 %v5659_v42, %v2186_v1  ;;  %v5665_v11 = vpop.eup %4363  ;;  %v5696_v47 = vpop.f32.mrf.mxu1  ;;  %6930 = vst [vmem:[#allocation88_spill] sm:$0xff] %v5707_v6 }
 0x201   : > { %6928 = vst [vmem:[#allocation86_spill] sm:$0xff] %v5696_v47  ;;  %v5702_v43 = vpop.eup %4365 }
 0x202   : > { %v1369_v10 = vpop.xlane.xlu2 %1368  ;;  %v5668_v14 = vadd.f32 %v5665_v11, %v2187_v4  ;;  %6929 = vst [vmem:[#allocation87_spill] sm:$0xff] %v5702_v43 }
 0x203   : > { %v5671_v53 = vmax.f32 %v5662_v50, %v1369_v10 }
 0x205   : > { %3317 = vst.msk [vmem:[#allocation2 + $0x88] sm:$0xff] %vm362_vm1, %v5671_v53 }
 0x20a   : > { %v5686_v60 = vpop.permute.xlu2 %2439 }
 0x20b   : > { %v1374_v18 = vpop.xlane.xlu0 %1373 }
 0x20c   : > { %v5680_v57 = vmax.f32 %v5675_v33, %v1374_v18  ;;  %v1400_v18 = vmax.f32 %v5694_v56, %v5696_v47 }
 0x20e   : > { %3318 = vst.msk [vmem:[#allocation2 + $0x90] sm:$0xff] %vm362_vm1, %v5680_v57 }
 0x212   : > { %v1586_v3 = vpop.permute.xlu2 %1585 }
 0x213   : > { %v1740_v12 = vsub.f32 %v4973_v15, %v1586_v3  ;;  %v1741_v1 = vsub.f32 %v4975_v16, %v1586_v3  ;;  %v1742_v4 = vsub.f32 %v4984_v20, %v1586_v3  ;;  %v1743_v10 = vsub.f32 %v4986_v21, %v1586_v3  ;;  %v5710_v16 = vpop.f32.mrf.mxu3  ;;  %v5712_v21 = vld [vmem:[#allocation2 + $0x98] sm:$0xff] }
 0x214   : > { %v1401_v15 = vmax.f32 %v1400_v18, %v5707_v6  ;;  %6931 = vst [vmem:[#allocation89_spill] sm:$0xff] %v5710_v16 }
 0x215   : > { %v1880_v29 = vmul.f32 1.442695, %v1740_v12  ;;  %v1882_v2 = vmul.f32 1.442695, %v1741_v1  ;;  %v1884_v24 = vmul.f32 1.442695, %v1742_v4 }
 0x216   : > { %v1886_v9 = vmul.f32 1.442695, %v1743_v10 }
 0x217   : > { %2464 = vperm.xlu1 %4326, %v5702_v43   ;;  %4367 = vpow2.f32 %v1880_v29 }
 0x218   : > { %4369 = vpow2.f32 %v1882_v2  ;;  %v1402_v2 = vmax.f32 %v1401_v15, %v5710_v16 }
 0x219   : > { %4371 = vpow2.f32 %v1884_v24 }
 0x21a   : > { %4373 = vpow2.f32 %v1886_v9  ;;  %v1591_v20 = vpop.permute.xlu2 %1590 }
 0x21b   : > { %v1744_v3 = vsub.f32 %v4988_v22, %v1591_v20  ;;  %v1745_v12 = vsub.f32 %v4990_v23, %v1591_v20  ;;  %v1746_v1 = vsub.f32 %v4996_v27, %v1591_v20  ;;  %v1747_v4 = vsub.f32 %v4998_v28, %v1591_v20 }
 0x21c   : > { %v1379_v10 = vpop.xlane.xlu1 %1378  ;;  %v1395_v27 = vmax.f32 %v5682_v46, %v5684_v62  ;;  %v6959_v46 = vld [vmem:[#allocation5_spill] sm:$0xff] }
 0x21d   : > { %v4368_v29 = vpop.eup %4367  ;;  %v1888_v18 = vmul.f32 1.442695, %v1744_v3  ;;  %v1890_v24 = vmul.f32 1.442695, %v1745_v12  ;;  %v5720_v6 = vmax.f32 %v5712_v21, %v1379_v10  ;;  %v1892_v47 = vmul.f32 1.442695, %v1746_v1 }
 0x21e   : > { %v4370_v9 = vpop.eup %4369  ;;  %v2628_v22 = vpack.c.bf16 %v4368_v29, %v5651_v13  ;;  %v1894_v3 = vmul.f32 1.442695, %v1747_v4  ;;  %v1396_v10 = vmax.f32 %v1395_v27, %v5690_v51 }
 0x21f   : > { %1620 = vperm.xlu1 %4326, %v5471_v25   ;;  %v4372_v23 = vpop.eup %4371  ;;  %4375 = vpow2.f32 %v1888_v18  ;;  %3319 = vst.msk [vmem:[#allocation2 + $0x98] sm:$0xff] %vm362_vm1, %v5720_v6  ;;  %v2629_v28 = vpack.c.bf16 %v4370_v9, %v5653_v61  ;;  %v2191_v15 = vadd.f32 %v4370_v9, %v4368_v29  ;;  %v5732_v18 = vpop.f32.mrf.mxu0 }
 0x220   : > { %v4374_v20 = vpop.eup %4373  ;;  %4377 = vpow2.f32 %v1890_v24  ;;  %2893 = vmatmul.bf16.gmra.mxu0 %v2628_v22  ;;  %v2630_v12 = vpack.c.bf16 %v4372_v23, %v5659_v42  ;;  %6932 = vst [vmem:[#allocation90_spill] sm:$0xff] %v5732_v18  ;;  %v5734_v61 = vpop.f32.mrf.mxu1 }
 0x221   : > { %2982 = vmatmul.bf16.gmra.mxu1 %v2629_v28  ;;  %v2631_v13 = vpack.c.bf16 %v4374_v20, %v5665_v11  ;;  %v2192_v1 = vadd.f32 %v4372_v23, %v2191_v15  ;;  %4379 = vpow2.f32 %v1892_v47  ;;  %6933 = vst [vmem:[#allocation91_spill] sm:$0xff] %v5734_v61  ;;  %v5747_v24 = vpop.f32.mrf.mxu2  ;;  %v5752_v23 = vpop.f32.mrf.mxu3  ;;  %v1482_v28 = vsub.f32 %v5464_v19, %v5471_v25 }
 0x222   : > { %3071 = vmatmul.bf16.gmra.mxu2 %v2630_v12  ;;  %4381 = vpow2.f32 %v1894_v3  ;;  %6934 = vst [vmem:[#allocation92_spill] sm:$0xff] %v5747_v24  ;;  %v1480_v19 = vsub.f32 %v5427_v5, %v5437_v8 }
 0x223   : > { %3160 = vmatmul.bf16.gmra.mxu3 %v2631_v13  ;;  %v5736_v29 = vadd.f32 %v4374_v20, %v2192_v1  ;;  %6935 = vst [vmem:[#allocation93_spill] sm:$0xff] %v5752_v23  ;;  %v1524_v3 = vmul.f32 1.442695, %v1482_v28  ;;  %v1405_v28 = vmax.f32 %v5732_v18, %v5734_v61 }
 0x224   : > { %1403 = vmax.xlane.f32.xlu0 %v1402_v2  ;;  %v1397_v2 = vmax.f32 %v1396_v10, %v5692_v17 }
 0x225   : > { %v5738_v4 = vpop.eup %4375  ;;  %4383 = vpow2.f32 %v1524_v3 }
 0x226   : > { %v5740_v42 = vpop.eup %4377 }
 0x227   : > { %v2196_v11 = vadd.f32 %v5740_v42, %v5738_v4  ;;  %v5745_v47 = vpop.eup %4379  ;;  %v5759_v15 = vpop.f32.mrf.mxu0 }
 0x228   : > { %v5750_v22 = vpop.eup %4381  ;;  %6936 = vst [vmem:[#allocation94_spill] sm:$0xff] %v5759_v15  ;;  %v5761_v20 = vpop.f32.mrf.mxu1 }
 0x229   : > { %1398 = vmax.xlane.f32.xlu2 %v1397_v2  ;;  %v2197_v9 = vadd.f32 %v5745_v47, %v2196_v11  ;;  %6937 = vst [vmem:[#allocation95_spill] sm:$0xff] %v5761_v20  ;;  %v5763_v12 = vpop.f32.mrf.mxu2  ;;  %v5768_v1 = vpop.f32.mrf.mxu3 }
 0x22a   : > { %6938 = vst [vmem:[#allocation96_spill] sm:$0xff] %v5763_v12  ;;  %v5778_v11 = vpop.permute.xlu0 %2444 }
 0x22b   : > { %v5755_v27 = vadd.f32 %v5750_v22, %v2197_v9  ;;  %6939 = vst [vmem:[#allocation97_spill] sm:$0xff] %v5768_v1  ;;  %v5776_v25 = vpop.eup %4383  ;;  %v1520_v9 = vmul.f32 1.442695, %v1480_v19 }
 0x22c   : > { %6942 = vst [vmem:[#allocation100_spill] sm:$0xff] %v5776_v25 }
 0x22d   : > { %4385 = vpow2.f32 %v1520_v9 }
 0x22f   : > { %v5770_v10 = vpop.f32.mrf.mxu0 }
 0x230   : > { %6940 = vst [vmem:[#allocation98_spill] sm:$0xff] %v5770_v10  ;;  %v5772_v2 = vpop.f32.mrf.mxu1 }
 0x231   : > { %6941 = vst [vmem:[#allocation99_spill] sm:$0xff] %v5772_v2  ;;  %v5787_v5 = vpop.f32.mrf.mxu2  ;;  %v5789_v8 = vpop.f32.mrf.mxu3 }
 0x232   : > { %6943 = vst [vmem:[#allocation101_spill] sm:$0xff] %v5787_v5 }
 0x233   : > { %6944 = vst [vmem:[#allocation102_spill] sm:$0xff] %v5789_v8 }
 0x236   : > { %v5765_v13 = vpop.permute.xlu1 %2449 }
 0x238   : > { %1625 = vperm.xlu0 %4325, %v5496_v40   ;;  %v5792_v18 = vpop.f32.mrf.mxu1 }
 0x239   : > { %6945 = vst [vmem:[#allocation103_spill] sm:$0xff] %v5792_v18 }
 0x23e   : > { %v1596_v16 = vpop.permute.xlu1 %1595 }
 0x23f   : > { %v1748_v3 = vsub.f32 %v5001_v30, %v1596_v16  ;;  %v1749_v56 = vsub.f32 %v5003_v31, %v1596_v16  ;;  %v1750_v43 = vsub.f32 %v5008_v34, %v1596_v16  ;;  %v1751_v17 = vsub.f32 %v5010_v35, %v1596_v16  ;;  %v5795_v31 = vpop.f32.mrf.mxu0  ;;  %v5797_v35 = vpop.permute.xlu0 %2454 }
 0x240   : > { %2484 = vperm.xlu0 %4325, %v5776_v25   ;;  %v1406_v30 = vmax.f32 %v1405_v28, %v5747_v24  ;;  %6946 = vst [vmem:[#allocation104_spill] sm:$0xff] %v5795_v31  ;;  %v5803_v16 = vpop.eup %4385  ;;  %v5809_v25 = vpop.f32.mrf.mxu3 }
 0x241   : > { %v1896_v51 = vmul.f32 1.442695, %v1748_v3  ;;  %v1898_v19 = vmul.f32 1.442695, %v1749_v56  ;;  %v1900_v62 = vmul.f32 1.442695, %v1750_v43  ;;  %1615 = vperm.xlu2 %4324, %v5447_v63  }
 0x242   : > { %v1902_v61 = vmul.f32 1.442695, %v1751_v17  ;;  %v1407_v17 = vmax.f32 %v1406_v30, %v5752_v23  ;;  %6947 = vst [vmem:[#allocation105_spill] sm:$0xff] %v5803_v16 }
 0x243   : > { %4387 = vpow2.f32 %v1896_v51  ;;  %6949 = vst [vmem:[#allocation107_spill] sm:$0xff] %v5809_v25 }
 0x244   : > { %4389 = vpow2.f32 %v1898_v19 }
 0x245   : > { %4391 = vpow2.f32 %v1900_v62  ;;  %v5806_v62 = vpop.f32.mrf.mxu2 }
 0x246   : > { %4393 = vpow2.f32 %v1902_v61  ;;  %v1606_v34 = vpop.permute.xlu1 %1605  ;;  %6948 = vst [vmem:[#allocation106_spill] sm:$0xff] %v5806_v62 }
 0x247   : > { %v1756_v56 = vsub.f32 %v5025_v44, %v1606_v34  ;;  %v1757_v43 = vsub.f32 %v5027_v45, %v1606_v34  ;;  %v1758_v51 = vsub.f32 %v5032_v48, %v1606_v34  ;;  %v1759_v9 = vsub.f32 %v5034_v49, %v1606_v34 }
 0x249   : > { %v4388_v28 = vpop.eup %4387  ;;  %v1912_v3 = vmul.f32 1.442695, %v1756_v56  ;;  %v1914_v19 = vmul.f32 1.442695, %v1757_v43  ;;  %1408 = vmax.xlane.f32.xlu1 %v1407_v17  ;;  %v1916_v24 = vmul.f32 1.442695, %v1758_v51  ;;  %2474 = vperm.xlu2 %4324, %v5803_v16   ;;  %v5815_v51 = vpop.f32.mrf.mxu0 }
 0x24a   : > { %v4390_v61 = vpop.eup %4389  ;;  %v2632_v44 = vpack.c.bf16 %v4388_v28, %v5738_v4  ;;  %v1918_v34 = vmul.f32 1.442695, %v1759_v9  ;;  %v5817_v4 = vpop.f32.mrf.mxu1  ;;  %v5819_v17 = vld [vmem:[#allocation2 + $0xa8] sm:$0xff] }
 0x24b   : > { %v4392_v45 = vpop.eup %4391  ;;  %4395 = vpow2.f32 %v1912_v3  ;;  %v2633_v48 = vpack.c.bf16 %v4390_v61, %v5740_v42  ;;  %v2201_v30 = vadd.f32 %v4390_v61, %v4388_v28  ;;  %6950 = vst [vmem:[#allocation108_spill] sm:$0xff] %v5819_v17  ;;  %v5830_v61 = vld [vmem:[#allocation2 + $0xa0] sm:$0xff] }
 0x24c   : > { %v4394_v49 = vpop.eup %4393  ;;  %4397 = vpow2.f32 %v1914_v19  ;;  %2898 = vmatmul.bf16.gmra.mxu0 %v2632_v44  ;;  %v2634_v56 = vpack.c.bf16 %v4392_v45, %v5745_v47  ;;  %6953 = vst [vmem:[#allocation111_spill] sm:$0xff] %v5830_v61 }
 0x24d   : > { %2987 = vmatmul.bf16.gmra.mxu1 %v2633_v48  ;;  %v2635_v43 = vpack.c.bf16 %v4394_v49, %v5750_v22  ;;  %v2202_v3 = vadd.f32 %v4392_v45, %v2201_v30  ;;  %4399 = vpow2.f32 %v1916_v24  ;;  %v1481_v22 = vsub.f32 %v5442_v26, %v5447_v63  ;;  %v5832_v24 = vpop.f32.mrf.mxu2  ;;  %v5834_v48 = vpop.f32.mrf.mxu3 }
 0x24e   : > { %3076 = vmatmul.bf16.gmra.mxu2 %v2634_v56  ;;  %4401 = vpow2.f32 %v1918_v34  ;;  %6954 = vst [vmem:[#allocation112_spill] sm:$0xff] %v5832_v24  ;;  %v1415_v63 = vmax.f32 %v5770_v10, %v5772_v2 }
 0x24f   : > { %3165 = vmatmul.bf16.gmra.mxu3 %v2635_v43  ;;  %v5821_v28 = vadd.f32 %v4394_v49, %v2202_v3  ;;  %6955 = vst [vmem:[#allocation113_spill] sm:$0xff] %v5834_v48  ;;  %v1522_v43 = vmul.f32 1.442695, %v1481_v22 }
 0x251   : > { %v1389_v42 = vpop.xlane.xlu0 %1388  ;;  %6951 = vst [vmem:[#allocation109_spill] sm:$0xff] %v5821_v28  ;;  %v4396_v47 = vpop.eup %4395  ;;  %4403 = vpow2.f32 %v1522_v43  ;;  %v1416_v43 = vmax.f32 %v1415_v63, %v5787_v5 }
 0x252   : > { %v5824_v9 = vmax.f32 %v5819_v17, %v1389_v42  ;;  %v4398_v19 = vpop.eup %4397  ;;  %v5839_v3 = vpop.f32.mrf.mxu0 }
 0x253   : > { %v2211_v44 = vadd.f32 %v4398_v19, %v4396_v47  ;;  %v4400_v45 = vpop.eup %4399  ;;  %v1384_v30 = vpop.xlane.xlu2 %1383  ;;  %6956 = vst [vmem:[#allocation114_spill] sm:$0xff] %v5839_v3 }
 0x254   : > { %6952 = vst [vmem:[#allocation110_spill] sm:$0xff] %v5824_v9  ;;  %v4402_v34 = vpop.eup %4401  ;;  %v5837_v56 = vmax.f32 %v5830_v61, %v1384_v30  ;;  %v5841_v42 = vpop.f32.mrf.mxu1 }
 0x255   : > { %3321 = vst.msk [vmem:[#allocation2 + $0xa8] sm:$0xff] %vm362_vm1, %v5824_v9  ;;  %v2212_v49 = vadd.f32 %v4400_v45, %v2211_v44  ;;  %v5849_v44 = vpop.f32.mrf.mxu2 }
 0x256   : > { %6957 = vst [vmem:[#allocation115_spill] sm:$0xff] %v5841_v42 }
 0x257   : > { %v5843_v26 = vadd.f32 %v4402_v34, %v2212_v49  ;;  %3320 = vst.msk [vmem:[#allocation2 + $0xa0] sm:$0xff] %vm362_vm1, %v5837_v56  ;;  %v5855_v49 = vpop.f32.mrf.mxu3  ;;  %v5858_v17 = vpop.eup %4403 }
 0x258   : > { %6958 = vst [vmem:[#allocation116_spill] sm:$0xff] %v5849_v44 }
 0x259   : > { %6960 = vst [vmem:[#allocation5_spill] sm:$0xff] %v5855_v49 }
 0x25a   : > { %6961 = vst [vmem:[#allocation117_spill] sm:$0xff] %v5858_v17  ;;  %v5860_v10 = vpop.f32.mrf.mxu0 }
 0x25b   : > { %v1601_v23 = vpop.permute.xlu2 %1600  ;;  %6962 = vst [vmem:[#allocation118_spill] sm:$0xff] %v5860_v10 }
 0x25c   : > { %v1752_v30 = vsub.f32 %v5012_v36, %v1601_v23  ;;  %v1753_v22 = vsub.f32 %v5014_v37, %v1601_v23  ;;  %v1754_v16 = vsub.f32 %v5020_v41, %v1601_v23  ;;  %v1755_v0 = vsub.f32 %v6959_v46, %v1601_v23  ;;  %v5862_v28 = vpop.f32.mrf.mxu1 }
 0x25d   : > { %6963 = vst [vmem:[#allocation119_spill] sm:$0xff] %v5862_v28  ;;  %v1417_v36 = vmax.f32 %v1416_v43, %v5789_v8  ;;  %v5866_v37 = vpop.f32.mrf.mxu2  ;;  %v1410_v46 = vmax.f32 %v5759_v15, %v5761_v20 }
 0x25e   : > { %v1904_v32 = vmul.f32 1.442695, %v1752_v30  ;;  %v1906_v7 = vmul.f32 1.442695, %v1753_v22  ;;  %v1908_v39 = vmul.f32 1.442695, %v1754_v16 }
 0x25f   : > { %v1910_v2 = vmul.f32 1.442695, %v1755_v0  ;;  %6964 = vst [vmem:[#allocation120_spill] sm:$0xff] %v5866_v37  ;;  %v5870_v23 = vpop.f32.mrf.mxu3  ;;  %v1411_v8 = vmax.f32 %v1410_v46, %v5763_v12 }
 0x260   : > { %4405 = vpow2.f32 %v1904_v32  ;;  %6965 = vst [vmem:[#allocation121_spill] sm:$0xff] %v5870_v23  ;;  %v6966_v32 = vld [vmem:[#allocation62_spill] sm:$0xff] }
 0x261   : > { %4407 = vpow2.f32 %v1906_v7 }
 0x262   : > { %2479 = vperm.xlu1 %4326, %v5858_v17   ;;  %4409 = vpow2.f32 %v1908_v39 }
 0x263   : > { %4411 = vpow2.f32 %v1910_v2 }
 0x266   : > { %v4406_v41 = vpop.eup %4405 }
 0x267   : > { %v4408_v0 = vpop.eup %4407  ;;  %v2636_v16 = vpack.c.bf16 %v4396_v47, %v4406_v41  ;;  %v2889_v22 = vpop.f32.mrf.mxu0  ;;  %v5876_v47 = vld [vmem:[#allocation2 + $0xb0] sm:$0xff] }
 0x268   : > { %v4410_v63 = vpop.eup %4409  ;;  %v2637_v30 = vpack.c.bf16 %v4398_v19, %v4408_v0  ;;  %v2206_v7 = vadd.f32 %v4408_v0, %v4406_v41  ;;  %v2978_v43 = vpop.f32.mrf.mxu1  ;;  %v1412_v19 = vmax.f32 %v1411_v8, %v5768_v1  ;;  %v2400_v41 = vld [vmem:[#allocation4] sm:$0xff] }
 0x269   : > { %v4412_v39 = vpop.eup %4411  ;;  %2903 = vmatmul.bf16.gmra.mxu0 %v2636_v16  ;;  %v2638_v2 = vpack.c.bf16 %v4400_v45, %v4410_v63  ;;  %v2979_v15 = vadd.f32 %v2978_v43, %v2889_v22 }
 0x26a   : > { %1418 = vmax.xlane.f32.xlu0 %v1417_v36  ;;  %1635 = vperm.xlu1 %4326, %v6966_v32   ;;  %v2639_v5 = vpack.c.bf16 %v4402_v34, %v4412_v39  ;;  %v2207_v20 = vadd.f32 %v4410_v63, %v2206_v7  ;;  %v2592_v34 = vmul.f32 %v5624_v54, %v2400_v41  ;;  %v1611_v41 = vpop.permute.xlu0 %1610 }
 0x26b   : > { %2992 = vmatmul.bf16.gmra.mxu1 %v2637_v30  ;;  %3081 = vmatmul.bf16.gmra.mxu2 %v2638_v2  ;;  %v6969_v2 = vld [vmem:[#allocation67_spill] sm:$0xff] }
 0x26c   : > { %3170 = vmatmul.bf16.gmra.mxu3 %v2639_v5  ;;  %v5874_v36 = vadd.f32 %v4412_v39, %v2207_v20  ;;  %v6968_v20 = vld [vmem:[#allocation61_spill] sm:$0xff]  ;;  %v2401_v39 = vld [vmem:[#allocation4 + $0x8] sm:$0xff] }
 0x26d   : > { %v1485_v5 = vsub.f32 %v6968_v20, %v6966_v32  ;;  %v2593_v54 = vmul.f32 %v5686_v60, %v2401_v39  ;;  %v6974_v39 = vld [vmem:[#allocation15_spill] sm:$0xff] }
 0x26e   : > { %6967 = vst [vmem:[#allocation62_spill] sm:$0xff] %v5874_v36  ;;  %v6990_v36 = vld [vmem:[#allocation13_spill] sm:$0xff] }
 0x26f   : > { %v3067_v0 = vpop.f32.mrf.mxu2  ;;  %v2891_v8 = vpop.f32.mrf.mxu0  ;;  %v1530_v7 = vmul.f32 1.442695, %v1485_v5  ;;  %v6972_v5 = vld [vmem:[#allocation60_spill] sm:$0xff] }
 0x270   : > { %v3068_v9 = vadd.f32 %v3067_v0, %v2979_v15  ;;  %v3156_v16 = vpop.f32.mrf.mxu3  ;;  %v2980_v63 = vpop.f32.mrf.mxu1  ;;  %v6971_v0 = vld [vmem:[#allocation57_spill] sm:$0xff] }
 0x271   : > { %v1394_v17 = vpop.xlane.xlu1 %1393  ;;  %v2981_v15 = vadd.f32 %v2980_v63, %v2891_v8  ;;  %4413 = vpow2.f32 %v1530_v7 }
 0x272   : > { %v5880_v45 = vmax.f32 %v5876_v47, %v1394_v17  ;;  %v3157_v46 = vadd.f32 %v3156_v16, %v3068_v9  ;;  %1413 = vmax.xlane.f32.xlu2 %v1412_v19  ;;  %v1483_v16 = vsub.f32 %v6971_v0, %v5496_v40  ;;  %v5902_v63 = vpop.permute.xlu0 %2469 }
 0x274   : > { %3322 = vst.msk [vmem:[#allocation2 + $0xb0] sm:$0xff] %vm362_vm1, %v5880_v45  ;;  %v3236_v30 = vadd.f32 %v3157_v46, %v2592_v34  ;;  %v1420_v34 = vmax.f32 %v5795_v31, %v5792_v18  ;;  %v1526_v46 = vmul.f32 1.442695, %v1483_v16 }
 0x276   : > { %3268 = vst.msk [vmem:[#allocation4] sm:$0xff] %vm427_vm0, %v3236_v30  ;;  %v1421_v20 = vmax.f32 %v1420_v34, %v5806_v62  ;;  %4415 = vpow2.f32 %v1526_v46 }
 0x277   : > { %v3069_v17 = vpop.f32.mrf.mxu2  ;;  %v5891_v32 = vpop.eup %4413 }
 0x278   : > { %v3070_v22 = vadd.f32 %v3069_v17, %v2981_v15  ;;  %v3158_v43 = vpop.f32.mrf.mxu3  ;;  %6970 = vst [vmem:[#allocation61_spill] sm:$0xff] %v5891_v32  ;;  %v1422_v8 = vmax.f32 %v1421_v20, %v5809_v25  ;;  %v6973_v15 = vld [vmem:[#allocation14_spill] sm:$0xff]  ;;  %v6975_v17 = vld [vmem:[#allocation16_spill] sm:$0xff]  ;;  %v5914_v20 = vpop.permute.xlu2 %2459 }
 0x27a   : > { %v3159_v9 = vadd.f32 %v3158_v43, %v3070_v22 }
 0x27c   : > { %v3237_v19 = vadd.f32 %v3159_v9, %v2593_v54  ;;  %v5908_v43 = vpop.eup %4415  ;;  %v6977_v54 = vld [vmem:[#allocation17_spill] sm:$0xff] }
 0x27d   : > { %6976 = vst [vmem:[#allocation67_spill] sm:$0xff] %v5908_v43 }
 0x27e   : > { %1640 = vperm.xlu0 %4325, %v6969_v2   ;;  %3269 = vst.msk [vmem:[#allocation4 + $0x8] sm:$0xff] %vm427_vm0, %v3237_v19  ;;  %v5911_v19 = vld [vmem:[#allocation2 + $0xc0] sm:$0xff] }
 0x27f   : > { %6978 = vst [vmem:[#allocation57_spill] sm:$0xff] %v5911_v19 }
 0x286   : > { %2499 = vperm.xlu0 %4325, %v5891_v32  }
 0x289   : > { %v5898_v60 = vpop.permute.xlu1 %2464 }
 0x28a   : > { %1630 = vperm.xlu2 %4324, %v6972_v5  }
 0x291   : > { %v1621_v30 = vpop.permute.xlu1 %1620 }
 0x292   : > { %v1768_v7 = vsub.f32 %v6973_v15, %v1621_v30  ;;  %v1769_v40 = vsub.f32 %v6974_v39, %v1621_v30  ;;  %v1770_v22 = vsub.f32 %v6975_v17, %v1621_v30  ;;  %v1771_v9 = vsub.f32 %v6977_v54, %v1621_v30  ;;  %2489 = vperm.xlu2 %4324, %v5908_v43   ;;  %v6980_v30 = vld [vmem:[#allocation59_spill] sm:$0xff] }
 0x294   : > { %v1936_v0 = vmul.f32 1.442695, %v1768_v7  ;;  %v1938_v16 = vmul.f32 1.442695, %v1769_v40  ;;  %1423 = vmax.xlane.f32.xlu1 %v1422_v8  ;;  %v1940_v34 = vmul.f32 1.442695, %v1770_v22  ;;  %v1484_v7 = vsub.f32 %v6980_v30, %v6972_v5 }
 0x295   : > { %v1942_v39 = vmul.f32 1.442695, %v1771_v9  ;;  %v6981_v8 = vld [vmem:[#allocation6_spill] sm:$0xff]  ;;  %v5926_v22 = vld [vmem:[#allocation2 + $0xb8] sm:$0xff]  ;;  %v6985_v30 = vld [vmem:[#allocation9_spill] sm:$0xff] }
 0x296   : > { %4417 = vpow2.f32 %v1936_v0  ;;  %v1760_v17 = vsub.f32 %v6981_v8, %v1611_v41  ;;  %6982 = vst [vmem:[#allocation14_spill] sm:$0xff] %v5926_v22  ;;  %v6983_v0 = vld [vmem:[#allocation7_spill] sm:$0xff]  ;;  %v1528_v5 = vmul.f32 1.442695, %v1484_v7  ;;  %v1763_v8 = vsub.f32 %v6985_v30, %v1611_v41 }
 0x297   : > { %v1404_v46 = vpop.xlane.xlu0 %1403  ;;  %4419 = vpow2.f32 %v1938_v16  ;;  %v6984_v16 = vld [vmem:[#allocation8_spill] sm:$0xff] }
 0x298   : > { %v5917_v15 = vmax.f32 %v5911_v19, %v1404_v46  ;;  %4421 = vpow2.f32 %v1940_v34  ;;  %v1761_v46 = vsub.f32 %v6983_v0, %v1611_v41  ;;  %v1762_v9 = vsub.f32 %v6984_v16, %v1611_v41  ;;  %v6988_v19 = vld [vmem:[#allocation11_spill] sm:$0xff] }
 0x299   : > { %4423 = vpow2.f32 %v1942_v39  ;;  %v1920_v18 = vmul.f32 1.442695, %v1760_v17  ;;  %v1430_v0 = vmax.f32 %v5839_v3, %v5841_v42  ;;  %v1926_v41 = vmul.f32 1.442695, %v1763_v8  ;;  %v2402_v17 = vld [vmem:[#allocation4 + $0x10] sm:$0xff]  ;;  %v6987_v3 = vld [vmem:[#allocation10_spill] sm:$0xff] }
 0x29a   : > { %6979 = vst [vmem:[#allocation60_spill] sm:$0xff] %v5917_v15  ;;  %v1922_v16 = vmul.f32 1.442695, %v1761_v46  ;;  %v1924_v7 = vmul.f32 1.442695, %v1762_v9  ;;  %4425 = vpow2.f32 %v1528_v5  ;;  %v2594_v5 = vmul.f32 %v5778_v11, %v2402_v17 }
 0x29b   : > { %3324 = vst.msk [vmem:[#allocation2 + $0xc0] sm:$0xff] %vm362_vm1, %v5917_v15  ;;  %4427 = vpow2.f32 %v1920_v18 }
 0x29c   : > { %v5923_v40 = vpop.eup %4417  ;;  %v1399_v25 = vpop.xlane.xlu2 %1398  ;;  %4429 = vpow2.f32 %v1922_v16 }
 0x29d   : > { %v5928_v54 = vpop.eup %4419  ;;  %v5937_v39 = vmax.f32 %v5926_v22, %v1399_v25  ;;  %v2894_v1 = vpop.f32.mrf.mxu0  ;;  %4431 = vpow2.f32 %v1924_v7  ;;  %v6989_v22 = vld [vmem:[#allocation12_spill] sm:$0xff] }
 0x29e   : > { %v2226_v34 = vadd.f32 %v5928_v54, %v5923_v40  ;;  %v5934_v62 = vpop.eup %4421  ;;  %v2983_v12 = vpop.f32.mrf.mxu1  ;;  %4433 = vpow2.f32 %v1926_v41 }
 0x29f   : > { %v5941_v43 = vpop.eup %4423  ;;  %3323 = vst.msk [vmem:[#allocation2 + $0xb8] sm:$0xff] %vm362_vm1, %v5937_v39  ;;  %v2984_v30 = vadd.f32 %v2983_v12, %v2894_v1 }
 0x2a0   : > { %v2227_v31 = vadd.f32 %v5934_v62, %v2226_v34  ;;  %v1431_v34 = vmax.f32 %v1430_v0, %v5849_v44 }
 0x2a2   : > { %v5948_v25 = vadd.f32 %v5941_v43, %v2227_v31  ;;  %v1432_v7 = vmax.f32 %v1431_v34, %v5855_v49 }
 0x2a4   : > { %6986 = vst [vmem:[#allocation15_spill] sm:$0xff] %v5948_v25  ;;  %v1616_v42 = vpop.permute.xlu2 %1615  ;;  %v5956_v25 = vpop.eup %4425 }
 0x2a5   : > { %v3072_v46 = vpop.f32.mrf.mxu2  ;;  %v1764_v32 = vsub.f32 %v6987_v3, %v1616_v42  ;;  %v1765_v15 = vsub.f32 %v6988_v19, %v1616_v42  ;;  %v1766_v9 = vsub.f32 %v6989_v22, %v1616_v42  ;;  %v1767_v31 = vsub.f32 %v6990_v36, %v1616_v42  ;;  %6991 = vst [vmem:[#allocation16_spill] sm:$0xff] %v5956_v25  ;;  %v5959_v3 = vpop.eup %4427  ;;  %v6992_v22 = vld [vmem:[#allocation18_spill] sm:$0xff]  ;;  %v6993_v42 = vld [vmem:[#allocation19_spill] sm:$0xff] }
 0x2a6   : > { %v3073_v18 = vadd.f32 %v3072_v46, %v2984_v30  ;;  %v3161_v8 = vpop.f32.mrf.mxu3  ;;  %v5963_v11 = vpop.eup %4429  ;;  %v6994_v30 = vld [vmem:[#allocation20_spill] sm:$0xff] }
 0x2a7   : > { %v1928_v0 = vmul.f32 1.442695, %v1764_v32  ;;  %v1930_v16 = vmul.f32 1.442695, %v1765_v15  ;;  %v1932_v12 = vmul.f32 1.442695, %v1766_v9  ;;  %v2896_v41 = vpop.f32.mrf.mxu0  ;;  %v2985_v17 = vpop.f32.mrf.mxu1 }
 0x2a8   : > { %v3162_v19 = vadd.f32 %v3161_v8, %v3073_v18  ;;  %v1934_v44 = vmul.f32 1.442695, %v1767_v31  ;;  %v6995_v15 = vld [vmem:[#allocation21_spill] sm:$0xff]  ;;  %v5967_v9 = vpop.eup %4431  ;;  %v2986_v8 = vadd.f32 %v2985_v17, %v2896_v41 }
 0x2a9   : > { %4435 = vpow2.f32 %v1928_v0  ;;  %v5970_v31 = vpop.eup %4433 }
 0x2aa   : > { %v1626_v1 = vpop.permute.xlu0 %1625  ;;  %v3238_v34 = vadd.f32 %v3162_v19, %v2594_v5  ;;  %4437 = vpow2.f32 %v1930_v16 }
 0x2ab   : > { %v1772_v61 = vsub.f32 %v6992_v22, %v1626_v1  ;;  %v1773_v36 = vsub.f32 %v6993_v42, %v1626_v1  ;;  %v1774_v32 = vsub.f32 %v6994_v30, %v1626_v1  ;;  %v1775_v46 = vsub.f32 %v6995_v15, %v1626_v1  ;;  %v2403_v22 = vld [vmem:[#allocation4 + $0x18] sm:$0xff] }
 0x2ac   : > { %4439 = vpow2.f32 %v1932_v12  ;;  %3270 = vst.msk [vmem:[#allocation4 + $0x10] sm:$0xff] %vm427_vm0, %v3238_v34  ;;  %v2595_v12 = vmul.f32 %v5765_v13, %v2403_v22 }
 0x2ad   : > { %v1944_v49 = vmul.f32 1.442695, %v1772_v61  ;;  %v1946_v18 = vmul.f32 1.442695, %v1773_v36  ;;  %2494 = vperm.xlu1 %4326, %v5956_v25   ;;  %4441 = vpow2.f32 %v1934_v44  ;;  %v1948_v0 = vmul.f32 1.442695, %v1774_v32  ;;  %v3074_v1 = vpop.f32.mrf.mxu2 }
 0x2ae   : > { %v1950_v42 = vmul.f32 1.442695, %v1775_v46  ;;  %v3075_v5 = vadd.f32 %v3074_v1, %v2986_v8  ;;  %v3163_v61 = vpop.f32.mrf.mxu3  ;;  %v1425_v44 = vmax.f32 %v5815_v51, %v5817_v4 }
 0x2af   : > { %4443 = vpow2.f32 %v1944_v49  ;;  %v4436_v16 = vpop.eup %4435 }
 0x2b0   : > { %1433 = vmax.xlane.f32.xlu0 %v1432_v7  ;;  %4445 = vpow2.f32 %v1946_v18  ;;  %v4438_v19 = vpop.eup %4437  ;;  %v3164_v36 = vadd.f32 %v3163_v61, %v3075_v5  ;;  %v2640_v30 = vpack.c.bf16 %v4436_v16, %v5959_v3  ;;  %v1426_v8 = vmax.f32 %v1425_v44, %v5832_v24 }
 0x2b1   : > { %4447 = vpow2.f32 %v1948_v0  ;;  %v2641_v7 = vpack.c.bf16 %v4438_v19, %v5963_v11  ;;  %v2221_v49 = vadd.f32 %v4438_v19, %v4436_v16  ;;  %v5986_v16 = vld [vmem:[#allocation2 + $0xc8] sm:$0xff] }
 0x2b2   : > { %v4440_v15 = vpop.eup %4439  ;;  %4449 = vpow2.f32 %v1950_v42  ;;  %v3239_v17 = vadd.f32 %v3164_v36, %v2595_v12  ;;  %2908 = vmatmul.bf16.gmra.mxu0 %v2640_v30  ;;  %v1427_v61 = vmax.f32 %v1426_v8, %v5834_v48  ;;  %v1488_v30 = vsub.f32 %v5598_v58, %v5603_v38 }
 0x2b3   : > { %v4442_v41 = vpop.eup %4441  ;;  %v2642_v32 = vpack.c.bf16 %v4440_v15, %v5967_v9  ;;  %2997 = vmatmul.bf16.gmra.mxu1 %v2641_v7  ;;  %v2222_v34 = vadd.f32 %v4440_v15, %v2221_v49 }
 0x2b4   : > { %v2643_v13 = vpack.c.bf16 %v4442_v41, %v5970_v31  ;;  %3271 = vst.msk [vmem:[#allocation4 + $0x18] sm:$0xff] %vm427_vm0, %v3239_v17  ;;  %v1536_v49 = vmul.f32 1.442695, %v1488_v30 }
 0x2b5   : > { %v4444_v46 = vpop.eup %4443  ;;  %1650 = vperm.xlu1 %4326, %v5603_v38   ;;  %3086 = vmatmul.bf16.gmra.mxu2 %v2642_v32  ;;  %v5984_v0 = vadd.f32 %v4442_v41, %v2222_v34 }
 0x2b6   : > { %v4446_v18 = vpop.eup %4445  ;;  %3175 = vmatmul.bf16.gmra.mxu3 %v2643_v13  ;;  %4451 = vpow2.f32 %v1536_v49 }
 0x2b7   : > { %v2231_v22 = vadd.f32 %v4446_v18, %v4444_v46  ;;  %v4448_v1 = vpop.eup %4447  ;;  %v2645_v15 = vpack.c.bf16 %v4446_v18, %v5928_v54  ;;  %v2404_v54 = vld [vmem:[#allocation4 + $0x20] sm:$0xff]  ;;  %v6010_v18 = vpop.permute.xlu0 %2484 }
 0x2b8   : > { %2179 = vadd.xlane.f32.xlu0 %v5615_v55  ;;  %v4450_v5 = vpop.eup %4449  ;;  %v2644_v55 = vpack.c.bf16 %v4444_v46, %v5923_v40  ;;  %v2646_v44 = vpack.c.bf16 %v4448_v1, %v5934_v62  ;;  %v6996_v40 = vld [vmem:[#allocation63_spill] sm:$0xff]  ;;  %v2596_v8 = vmul.f32 %v5797_v35, %v2404_v54  ;;  %v6999_v54 = vld [vmem:[#allocation26_spill] sm:$0xff] }
 0x2b9   : > { %v2232_v42 = vadd.f32 %v4448_v1, %v2231_v22  ;;  %v2647_v7 = vpack.c.bf16 %v4450_v5, %v5941_v43  ;;  %v1486_v32 = vsub.f32 %v6996_v40, %v6969_v2  ;;  %v1491_v43 = vsub.f32 %v5712_v21, %v5720_v6 }
 0x2ba   : > { %v1435_v2 = vmax.f32 %v5860_v10, %v5862_v28  ;;  %v7008_v28 = vld [vmem:[#allocation25_spill] sm:$0xff] }
 0x2bb   : > { %v5989_v19 = vadd.f32 %v4450_v5, %v2232_v42  ;;  %1428 = vmax.xlane.f32.xlu2 %v1427_v61  ;;  %v1532_v62 = vmul.f32 1.442695, %v1486_v32 }
 0x2bc   : > { %v1409_v12 = vpop.xlane.xlu1 %1408  ;;  %v6005_v38 = vpop.eup %4451  ;;  %v1436_v35 = vmax.f32 %v1435_v2, %v5866_v37  ;;  %v7002_v2 = vld [vmem:[#allocation29_spill] sm:$0xff] }
 0x2bd   : > { %v5992_v36 = vmax.f32 %v5986_v16, %v1409_v12  ;;  %6997 = vst [vmem:[#allocation17_spill] sm:$0xff] %v6005_v38  ;;  %4453 = vpow2.f32 %v1532_v62  ;;  %v1542_v12 = vmul.f32 1.442695, %v1491_v43  ;;  %v7000_v62 = vld [vmem:[#allocation27_spill] sm:$0xff] }
 0x2bf   : > { %3325 = vst.msk [vmem:[#allocation2 + $0xc8] sm:$0xff] %vm362_vm1, %v5992_v36  ;;  %4455 = vpow2.f32 %v1542_v12 }
 0x2c2   : > { %2913 = vmatmul.bf16.gmra.mxu0 %v2644_v55  ;;  %v2405_v55 = vld [vmem:[#allocation4 + $0x28] sm:$0xff] }
 0x2c3   : > { %3002 = vmatmul.bf16.gmra.mxu1 %v2645_v15  ;;  %v6020_v15 = vld [vmem:[#allocation2 + $0xd8] sm:$0xff] }
 0x2c5   : > { %3091 = vmatmul.bf16.gmra.mxu2 %v2646_v44 }
 0x2c6   : > { %3180 = vmatmul.bf16.gmra.mxu3 %v2647_v7 }
 0x2c9   : > { %v2899_v41 = vpop.f32.mrf.mxu0 }
 0x2ca   : > { %v2988_v17 = vpop.f32.mrf.mxu1 }
 0x2cb   : > { %v2989_v58 = vadd.f32 %v2988_v17, %v2899_v41  ;;  %v6023_v41 = vpop.eup %4453  ;;  %v2597_v17 = vmul.f32 %v5914_v20, %v2405_v55  ;;  %v6037_v20 = vpop.permute.xlu2 %2474 }
 0x2cc   : > { %1655 = vperm.xlu0 %4325, %v5671_v53   ;;  %6998 = vst [vmem:[#allocation59_spill] sm:$0xff] %v6023_v41 }
 0x2d1   : > { %v3077_v46 = vpop.f32.mrf.mxu2  ;;  %v2901_v42 = vpop.f32.mrf.mxu0 }
 0x2d2   : > { %v3078_v13 = vadd.f32 %v3077_v46, %v2989_v58  ;;  %v3166_v34 = vpop.f32.mrf.mxu3  ;;  %v2990_v5 = vpop.f32.mrf.mxu1 }
 0x2d3   : > { %1645 = vperm.xlu2 %4324, %v5588_v59   ;;  %v2991_v21 = vadd.f32 %v2990_v5, %v2901_v42 }
 0x2d4   : > { %2514 = vperm.xlu0 %4325, %v6005_v38   ;;  %v3167_v22 = vadd.f32 %v3166_v34, %v3078_v13  ;;  %v6013_v1 = vpop.permute.xlu1 %2479  ;;  %v7001_v34 = vld [vmem:[#allocation28_spill] sm:$0xff] }
 0x2d6   : > { %v3240_v61 = vadd.f32 %v3167_v22, %v2596_v8  ;;  %v1437_v8 = vmax.f32 %v1436_v35, %v5870_v23  ;;  %v7007_v23 = vld [vmem:[#allocation24_spill] sm:$0xff] }
 0x2d8   : > { %3272 = vst.msk [vmem:[#allocation4 + $0x20] sm:$0xff] %vm427_vm0, %v3240_v61 }
 0x2d9   : > { %v3079_v30 = vpop.f32.mrf.mxu2 }
 0x2da   : > { %v3080_v44 = vadd.f32 %v3079_v30, %v2991_v21  ;;  %v3168_v7 = vpop.f32.mrf.mxu3  ;;  %v6040_v21 = vpop.eup %4455  ;;  %v6043_v30 = vld [vmem:[#allocation2 + $0xd0] sm:$0xff] }
 0x2db   : > { %2504 = vperm.xlu2 %4324, %v6023_v41   ;;  %7003 = vst [vmem:[#allocation6_spill] sm:$0xff] %v6040_v21 }
 0x2dc   : > { %1670 = vperm.xlu0 %4325, %v5837_v56   ;;  %v3169_v40 = vadd.f32 %v3168_v7, %v3080_v44  ;;  %v1636_v32 = vpop.permute.xlu1 %1635 }
 0x2dd   : > { %v1419_v49 = vpop.xlane.xlu0 %1418  ;;  %v1780_v46 = vsub.f32 %v6999_v54, %v1636_v32  ;;  %v1781_v13 = vsub.f32 %v7000_v62, %v1636_v32  ;;  %v1782_v43 = vsub.f32 %v7001_v34, %v1636_v32  ;;  %v1783_v42 = vsub.f32 %v7002_v2, %v1636_v32 }
 0x2de   : > { %v6027_v58 = vmax.f32 %v6020_v15, %v1419_v49  ;;  %v3241_v22 = vadd.f32 %v3169_v40, %v2597_v17  ;;  %v7004_v17 = vld [vmem:[#allocation69_spill] sm:$0xff] }
 0x2df   : > { %v1960_v5 = vmul.f32 1.442695, %v1780_v46  ;;  %v1962_v61 = vmul.f32 1.442695, %v1781_v13  ;;  %1438 = vmax.xlane.f32.xlu1 %v1437_v8  ;;  %v1964_v12 = vmul.f32 1.442695, %v1782_v43  ;;  %v1487_v40 = vsub.f32 %v7004_v17, %v5588_v59 }
 0x2e0   : > { %3327 = vst.msk [vmem:[#allocation2 + $0xd8] sm:$0xff] %vm362_vm1, %v6027_v58  ;;  %v1966_v55 = vmul.f32 1.442695, %v1783_v42  ;;  %v2406_v42 = vld [vmem:[#allocation4 + $0x30] sm:$0xff] }
 0x2e1   : > { %3273 = vst.msk [vmem:[#allocation4 + $0x28] sm:$0xff] %vm427_vm0, %v3241_v22  ;;  %4457 = vpow2.f32 %v1960_v5  ;;  %v1534_v43 = vmul.f32 1.442695, %v1487_v40 }
 0x2e2   : > { %4459 = vpow2.f32 %v1962_v61  ;;  %v7005_v61 = vld [vmem:[#allocation22_spill] sm:$0xff] }
 0x2e3   : > { %4461 = vpow2.f32 %v1964_v12 }
 0x2e4   : > { %2529 = vperm.xlu0 %4325, %v6040_v21   ;;  %4463 = vpow2.f32 %v1966_v55  ;;  %v7006_v55 = vld [vmem:[#allocation23_spill] sm:$0xff] }
 0x2e5   : > { %v1414_v44 = vpop.xlane.xlu2 %1413  ;;  %4465 = vpow2.f32 %v1534_v43 }
 0x2e6   : > { %v6046_v49 = vmax.f32 %v6043_v30, %v1414_v44  ;;  %v2904_v46 = vpop.f32.mrf.mxu0 }
 0x2e7   : > { %v4458_v35 = vpop.eup %4457 }
 0x2e8   : > { %v4460_v7 = vpop.eup %4459  ;;  %3326 = vst.msk [vmem:[#allocation2 + $0xd0] sm:$0xff] %vm362_vm1, %v6046_v49  ;;  %v2993_v62 = vpop.f32.mrf.mxu1 }
 0x2e9   : > { %v2241_v32 = vadd.f32 %v4460_v7, %v4458_v35  ;;  %v4462_v54 = vpop.eup %4461  ;;  %v2994_v22 = vadd.f32 %v2993_v62, %v2904_v46 }
 0x2ea   : > { %v4464_v34 = vpop.eup %4463 }
 0x2eb   : > { %v2242_v13 = vadd.f32 %v4462_v54, %v2241_v32  ;;  %v2598_v32 = vmul.f32 %v5898_v60, %v2406_v42 }
 0x2ed   : > { %v6052_v8 = vadd.f32 %v4464_v34, %v2242_v13  ;;  %v1631_v2 = vpop.permute.xlu2 %1630 }
 0x2ee   : > { %v3082_v5 = vpop.f32.mrf.mxu2  ;;  %v1776_v12 = vsub.f32 %v7005_v61, %v1631_v2  ;;  %v1777_v59 = vsub.f32 %v7006_v55, %v1631_v2  ;;  %v1778_v37 = vsub.f32 %v7007_v23, %v1631_v2  ;;  %v1779_v10 = vsub.f32 %v7008_v28, %v1631_v2  ;;  %v2906_v46 = vpop.f32.mrf.mxu0 }
 0x2ef   : > { %v3083_v44 = vadd.f32 %v3082_v5, %v2994_v22  ;;  %v3171_v17 = vpop.f32.mrf.mxu3  ;;  %v6059_v61 = vpop.eup %4465  ;;  %v2407_v22 = vld [vmem:[#allocation4 + $0x38] sm:$0xff] }
 0x2f0   : > { %v1952_v13 = vmul.f32 1.442695, %v1776_v12  ;;  %v1954_v21 = vmul.f32 1.442695, %v1777_v59  ;;  %v2995_v62 = vpop.f32.mrf.mxu1  ;;  %v1956_v25 = vmul.f32 1.442695, %v1778_v37  ;;  %v2599_v2 = vmul.f32 %v5902_v63, %v2407_v22 }
 0x2f1   : > { %v3172_v40 = vadd.f32 %v3171_v17, %v3083_v44  ;;  %v1958_v38 = vmul.f32 1.442695, %v1779_v10  ;;  %7009 = vst [vmem:[#allocation7_spill] sm:$0xff] %v6059_v61  ;;  %v2996_v43 = vadd.f32 %v2995_v62, %v2906_v46  ;;  %v6067_v63 = vld [vmem:[#allocation2 + $0xe0] sm:$0xff]  ;;  %v6085_v62 = vld [vmem:[#allocation2 + $0xf0] sm:$0xff] }
 0x2f2   : > { %4467 = vpow2.f32 %v1952_v13 }
 0x2f3   : > { %v3242_v41 = vadd.f32 %v3172_v40, %v2598_v32  ;;  %4469 = vpow2.f32 %v1954_v21 }
 0x2f4   : > { %4471 = vpow2.f32 %v1956_v25 }
 0x2f5   : > { %3274 = vst.msk [vmem:[#allocation4 + $0x30] sm:$0xff] %vm427_vm0, %v3242_v41  ;;  %4473 = vpow2.f32 %v1958_v38 }
 0x2f6   : > { %v3084_v23 = vpop.f32.mrf.mxu2 }
 0x2f7   : > { %v3085_v28 = vadd.f32 %v3084_v23, %v2996_v43  ;;  %v3173_v60 = vpop.f32.mrf.mxu3  ;;  %v6099_v23 = vpop.permute.xlu2 %2489 }
 0x2f8   : > { %2509 = vperm.xlu1 %4326, %v6059_v61   ;;  %v4468_v37 = vpop.eup %4467 }
 0x2f9   : > { %v3174_v42 = vadd.f32 %v3173_v60, %v3085_v28  ;;  %v4470_v5 = vpop.eup %4469  ;;  %v2648_v12 = vpack.c.bf16 %v4458_v35, %v4468_v37  ;;  %v7012_v28 = vld [vmem:[#allocation38_spill] sm:$0xff] }
 0x2fa   : > { %v4472_v55 = vpop.eup %4471  ;;  %v2649_v41 = vpack.c.bf16 %v4460_v7, %v4470_v5  ;;  %v2236_v59 = vadd.f32 %v4470_v5, %v4468_v37  ;;  %v1641_v7 = vpop.permute.xlu0 %1640  ;;  %v7014_v37 = vld [vmem:[#allocation40_spill] sm:$0xff] }
 0x2fb   : > { %v3243_v10 = vadd.f32 %v3174_v42, %v2599_v2  ;;  %v4474_v21 = vpop.eup %4473  ;;  %2918 = vmatmul.bf16.gmra.mxu0 %v2648_v12  ;;  %v2650_v44 = vpack.c.bf16 %v4462_v54, %v4472_v55  ;;  %v1489_v54 = vsub.f32 %v5662_v50, %v5671_v53  ;;  %v7013_v2 = vld [vmem:[#allocation39_spill] sm:$0xff]  ;;  %v7016_v12 = vld [vmem:[#allocation41_spill] sm:$0xff] }
 0x2fc   : > { %3007 = vmatmul.bf16.gmra.mxu1 %v2649_v41  ;;  %v2651_v25 = vpack.c.bf16 %v4464_v34, %v4474_v21  ;;  %v2237_v17 = vadd.f32 %v4472_v55, %v2236_v59  ;;  %v1494_v34 = vsub.f32 %v5876_v47, %v5880_v45  ;;  %v2112_v47 = vld [vmem:[#allocation3] sm:$0xff] }
 0x2fd   : > { %3275 = vst.msk [vmem:[#allocation4 + $0x38] sm:$0xff] %vm427_vm0, %v3243_v10  ;;  %3096 = vmatmul.bf16.gmra.mxu2 %v2650_v44  ;;  %v1538_v13 = vmul.f32 1.442695, %v1489_v54  ;;  %v1490_v54 = vsub.f32 %v5675_v33, %v5680_v57  ;;  %v7020_v33 = vld [vmem:[#allocation33_spill] sm:$0xff] }
 0x2fe   : > { %3185 = vmatmul.bf16.gmra.mxu3 %v2651_v25  ;;  %v6065_v38 = vadd.f32 %v4474_v21, %v2237_v17 }
 0x2ff   : > { %4475 = vpow2.f32 %v1538_v13 }
 0x302   : > { %v6080_v40 = vpop.permute.xlu0 %2499 }
 0x304   : > { %2184 = vadd.xlane.f32.xlu2 %v5626_v52  ;;  %v1548_v52 = vmul.f32 1.442695, %v1494_v34  ;;  %v7017_v34 = vld [vmem:[#allocation30_spill] sm:$0xff] }
 0x305   : > { %v6094_v53 = vpop.eup %4475  ;;  %v1784_v13 = vsub.f32 %v7017_v34, %v1641_v7 }
 0x306   : > { %4477 = vpow2.f32 %v1548_v52  ;;  %7010 = vst [vmem:[#allocation8_spill] sm:$0xff] %v6094_v53 }
 0x307   : > { %v1424_v35 = vpop.xlane.xlu1 %1423 }
 0x308   : > { %v6071_v32 = vmax.f32 %v6067_v63, %v1424_v35  ;;  %v6108_v35 = vld [vmem:[#allocation2 + $0xe8] sm:$0xff] }
 0x30a   : > { %3328 = vst.msk [vmem:[#allocation2 + $0xe0] sm:$0xff] %vm362_vm1, %v6071_v32 }
 0x30c   : > { %v6097_v43 = vpop.eup %4477 }
 0x30d   : > { %7011 = vst [vmem:[#allocation9_spill] sm:$0xff] %v6097_v43 }
 0x30e   : > { %2199 = vadd.xlane.f32.xlu0 %v5755_v27 }
 0x31c   : > { %1660 = vperm.xlu2 %4324, %v5680_v57   ;;  %v1787_v57 = vsub.f32 %v7020_v33, %v1641_v7 }
 0x31f   : > { %v6083_v46 = vpop.permute.xlu1 %2494 }
 0x322   : > { %1685 = vperm.xlu0 %4325, %v5937_v39   ;;  %2189 = vadd.xlane.f32.xlu1 %v5668_v14  ;;  %v7015_v14 = vld [vmem:[#allocation42_spill] sm:$0xff] }
 0x323   : > { %v1434_v27 = vpop.xlane.xlu0 %1433  ;;  %v2144_v5 = vmul.f32 %v7015_v14, %v2112_v47 }
 0x324   : > { %v6089_v50 = vmax.f32 %v6085_v62, %v1434_v27  ;;  %2519 = vperm.xlu2 %4324, %v6094_v53  }
 0x326   : > { %3330 = vst.msk [vmem:[#allocation2 + $0xf0] sm:$0xff] %vm362_vm1, %v6089_v50 }
 0x327   : > { %v1651_v22 = vpop.permute.xlu1 %1650 }
 0x328   : > { %v1792_v60 = vsub.f32 %v7012_v28, %v1651_v22  ;;  %v1793_v42 = vsub.f32 %v7013_v2, %v1651_v22  ;;  %v1794_v10 = vsub.f32 %v7014_v37, %v1651_v22  ;;  %v1795_v55 = vsub.f32 %v7016_v12, %v1651_v22  ;;  %v7018_v28 = vld [vmem:[#allocation31_spill] sm:$0xff] }
 0x329   : > { %v1540_v37 = vmul.f32 1.442695, %v1490_v54 }
 0x32a   : > { %2544 = vperm.xlu0 %4325, %v6097_v43   ;;  %v1984_v59 = vmul.f32 1.442695, %v1792_v60  ;;  %v1986_v21 = vmul.f32 1.442695, %v1793_v42  ;;  %v1988_v25 = vmul.f32 1.442695, %v1794_v10  ;;  %v1785_v60 = vsub.f32 %v7018_v28, %v1641_v7 }
 0x32b   : > { %v2180_v41 = vpop.xlane.xlu0 %2179  ;;  %v1990_v17 = vmul.f32 1.442695, %v1795_v55  ;;  %v7019_v10 = vld [vmem:[#allocation32_spill] sm:$0xff] }
 0x32c   : > { %v2336_v44 = vadd.f32 %v2180_v41, %v2144_v5  ;;  %4479 = vpow2.f32 %v1984_v59  ;;  %v1786_v14 = vsub.f32 %v7019_v10, %v1641_v7  ;;  %v1968_v5 = vmul.f32 1.442695, %v1784_v13  ;;  %v2408_v7 = vld [vmem:[#allocation4 + $0x40] sm:$0xff]  ;;  %v7022_v10 = vld [vmem:[#allocation35_spill] sm:$0xff] }
 0x32d   : > { %4481 = vpow2.f32 %v1986_v21  ;;  %v1970_v41 = vmul.f32 1.442695, %v1785_v60  ;;  %v7023_v60 = vld [vmem:[#allocation36_spill] sm:$0xff] }
 0x32e   : > { %2368 = vst.msk [vmem:[#allocation3] sm:$0xff] %vm362_vm1, %v2336_v44  ;;  %4483 = vpow2.f32 %v1988_v25  ;;  %v1429_v52 = vpop.xlane.xlu2 %1428  ;;  %v1972_v44 = vmul.f32 1.442695, %v1786_v14  ;;  %v1974_v25 = vmul.f32 1.442695, %v1787_v57 }
 0x32f   : > { %4485 = vpow2.f32 %v1990_v17  ;;  %v6114_v27 = vmax.f32 %v6108_v35, %v1429_v52  ;;  %v2909_v47 = vpop.f32.mrf.mxu0  ;;  %v7021_v52 = vld [vmem:[#allocation34_spill] sm:$0xff] }
 0x330   : > { %v2998_v2 = vpop.f32.mrf.mxu1  ;;  %4487 = vpow2.f32 %v1540_v37 }
 0x331   : > { %3329 = vst.msk [vmem:[#allocation2 + $0xe8] sm:$0xff] %vm362_vm1, %v6114_v27  ;;  %4489 = vpow2.f32 %v1968_v5  ;;  %v2999_v17 = vadd.f32 %v2998_v2, %v2909_v47 }
 0x332   : > { %v6116_v22 = vpop.eup %4479  ;;  %4491 = vpow2.f32 %v1970_v41 }
 0x333   : > { %v6119_v42 = vpop.eup %4481  ;;  %4493 = vpow2.f32 %v1972_v44 }
 0x334   : > { %v2256_v12 = vadd.f32 %v6119_v42, %v6116_v22  ;;  %v6127_v55 = vpop.eup %4483  ;;  %4495 = vpow2.f32 %v1974_v25 }
 0x335   : > { %v6130_v21 = vpop.eup %4485 }
 0x336   : > { %v2257_v59 = vadd.f32 %v6127_v55, %v2256_v12  ;;  %v1646_v54 = vpop.permute.xlu2 %1645  ;;  %v7024_v12 = vld [vmem:[#allocation37_spill] sm:$0xff] }
 0x337   : > { %v1788_v28 = vsub.f32 %v7021_v52, %v1646_v54  ;;  %v1789_v33 = vsub.f32 %v7022_v10, %v1646_v54  ;;  %v1790_v53 = vsub.f32 %v7023_v60, %v1646_v54  ;;  %v1791_v43 = vsub.f32 %v7024_v12, %v1646_v54  ;;  %v2911_v61 = vpop.f32.mrf.mxu0  ;;  %v6141_v60 = vpop.eup %4487  ;;  %v7026_v54 = vld [vmem:[#allocation43_spill] sm:$0xff]  ;;  %v7028_v12 = vld [vmem:[#allocation45_spill] sm:$0xff] }
 0x338   : > { %v6133_v34 = vadd.f32 %v6130_v21, %v2257_v59  ;;  %v3087_v13 = vpop.f32.mrf.mxu2  ;;  %v3000_v57 = vpop.f32.mrf.mxu1  ;;  %v2600_v59 = vmul.f32 %v6037_v20, %v2408_v7  ;;  %7025 = vst [vmem:[#allocation10_spill] sm:$0xff] %v6141_v60 }
 0x339   : > { %v3088_v37 = vadd.f32 %v3087_v13, %v2999_v17  ;;  %v3176_v14 = vpop.f32.mrf.mxu3  ;;  %v1976_v47 = vmul.f32 1.442695, %v1788_v28  ;;  %v1978_v2 = vmul.f32 1.442695, %v1789_v33  ;;  %v1980_v5 = vmul.f32 1.442695, %v1790_v53  ;;  %v6146_v28 = vpop.eup %4489 }
 0x33a   : > { %v1982_v10 = vmul.f32 1.442695, %v1791_v43  ;;  %v7027_v17 = vld [vmem:[#allocation44_spill] sm:$0xff]  ;;  %v6149_v43 = vpop.eup %4491  ;;  %v3001_v33 = vadd.f32 %v3000_v57, %v2911_v61 }
 0x33b   : > { %1665 = vperm.xlu1 %4326, %v5720_v6   ;;  %v3177_v52 = vadd.f32 %v3176_v14, %v3088_v37  ;;  %4497 = vpow2.f32 %v1976_v47  ;;  %v7029_v6 = vld [vmem:[#allocation46_spill] sm:$0xff]  ;;  %v6152_v14 = vpop.eup %4493 }
 0x33c   : > { %4499 = vpow2.f32 %v1978_v2  ;;  %v2409_v47 = vld [vmem:[#allocation4 + $0x48] sm:$0xff] }
 0x33d   : > { %v3244_v53 = vadd.f32 %v3177_v52, %v2600_v59  ;;  %4501 = vpow2.f32 %v1980_v5  ;;  %v2601_v61 = vmul.f32 %v6013_v1, %v2409_v47  ;;  %v2410_v47 = vld [vmem:[#allocation4 + $0x50] sm:$0xff] }
 0x33e   : > { %v1656_v48 = vpop.permute.xlu0 %1655  ;;  %4503 = vpow2.f32 %v1982_v10 }
 0x33f   : > { %v1796_v41 = vsub.f32 %v7026_v54, %v1656_v48  ;;  %v1797_v13 = vsub.f32 %v7027_v17, %v1656_v48  ;;  %v1798_v44 = vsub.f32 %v7028_v12, %v1656_v48  ;;  %v1799_v20 = vsub.f32 %v7029_v6, %v1656_v48  ;;  %3276 = vst.msk [vmem:[#allocation4 + $0x40] sm:$0xff] %vm427_vm0, %v3244_v53  ;;  %v6154_v17 = vpop.eup %4495  ;;  %v2914_v52 = vpop.f32.mrf.mxu0 }
 0x340   : > { %v3089_v54 = vpop.f32.mrf.mxu2 }
 0x341   : > { %v1992_v25 = vmul.f32 1.442695, %v1796_v41  ;;  %v1994_v7 = vmul.f32 1.442695, %v1797_v13  ;;  %v1996_v37 = vmul.f32 1.442695, %v1798_v44  ;;  %v3090_v2 = vadd.f32 %v3089_v54, %v3001_v33  ;;  %v3178_v5 = vpop.f32.mrf.mxu3  ;;  %v4498_v48 = vpop.eup %4497 }
 0x342   : > { %v1998_v59 = vmul.f32 1.442695, %v1799_v20  ;;  %v3003_v41 = vpop.f32.mrf.mxu1  ;;  %v4500_v13 = vpop.eup %4499  ;;  %v2652_v10 = vpack.c.bf16 %v4498_v48, %v6146_v28 }
 0x343   : > { %4505 = vpow2.f32 %v1992_v25  ;;  %2524 = vperm.xlu1 %4326, %v6141_v60   ;;  %v3179_v57 = vadd.f32 %v3178_v5, %v3090_v2  ;;  %v4502_v12 = vpop.eup %4501  ;;  %v2653_v44 = vpack.c.bf16 %v4500_v13, %v6149_v43  ;;  %v2251_v53 = vadd.f32 %v4500_v13, %v4498_v48 }
 0x344   : > { %4507 = vpow2.f32 %v1994_v7  ;;  %v4504_v6 = vpop.eup %4503  ;;  %2923 = vmatmul.bf16.gmra.mxu0 %v2652_v10  ;;  %v2654_v20 = vpack.c.bf16 %v4502_v12, %v6152_v14 }
 0x345   : > { %4509 = vpow2.f32 %v1996_v37  ;;  %v3245_v25 = vadd.f32 %v3179_v57, %v2601_v61  ;;  %3012 = vmatmul.bf16.gmra.mxu1 %v2653_v44  ;;  %v2655_v33 = vpack.c.bf16 %v4504_v6, %v6154_v17  ;;  %v2252_v54 = vadd.f32 %v4502_v12, %v2251_v53 }
 0x346   : > { %4511 = vpow2.f32 %v1998_v59  ;;  %v3004_v37 = vadd.f32 %v3003_v41, %v2914_v52  ;;  %3101 = vmatmul.bf16.gmra.mxu2 %v2654_v20  ;;  %v2602_v59 = vmul.f32 %v6010_v18, %v2410_v47  ;;  %v6170_v41 = vld [vmem:[#allocation2 + $0xf8] sm:$0xff] }
 0x347   : > { %3277 = vst.msk [vmem:[#allocation4 + $0x48] sm:$0xff] %vm427_vm0, %v3245_v25  ;;  %3190 = vmatmul.bf16.gmra.mxu3 %v2655_v33  ;;  %v6163_v5 = vadd.f32 %v4504_v6, %v2252_v54  ;;  %v2916_v12 = vpop.f32.mrf.mxu0  ;;  %v2411_v6 = vld [vmem:[#allocation4 + $0x58] sm:$0xff] }
 0x348   : > { %v3092_v2 = vpop.f32.mrf.mxu2  ;;  %v2603_v47 = vmul.f32 %v6099_v23, %v2411_v6  ;;  %v1497_v23 = vsub.f32 %v5986_v16, %v5992_v36  ;;  %v2116_v6 = vld [vmem:[#allocation3 + $0x20] sm:$0xff] }
 0x349   : > { %v4506_v7 = vpop.eup %4505  ;;  %v3093_v61 = vadd.f32 %v3092_v2, %v3004_v37  ;;  %v3181_v57 = vpop.f32.mrf.mxu3 }
 0x34a   : > { %v4508_v1 = vpop.eup %4507  ;;  %v3005_v53 = vpop.f32.mrf.mxu1 }
 0x34b   : > { %v2261_v48 = vadd.f32 %v4508_v1, %v4506_v7  ;;  %v4510_v13 = vpop.eup %4509  ;;  %v3182_v44 = vadd.f32 %v3181_v57, %v3093_v61  ;;  %v3006_v52 = vadd.f32 %v3005_v53, %v2916_v12  ;;  %v1554_v57 = vmul.f32 1.442695, %v1497_v23 }
 0x34c   : > { %v4512_v60 = vpop.eup %4511  ;;  %v2658_v61 = vpack.c.bf16 %v4510_v13, %v6127_v55  ;;  %v7031_v55 = vld [vmem:[#allocation110_spill] sm:$0xff] }
 0x34d   : > { %v2262_v10 = vadd.f32 %v4510_v13, %v2261_v48  ;;  %v3246_v24 = vadd.f32 %v3182_v44, %v2602_v59  ;;  %2194 = vadd.xlane.f32.xlu2 %v5736_v29  ;;  %v2656_v29 = vpack.c.bf16 %v4506_v7, %v6116_v22  ;;  %v7030_v22 = vld [vmem:[#allocation111_spill] sm:$0xff]  ;;  %4513 = vpow2.f32 %v1554_v57  ;;  %v2113_v13 = vld [vmem:[#allocation3 + $0x8] sm:$0xff]  ;;  %v7038_v57 = vld [vmem:[#allocation49_spill] sm:$0xff] }
 0x34e   : > { %v1492_v7 = vsub.f32 %v7030_v22, %v5837_v56  ;;  %v6201_v56 = vpop.permute.xlu2 %2504  ;;  %v7033_v44 = vld [vmem:[#allocation55_spill] sm:$0xff]  ;;  %v7037_v22 = vld [vmem:[#allocation48_spill] sm:$0xff] }
 0x34f   : > { %v6166_v25 = vadd.f32 %v4512_v60, %v2262_v10  ;;  %3278 = vst.msk [vmem:[#allocation4 + $0x50] sm:$0xff] %vm427_vm0, %v3246_v24  ;;  %v2657_v24 = vpack.c.bf16 %v4508_v1, %v6119_v42  ;;  %v6188_v10 = vpop.permute.xlu0 %2514  ;;  %v7032_v1 = vld [vmem:[#allocation109_spill] sm:$0xff]  ;;  %v2145_v12 = vmul.f32 %v7033_v44, %v2113_v13 }
 0x350   : > { %v3094_v20 = vpop.f32.mrf.mxu2  ;;  %v1544_v42 = vmul.f32 1.442695, %v1492_v7 }
 0x351   : > { %v3095_v33 = vadd.f32 %v3094_v20, %v3006_v52  ;;  %v3183_v54 = vpop.f32.mrf.mxu3  ;;  %v7034_v20 = vld [vmem:[#allocation108_spill] sm:$0xff] }
 0x352   : > { %v1439_v18 = vpop.xlane.xlu1 %1438  ;;  %4515 = vpow2.f32 %v1544_v42 }
 0x353   : > { %v6174_v37 = vmax.f32 %v6170_v41, %v1439_v18  ;;  %v3184_v2 = vadd.f32 %v3183_v54, %v3095_v33  ;;  %v1493_v33 = vsub.f32 %v7034_v20, %v7031_v55  ;;  %v7035_v54 = vld [vmem:[#allocation58_spill] sm:$0xff] }
 0x354   : > { %2214 = vadd.xlane.f32.xlu0 %v5843_v26  ;;  %2928 = vmatmul.bf16.gmra.mxu0 %v2656_v29  ;;  %v2659_v26 = vpack.c.bf16 %v4512_v60, %v6130_v21  ;;  %v6192_v21 = vpop.eup %4513 }
 0x355   : > { %3331 = vst.msk [vmem:[#allocation2 + $0xf8] sm:$0xff] %vm362_vm1, %v6174_v37  ;;  %v3247_v48 = vadd.f32 %v3184_v2, %v2603_v47  ;;  %3017 = vmatmul.bf16.gmra.mxu1 %v2657_v24  ;;  %v2148_v47 = vmul.f32 %v7035_v54, %v2116_v6 }
 0x356   : > { %3106 = vmatmul.bf16.gmra.mxu2 %v2658_v61 }
 0x357   : > { %3279 = vst.msk [vmem:[#allocation4 + $0x58] sm:$0xff] %vm427_vm0, %v3247_v48  ;;  %3195 = vmatmul.bf16.gmra.mxu3 %v2659_v26  ;;  %v6194_v60 = vpop.permute.xlu0 %1670  ;;  %v1546_v48 = vmul.f32 1.442695, %v1493_v33  ;;  %v7036_v26 = vld [vmem:[#allocation47_spill] sm:$0xff] }
 0x358   : > { %v6197_v16 = vpop.eup %4515 }
 0x359   : > { %4517 = vpow2.f32 %v1546_v48 }
 0x35f   : > { %v6203_v59 = vpop.permute.xlu0 %2529 }
 0x365   : > { %1675 = vperm.xlu2 %4324, %v7031_v55  }
 0x368   : > { %1700 = vperm.xlu0 %4325, %v6046_v49  }
 0x36d   : > { %2204 = vadd.xlane.f32.xlu1 %v7032_v1  ;;  %2534 = vperm.xlu2 %4324, %v6197_v16   ;;  %v7039_v1 = vld [vmem:[#allocation50_spill] sm:$0xff] }
 0x370   : > { %2559 = vperm.xlu0 %4325, %v6192_v21  }
 0x377   : > { %v2185_v53 = vpop.xlane.xlu2 %2184 }
 0x378   : > { %v2337_v52 = vadd.f32 %v2185_v53, %v2145_v12  ;;  %v2919_v18 = vpop.f32.mrf.mxu0  ;;  %v2412_v53 = vld [vmem:[#allocation4 + $0x60] sm:$0xff] }
 0x379   : > { %v3008_v2 = vpop.f32.mrf.mxu1 }
 0x37a   : > { %2369 = vst.msk [vmem:[#allocation3 + $0x8] sm:$0xff] %vm362_vm1, %v2337_v52  ;;  %v3009_v44 = vadd.f32 %v3008_v2, %v2919_v18  ;;  %v6217_v2 = vpop.eup %4517 }
 0x37f   : > { %v1661_v61 = vpop.permute.xlu2 %1660 }
 0x380   : > { %v1800_v23 = vsub.f32 %v7036_v26, %v1661_v61  ;;  %v1801_v7 = vsub.f32 %v7037_v22, %v1661_v61  ;;  %v1802_v42 = vsub.f32 %v7038_v57, %v1661_v61  ;;  %v1803_v13 = vsub.f32 %v7039_v1, %v1661_v61  ;;  %v3097_v52 = vpop.f32.mrf.mxu2  ;;  %v6224_v22 = vpop.permute.xlu1 %2509 }
 0x381   : > { %v2200_v29 = vpop.xlane.xlu0 %2199  ;;  %v3098_v20 = vadd.f32 %v3097_v52, %v3009_v44  ;;  %v3186_v33 = vpop.f32.mrf.mxu3 }
 0x382   : > { %v2340_v24 = vadd.f32 %v2200_v29, %v2148_v47  ;;  %v2000_v55 = vmul.f32 1.442695, %v1800_v23  ;;  %v2002_v12 = vmul.f32 1.442695, %v1801_v7  ;;  %v2004_v6 = vmul.f32 1.442695, %v1802_v42  ;;  %v3010_v61 = vpop.f32.mrf.mxu1 }
 0x383   : > { %v2006_v54 = vmul.f32 1.442695, %v1803_v13  ;;  %v2604_v47 = vmul.f32 %v6083_v46, %v2412_v53  ;;  %v3187_v29 = vadd.f32 %v3186_v33, %v3098_v20  ;;  %v2114_v53 = vld [vmem:[#allocation3 + $0x10] sm:$0xff]  ;;  %v7040_v20 = vld [vmem:[#allocation56_spill] sm:$0xff] }
 0x384   : > { %2372 = vst.msk [vmem:[#allocation3 + $0x20] sm:$0xff] %vm362_vm1, %v2340_v24  ;;  %4519 = vpow2.f32 %v2000_v55  ;;  %v2921_v24 = vpop.f32.mrf.mxu0  ;;  %v2146_v33 = vmul.f32 %v7040_v20, %v2114_v53 }
 0x385   : > { %4521 = vpow2.f32 %v2002_v12  ;;  %v3248_v18 = vadd.f32 %v3187_v29, %v2604_v47  ;;  %v3011_v26 = vadd.f32 %v3010_v61, %v2921_v24  ;;  %v7041_v29 = vld [vmem:[#allocation62_spill] sm:$0xff]  ;;  %v7042_v24 = vld [vmem:[#allocation15_spill] sm:$0xff] }
 0x386   : > { %1680 = vperm.xlu1 %4326, %v5880_v45   ;;  %4523 = vpow2.f32 %v2004_v6  ;;  %v2413_v45 = vld [vmem:[#allocation4 + $0x68] sm:$0xff] }
 0x387   : > { %4525 = vpow2.f32 %v2006_v54  ;;  %3280 = vst.msk [vmem:[#allocation4 + $0x60] sm:$0xff] %vm427_vm0, %v3248_v18  ;;  %v2605_v13 = vmul.f32 %v6080_v40, %v2413_v45  ;;  %v1500_v40 = vsub.f32 %v6067_v63, %v6071_v32  ;;  %v7043_v61 = vld [vmem:[#allocation14_spill] sm:$0xff] }
 0x388   : > { %v3099_v7 = vpop.f32.mrf.mxu2  ;;  %v1495_v18 = vsub.f32 %v7043_v61, %v5937_v39 }
 0x389   : > { %v3100_v46 = vadd.f32 %v3099_v7, %v3011_v26  ;;  %v3188_v1 = vpop.f32.mrf.mxu3  ;;  %v1560_v26 = vmul.f32 1.442695, %v1500_v40 }
 0x38a   : > { %v6219_v48 = vpop.eup %4519  ;;  %v1550_v45 = vmul.f32 1.442695, %v1495_v18 }
 0x38b   : > { %v6222_v23 = vpop.eup %4521  ;;  %v3189_v44 = vadd.f32 %v3188_v1, %v3100_v46  ;;  %4527 = vpow2.f32 %v1560_v26  ;;  %v2216_v46 = vadd.f32 %v5963_v11, %v5959_v3 }
 0x38c   : > { %v2266_v57 = vadd.f32 %v6222_v23, %v6219_v48  ;;  %v4524_v42 = vpop.eup %4523  ;;  %4529 = vpow2.f32 %v1550_v45  ;;  %v6260_v45 = vpop.permute.xlu2 %2519 }
 0x38d   : > { %v4526_v12 = vpop.eup %4525  ;;  %v3249_v52 = vadd.f32 %v3189_v44, %v2605_v13  ;;  %v7045_v13 = vld [vmem:[#allocation52_spill] sm:$0xff] }
 0x38e   : > { %2539 = vperm.xlu1 %4326, %v6217_v2   ;;  %v2267_v55 = vadd.f32 %v4524_v42, %v2266_v57  ;;  %v7044_v57 = vld [vmem:[#allocation51_spill] sm:$0xff] }
 0x38f   : > { %3281 = vst.msk [vmem:[#allocation4 + $0x68] sm:$0xff] %vm427_vm0, %v3249_v52  ;;  %v7047_v52 = vld [vmem:[#allocation54_spill] sm:$0xff] }
 0x390   : > { %v6230_v6 = vadd.f32 %v4526_v12, %v2267_v55  ;;  %v7046_v55 = vld [vmem:[#allocation53_spill] sm:$0xff] }
 0x394   : > { %v6252_v3 = vpop.permute.xlu0 %1685 }
 0x395   : > { %v2190_v54 = vpop.xlane.xlu1 %2189 }
 0x396   : > { %v2338_v47 = vadd.f32 %v2190_v54, %v2146_v33  ;;  %2209 = vadd.xlane.f32.xlu2 %v7041_v29  ;;  %v7048_v54 = vld [vmem:[#allocation60_spill] sm:$0xff]  ;;  %v2217_v29 = vadd.f32 %v5967_v9, %v2216_v46 }
 0x398   : > { %2370 = vst.msk [vmem:[#allocation3 + $0x10] sm:$0xff] %vm362_vm1, %v2338_v47  ;;  %v2218_v11 = vadd.f32 %v5970_v31, %v2217_v29 }
 0x39a   : > { %2229 = vadd.xlane.f32.xlu0 %v7042_v24  ;;  %v6250_v24 = vpop.eup %4527 }
 0x39b   : > { %v6256_v40 = vpop.eup %4529 }
 0x39c   : > { %7049 = vst [vmem:[#allocation11_spill] sm:$0xff] %v6256_v40 }
 0x3ad   : > { %v1666_v7 = vpop.permute.xlu1 %1665 }
 0x3ae   : > { %1715 = vperm.xlu0 %4325, %v6114_v27   ;;  %v1804_v1 = vsub.f32 %v7044_v57, %v1666_v7  ;;  %v1805_v44 = vsub.f32 %v7045_v13, %v1666_v7  ;;  %v1806_v53 = vsub.f32 %v7046_v55, %v1666_v7  ;;  %v1807_v63 = vsub.f32 %v7047_v52, %v1666_v7  ;;  %v2115_v55 = vld [vmem:[#allocation3 + $0x18] sm:$0xff] }
 0x3af   : > { %1690 = vperm.xlu2 %4324, %v7048_v54  }
 0x3b0   : > { %v2008_v20 = vmul.f32 1.442695, %v1804_v1  ;;  %v2010_v33 = vmul.f32 1.442695, %v1805_v44  ;;  %v2012_v39 = vmul.f32 1.442695, %v1806_v53  ;;  %v6263_v44 = vpop.permute.xlu0 %2544 }
 0x3b1   : > { %v2014_v47 = vmul.f32 1.442695, %v1807_v63  ;;  %v2119_v63 = vld [vmem:[#allocation3 + $0x38] sm:$0xff] }
 0x3b2   : > { %4531 = vpow2.f32 %v2008_v20  ;;  %v7051_v20 = vld [vmem:[#allocation57_spill] sm:$0xff] }
 0x3b3   : > { %4533 = vpow2.f32 %v2010_v33 }
 0x3b4   : > { %4535 = vpow2.f32 %v2012_v39 }
 0x3b5   : > { %4537 = vpow2.f32 %v2014_v47 }
 0x3b6   : > { %2574 = vperm.xlu0 %4325, %v6250_v24  }
 0x3b7   : > { %2549 = vperm.xlu2 %4324, %v6256_v40  }
 0x3b8   : > { %v4532_v61 = vpop.eup %4531  ;;  %2219 = vadd.xlane.f32.xlu1 %v2218_v11  ;;  %v7053_v11 = vld [vmem:[#allocation78_spill] sm:$0xff] }
 0x3b9   : > { %v4534_v18 = vpop.eup %4533  ;;  %v2660_v9 = vpack.c.bf16 %v4532_v61, %v6219_v48  ;;  %v7050_v48 = vld [vmem:[#allocation65_spill] sm:$0xff] }
 0x3ba   : > { %v4536_v26 = vpop.eup %4535  ;;  %v2661_v7 = vpack.c.bf16 %v4534_v18, %v6222_v23  ;;  %v2271_v46 = vadd.f32 %v4534_v18, %v4532_v61  ;;  %v2147_v52 = vmul.f32 %v7050_v48, %v2115_v55  ;;  %v1496_v23 = vsub.f32 %v7051_v20, %v7048_v54  ;;  %v7054_v18 = vld [vmem:[#allocation66_spill] sm:$0xff]  ;;  %v2414_v20 = vld [vmem:[#allocation4 + $0x70] sm:$0xff] }
 0x3bb   : > { %v4538_v57 = vpop.eup %4537  ;;  %2933 = vmatmul.bf16.gmra.mxu0 %v2660_v9  ;;  %v2662_v1 = vpack.c.bf16 %v4536_v26, %v4524_v42  ;;  %v7052_v42 = vld [vmem:[#allocation64_spill] sm:$0xff]  ;;  %v2151_v61 = vmul.f32 %v7053_v11, %v2119_v63  ;;  %v1809_v9 = vsub.f32 %v7054_v18, %v6194_v60  ;;  %v7059_v18 = vld [vmem:[#allocation73_spill] sm:$0xff] }
 0x3bc   : > { %3022 = vmatmul.bf16.gmra.mxu1 %v2661_v7  ;;  %v2663_v31 = vpack.c.bf16 %v4538_v57, %v4526_v12  ;;  %v2272_v13 = vadd.f32 %v4536_v26, %v2271_v46  ;;  %v1808_v12 = vsub.f32 %v7052_v42, %v6194_v60  ;;  %v1552_v7 = vmul.f32 1.442695, %v1496_v23  ;;  %v7055_v46 = vld [vmem:[#allocation68_spill] sm:$0xff] }
 0x3bd   : > { %3111 = vmatmul.bf16.gmra.mxu2 %v2662_v1  ;;  %v7058_v23 = vld [vmem:[#allocation72_spill] sm:$0xff] }
 0x3be   : > { %3200 = vmatmul.bf16.gmra.mxu3 %v2663_v31  ;;  %v6265_v53 = vadd.f32 %v4538_v57, %v2272_v13  ;;  %v1810_v57 = vsub.f32 %v7055_v46, %v6194_v60  ;;  %v2016_v1 = vmul.f32 1.442695, %v1808_v12  ;;  %v2018_v31 = vmul.f32 1.442695, %v1809_v9  ;;  %v7056_v13 = vld [vmem:[#allocation70_spill] sm:$0xff] }
 0x3bf   : > { %4539 = vpow2.f32 %v1552_v7  ;;  %v1811_v55 = vsub.f32 %v7056_v13, %v6194_v60 }
 0x3c0   : > { %v2195_v33 = vpop.xlane.xlu2 %2194  ;;  %v2020_v48 = vmul.f32 1.442695, %v1810_v57  ;;  %4541 = vpow2.f32 %v2016_v1 }
 0x3c1   : > { %v2339_v39 = vadd.f32 %v2195_v33, %v2147_v52  ;;  %v2924_v47 = vpop.f32.mrf.mxu0  ;;  %4543 = vpow2.f32 %v2018_v31  ;;  %v2022_v40 = vmul.f32 1.442695, %v1811_v55 }
 0x3c2   : > { %v3013_v29 = vpop.f32.mrf.mxu1  ;;  %4545 = vpow2.f32 %v2020_v48 }
 0x3c3   : > { %2371 = vst.msk [vmem:[#allocation3 + $0x18] sm:$0xff] %vm362_vm1, %v2339_v39  ;;  %v3014_v52 = vadd.f32 %v3013_v29, %v2924_v47  ;;  %v7057_v39 = vld [vmem:[#allocation71_spill] sm:$0xff]  ;;  %v2606_v29 = vmul.f32 %v6201_v56, %v2414_v20  ;;  %v2415_v56 = vld [vmem:[#allocation4 + $0x78] sm:$0xff] }
 0x3c7   : > { %v2215_v26 = vpop.xlane.xlu0 %2214 }
 0x3c8   : > { %v2343_v54 = vadd.f32 %v2215_v26, %v2151_v61  ;;  %v1676_v63 = vpop.permute.xlu2 %1675  ;;  %v7060_v61 = vld [vmem:[#allocation74_spill] sm:$0xff] }
 0x3c9   : > { %v3102_v33 = vpop.f32.mrf.mxu2  ;;  %v1812_v42 = vsub.f32 %v7057_v39, %v1676_v63  ;;  %v1813_v11 = vsub.f32 %v7058_v23, %v1676_v63  ;;  %v1814_v46 = vsub.f32 %v7059_v18, %v1676_v63  ;;  %v1815_v12 = vsub.f32 %v7060_v61, %v1676_v63  ;;  %v2926_v26 = vpop.f32.mrf.mxu0 }
 0x3ca   : > { %2375 = vst.msk [vmem:[#allocation3 + $0x38] sm:$0xff] %vm362_vm1, %v2343_v54  ;;  %v3103_v9 = vadd.f32 %v3102_v33, %v3014_v52  ;;  %v3191_v7 = vpop.f32.mrf.mxu3  ;;  %v3015_v54 = vpop.f32.mrf.mxu1 }
 0x3cb   : > { %v2024_v60 = vmul.f32 1.442695, %v1812_v42  ;;  %v2026_v57 = vmul.f32 1.442695, %v1813_v11  ;;  %v2028_v47 = vmul.f32 1.442695, %v1814_v46  ;;  %v6286_v23 = vpop.eup %4539  ;;  %v3016_v31 = vadd.f32 %v3015_v54, %v2926_v26  ;;  %v6299_v54 = vpop.permute.xlu1 %2524 }
 0x3cc   : > { %v3192_v13 = vadd.f32 %v3191_v7, %v3103_v9  ;;  %v2030_v39 = vmul.f32 1.442695, %v1815_v12  ;;  %v6289_v1 = vpop.eup %4541 }
 0x3cd   : > { %4547 = vpow2.f32 %v2024_v60  ;;  %v6292_v52 = vpop.eup %4543 }
 0x3ce   : > { %v3250_v18 = vadd.f32 %v3192_v13, %v2606_v29  ;;  %4549 = vpow2.f32 %v2026_v57  ;;  %v6294_v55 = vpop.eup %4545 }
 0x3cf   : > { %4551 = vpow2.f32 %v2028_v47 }
 0x3d0   : > { %3282 = vst.msk [vmem:[#allocation4 + $0x70] sm:$0xff] %vm427_vm0, %v3250_v18  ;;  %4553 = vpow2.f32 %v2030_v39  ;;  %v2416_v39 = vld [vmem:[#allocation4 + $0x80] sm:$0xff] }
 0x3d1   : > { %1695 = vperm.xlu1 %4326, %v5992_v36   ;;  %4555 = vpow2.f32 %v2022_v40  ;;  %v3104_v48 = vpop.f32.mrf.mxu2  ;;  %v2929_v42 = vpop.f32.mrf.mxu0  ;;  %v2607_v36 = vmul.f32 %v6224_v22, %v2415_v56 }
 0x3d2   : > { %v3105_v63 = vadd.f32 %v3104_v48, %v3016_v31  ;;  %v3193_v20 = vpop.f32.mrf.mxu3  ;;  %v3018_v11 = vpop.f32.mrf.mxu1  ;;  %v2117_v48 = vld [vmem:[#allocation3 + $0x28] sm:$0xff] }
 0x3d3   : > { %v4548_v33 = vpop.eup %4547  ;;  %v3019_v22 = vadd.f32 %v3018_v11, %v2929_v42 }
 0x3d4   : > { %v4550_v46 = vpop.eup %4549  ;;  %v3194_v61 = vadd.f32 %v3193_v20, %v3105_v63  ;;  %v2664_v12 = vpack.c.bf16 %v4548_v33, %v6289_v1  ;;  %v2608_v20 = vmul.f32 %v6188_v10, %v2416_v39  ;;  %v7062_v39 = vld [vmem:[#allocation81_spill] sm:$0xff] }
 0x3d5   : > { %v4552_v9 = vpop.eup %4551  ;;  %v2665_v26 = vpack.c.bf16 %v4550_v46, %v6292_v52  ;;  %v2281_v7 = vadd.f32 %v4550_v46, %v4548_v33  ;;  %v7061_v46 = vld [vmem:[#allocation80_spill] sm:$0xff] }
 0x3d6   : > { %v4554_v40 = vpop.eup %4553  ;;  %v3251_v60 = vadd.f32 %v3194_v61, %v2607_v36  ;;  %2938 = vmatmul.bf16.gmra.mxu0 %v2664_v12  ;;  %v2666_v57 = vpack.c.bf16 %v4552_v9, %v6294_v55  ;;  %v2149_v36 = vmul.f32 %v7061_v46, %v2117_v48  ;;  %v7064_v48 = vld [vmem:[#allocation83_spill] sm:$0xff] }
 0x3d7   : > { %v6302_v47 = vpop.eup %4555  ;;  %3027 = vmatmul.bf16.gmra.mxu1 %v2665_v26  ;;  %v2282_v13 = vadd.f32 %v4552_v9, %v2281_v7  ;;  %v1503_v7 = vsub.f32 %v6170_v41, %v6174_v37  ;;  %v1820_v41 = vsub.f32 %v7062_v39, %v6252_v3 }
 0x3d8   : > { %3283 = vst.msk [vmem:[#allocation4 + $0x78] sm:$0xff] %vm427_vm0, %v3251_v60  ;;  %3116 = vmatmul.bf16.gmra.mxu2 %v2666_v57  ;;  %v2667_v29 = vpack.c.bf16 %v4554_v40, %v6302_v47 }
 0x3d9   : > { %2554 = vperm.xlu1 %4326, %v6286_v23   ;;  %v3107_v18 = vpop.f32.mrf.mxu2  ;;  %v6307_v63 = vadd.f32 %v4554_v40, %v2282_v13  ;;  %v2931_v42 = vpop.f32.mrf.mxu0  ;;  %v2417_v40 = vld [vmem:[#allocation4 + $0x88] sm:$0xff] }
 0x3da   : > { %3205 = vmatmul.bf16.gmra.mxu3 %v2667_v29  ;;  %v3108_v31 = vadd.f32 %v3107_v18, %v3019_v22  ;;  %v3196_v56 = vpop.f32.mrf.mxu3  ;;  %v3020_v11 = vpop.f32.mrf.mxu1  ;;  %v2609_v57 = vmul.f32 %v6260_v45, %v2417_v40  ;;  %v1566_v29 = vmul.f32 1.442695, %v1503_v7  ;;  %v7068_v40 = vld [vmem:[#allocation77_spill] sm:$0xff] }
 0x3db   : > { %v3021_v26 = vadd.f32 %v3020_v11, %v2931_v42  ;;  %v2040_v11 = vmul.f32 1.442695, %v1820_v41 }
 0x3dc   : > { %v3197_v33 = vadd.f32 %v3196_v56, %v3108_v31  ;;  %4557 = vpow2.f32 %v1566_v29  ;;  %v7063_v31 = vld [vmem:[#allocation82_spill] sm:$0xff] }
 0x3dd   : > { %v1821_v56 = vsub.f32 %v7063_v31, %v6252_v3 }
 0x3de   : > { %v3252_v61 = vadd.f32 %v3197_v33, %v2608_v20  ;;  %v1822_v20 = vsub.f32 %v7064_v48, %v6252_v3  ;;  %v7065_v33 = vld [vmem:[#allocation84_spill] sm:$0xff] }
 0x3df   : > { %v1823_v42 = vsub.f32 %v7065_v33, %v6252_v3  ;;  %v2042_v46 = vmul.f32 1.442695, %v1821_v56 }
 0x3e0   : > { %2244 = vadd.xlane.f32.xlu0 %v6052_v8  ;;  %v2205_v12 = vpop.xlane.xlu1 %2204  ;;  %2224 = vadd.xlane.f32.xlu2 %v5984_v0  ;;  %3284 = vst.msk [vmem:[#allocation4 + $0x80] sm:$0xff] %vm427_vm0, %v3252_v61  ;;  %v1498_v0 = vsub.f32 %v6043_v30, %v6046_v49  ;;  %v2044_v30 = vmul.f32 1.442695, %v1822_v20  ;;  %v6332_v61 = vpop.permute.xlu0 %1700 }
 0x3e1   : > { %v2341_v9 = vadd.f32 %v2205_v12, %v2149_v36  ;;  %v3109_v10 = vpop.f32.mrf.mxu2  ;;  %v2046_v49 = vmul.f32 1.442695, %v1823_v42  ;;  %v7066_v12 = vld [vmem:[#allocation75_spill] sm:$0xff] }
 0x3e2   : > { %v3110_v8 = vadd.f32 %v3109_v10, %v3021_v26  ;;  %v3198_v60 = vpop.f32.mrf.mxu3  ;;  %v6323_v18 = vpop.eup %4557  ;;  %v1556_v45 = vmul.f32 1.442695, %v1498_v0  ;;  %v7067_v26 = vld [vmem:[#allocation76_spill] sm:$0xff] }
 0x3e3   : > { %2373 = vst.msk [vmem:[#allocation3 + $0x28] sm:$0xff] %vm362_vm1, %v2341_v9 }
 0x3e4   : > { %v3199_v22 = vadd.f32 %v3198_v60, %v3110_v8  ;;  %4559 = vpow2.f32 %v1556_v45  ;;  %v7069_v8 = vld [vmem:[#allocation79_spill] sm:$0xff]  ;;  %v6350_v45 = vpop.permute.xlu2 %2534 }
 0x3e5   : > { %4561 = vpow2.f32 %v2040_v11 }
 0x3e6   : > { %v3253_v13 = vadd.f32 %v3199_v22, %v2609_v57  ;;  %4563 = vpow2.f32 %v2042_v46 }
 0x3e7   : > { %4565 = vpow2.f32 %v2044_v30 }
 0x3e8   : > { %3285 = vst.msk [vmem:[#allocation4 + $0x88] sm:$0xff] %vm427_vm0, %v3253_v13  ;;  %4567 = vpow2.f32 %v2046_v49  ;;  %v6352_v48 = vpop.permute.xlu0 %2559 }
 0x3ea   : > { %v6339_v13 = vpop.eup %4559 }
 0x3eb   : > { %v6341_v0 = vpop.eup %4561 }
 0x3ec   : > { %v6343_v39 = vpop.eup %4563 }
 0x3ed   : > { %v6345_v41 = vpop.eup %4565 }
 0x3ee   : > { %v6348_v31 = vpop.eup %4567 }
 0x3f4   : > { %2589 = vperm.xlu0 %4325, %v6323_v18  }
 0x3f8   : > { %v1681_v36 = vpop.permute.xlu1 %1680  ;;  %1705 = vperm.xlu2 %4324, %v6027_v58  }
 0x3f9   : > { %v1816_v9 = vsub.f32 %v7066_v12, %v1681_v36  ;;  %v1817_v7 = vsub.f32 %v7067_v26, %v1681_v36  ;;  %v1818_v10 = vsub.f32 %v7068_v40, %v1681_v36  ;;  %v1819_v60 = vsub.f32 %v7069_v8, %v1681_v36  ;;  %v2118_v12 = vld [vmem:[#allocation3 + $0x30] sm:$0xff] }
 0x3fb   : > { %v2032_v3 = vmul.f32 1.442695, %v1816_v9  ;;  %v2034_v57 = vmul.f32 1.442695, %v1817_v7  ;;  %v2036_v22 = vmul.f32 1.442695, %v1818_v10 }
 0x3fc   : > { %v2038_v29 = vmul.f32 1.442695, %v1819_v60  ;;  %v2122_v9 = vld [vmem:[#allocation3 + $0x50] sm:$0xff]  ;;  %v7071_v10 = vld [vmem:[#allocation100_spill] sm:$0xff] }
 0x3fd   : > { %4569 = vpow2.f32 %v2032_v3  ;;  %v2154_v8 = vmul.f32 %v7071_v10, %v2122_v9 }
 0x3fe   : > { %4571 = vpow2.f32 %v2034_v57 }
 0x3ff   : > { %4573 = vpow2.f32 %v2036_v22 }
 0x400   : > { %4575 = vpow2.f32 %v2038_v29  ;;  %2564 = vperm.xlu2 %4324, %v6339_v13  }
 0x403   : > { %v4570_v56 = vpop.eup %4569  ;;  %2234 = vadd.xlane.f32.xlu1 %v5989_v19  ;;  %v7070_v19 = vld [vmem:[#allocation87_spill] sm:$0xff] }
 0x404   : > { %v4572_v20 = vpop.eup %4571  ;;  %v2668_v33 = vpack.c.bf16 %v6341_v0, %v4570_v56  ;;  %v2150_v40 = vmul.f32 %v7070_v19, %v2118_v12 }
 0x405   : > { %v4574_v42 = vpop.eup %4573  ;;  %v2669_v11 = vpack.c.bf16 %v6343_v39, %v4572_v20  ;;  %v2286_v46 = vadd.f32 %v4572_v20, %v4570_v56  ;;  %v7072_v56 = vld [vmem:[#allocation85_spill] sm:$0xff] }
 0x406   : > { %v4576_v30 = vpop.eup %4575  ;;  %2943 = vmatmul.bf16.gmra.mxu0 %v2668_v33  ;;  %v2670_v49 = vpack.c.bf16 %v6345_v41, %v4574_v42  ;;  %v7073_v33 = vld [vmem:[#allocation86_spill] sm:$0xff] }
 0x407   : > { %3032 = vmatmul.bf16.gmra.mxu1 %v2669_v11  ;;  %v2671_v36 = vpack.c.bf16 %v6348_v31, %v4576_v30  ;;  %v2287_v26 = vadd.f32 %v4574_v42, %v2286_v46  ;;  %v7074_v11 = vld [vmem:[#allocation88_spill] sm:$0xff] }
 0x408   : > { %3121 = vmatmul.bf16.gmra.mxu2 %v2670_v49 }
 0x409   : > { %3210 = vmatmul.bf16.gmra.mxu3 %v2671_v36  ;;  %v6359_v7 = vadd.f32 %v4576_v30, %v2287_v26  ;;  %v2210_v60 = vpop.xlane.xlu2 %2209  ;;  %v7075_v30 = vld [vmem:[#allocation89_spill] sm:$0xff]  ;;  %v1499_v36 = vsub.f32 %v6020_v15, %v6027_v58 }
 0x40a   : > { %v2342_v57 = vadd.f32 %v2210_v60, %v2150_v40 }
 0x40b   : > { %v1558_v40 = vmul.f32 1.442695, %v1499_v36 }
 0x40c   : > { %2374 = vst.msk [vmem:[#allocation3 + $0x30] sm:$0xff] %vm362_vm1, %v2342_v57  ;;  %v6384_v57 = vpop.permute.xlu1 %2539 }
 0x40d   : > { %v2230_v3 = vpop.xlane.xlu0 %2229 }
 0x40e   : > { %v2346_v22 = vadd.f32 %v2230_v3, %v2154_v8 }
 0x410   : > { %2378 = vst.msk [vmem:[#allocation3 + $0x50] sm:$0xff] %vm362_vm1, %v2346_v22  ;;  %v3334_v22 = vld [vmem:[#allocation3 + $0x10] sm:$0xff] }
 0x411   : > { %v1691_v29 = vpop.permute.xlu2 %1690 }
 0x412   : > { %v1824_v20 = vsub.f32 %v7072_v56, %v1691_v29  ;;  %v1825_v42 = vsub.f32 %v7073_v33, %v1691_v29  ;;  %v1826_v46 = vsub.f32 %v7074_v11, %v1691_v29  ;;  %v1827_v49 = vsub.f32 %v7075_v30, %v1691_v29  ;;  %v2120_v29 = vld [vmem:[#allocation3 + $0x40] sm:$0xff] }
 0x413   : > { %v7077_v56 = vld [vmem:[#allocation105_spill] sm:$0xff] }
 0x414   : > { %v2048_v12 = vmul.f32 1.442695, %v1824_v20  ;;  %v2050_v9 = vmul.f32 1.442695, %v1825_v42  ;;  %v2052_v26 = vmul.f32 1.442695, %v1826_v46  ;;  %v2152_v20 = vmul.f32 %v7077_v56, %v2120_v29 }
 0x415   : > { %v2054_v19 = vmul.f32 1.442695, %v1827_v49  ;;  %v1501_v49 = vsub.f32 %v6108_v35, %v6114_v27  ;;  %v7079_v35 = vld [vmem:[#allocation91_spill] sm:$0xff] }
 0x416   : > { %4577 = vpow2.f32 %v2048_v12 }
 0x417   : > { %4579 = vpow2.f32 %v2050_v9  ;;  %v1562_v36 = vmul.f32 1.442695, %v1501_v49 }
 0x418   : > { %4581 = vpow2.f32 %v2052_v26  ;;  %v2418_v26 = vld [vmem:[#allocation4 + $0x90] sm:$0xff] }
 0x419   : > { %4583 = vpow2.f32 %v2054_v19 }
 0x41a   : > { %4585 = vpow2.f32 %v1558_v40 }
 0x41b   : > { %4587 = vrcp.f32 %v3334_v22 }
 0x41c   : > { %1710 = vperm.xlu1 %4326, %v6071_v32   ;;  %v6373_v10 = vpop.eup %4577  ;;  %4589 = vpow2.f32 %v1562_v36 }
 0x41d   : > { %v6375_v8 = vpop.eup %4579 }
 0x41e   : > { %2259 = vadd.xlane.f32.xlu0 %v6133_v34  ;;  %v2296_v15 = vadd.f32 %v6375_v8, %v6373_v10  ;;  %v6379_v58 = vpop.eup %4581 }
 0x41f   : > { %v6382_v3 = vpop.eup %4583 }
 0x420   : > { %v2297_v60 = vadd.f32 %v6379_v58, %v2296_v15  ;;  %v6386_v34 = vpop.eup %4585  ;;  %v6397_v12 = vpop.permute.xlu0 %1715  ;;  %v2610_v15 = vmul.f32 %v6299_v54, %v2418_v26 }
 0x421   : > { %7076 = vst [vmem:[#allocation12_spill] sm:$0xff] %v6386_v34  ;;  %v4588_v11 = vpop.eup %4587 }
 0x422   : > { %v6389_v32 = vadd.f32 %v6382_v3, %v2297_v60 }
 0x424   : > { %2569 = vperm.xlu1 %4326, %v6386_v34  }
 0x429   : > { %2239 = vadd.xlane.f32.xlu2 %v6065_v38 }
 0x42b   : > { %v2220_v33 = vpop.xlane.xlu1 %2219 }
 0x42c   : > { %v2344_v42 = vadd.f32 %v2220_v33, %v2152_v20  ;;  %v7078_v20 = vld [vmem:[#allocation90_spill] sm:$0xff] }
 0x42e   : > { %2376 = vst.msk [vmem:[#allocation3 + $0x40] sm:$0xff] %vm362_vm1, %v2344_v42  ;;  %v7080_v42 = vld [vmem:[#allocation92_spill] sm:$0xff] }
 0x432   : > { %3440 = vperm.xlu0 %4325, %v4588_v11  }
 0x438   : > { %v2934_v46 = vpop.f32.mrf.mxu0 }
 0x439   : > { %v3023_v30 = vpop.f32.mrf.mxu1 }
 0x43a   : > { %v3024_v9 = vadd.f32 %v3023_v30, %v2934_v46  ;;  %v7081_v46 = vld [vmem:[#allocation93_spill] sm:$0xff] }
 0x440   : > { %v3112_v19 = vpop.f32.mrf.mxu2  ;;  %v2936_v29 = vpop.f32.mrf.mxu0 }
 0x441   : > { %v3113_v38 = vadd.f32 %v3112_v19, %v3024_v9  ;;  %v3201_v40 = vpop.f32.mrf.mxu3  ;;  %1720 = vperm.xlu2 %4324, %v6089_v50   ;;  %v3025_v56 = vpop.f32.mrf.mxu1  ;;  %v2246_v9 = vadd.f32 %v6149_v43, %v6146_v28 }
 0x442   : > { %v3026_v54 = vadd.f32 %v3025_v56, %v2936_v29  ;;  %v6415_v29 = vpop.permute.xlu2 %2549 }
 0x443   : > { %v3202_v60 = vadd.f32 %v3201_v40, %v3113_v38  ;;  %v1696_v22 = vpop.permute.xlu1 %1695  ;;  %v2419_v38 = vld [vmem:[#allocation4 + $0x98] sm:$0xff] }
 0x444   : > { %v1828_v33 = vsub.f32 %v7078_v20, %v1696_v22  ;;  %v1829_v27 = vsub.f32 %v7079_v35, %v1696_v22  ;;  %v1830_v11 = vsub.f32 %v7080_v42, %v1696_v22  ;;  %v1831_v30 = vsub.f32 %v7081_v46, %v1696_v22  ;;  %v6408_v20 = vpop.eup %4589  ;;  %v6410_v35 = vpop.permute.xlu0 %2574  ;;  %v7082_v46 = vld [vmem:[#allocation61_spill] sm:$0xff] }
 0x445   : > { %v3254_v49 = vadd.f32 %v3202_v60, %v2610_v15  ;;  %v2247_v15 = vadd.f32 %v6152_v14, %v2246_v9  ;;  %v2611_v43 = vmul.f32 %v6203_v59, %v2419_v38 }
 0x446   : > { %v2056_v19 = vmul.f32 1.442695, %v1828_v33  ;;  %v2058_v36 = vmul.f32 1.442695, %v1829_v27  ;;  %v2060_v34 = vmul.f32 1.442695, %v1830_v11 }
 0x447   : > { %3286 = vst.msk [vmem:[#allocation4 + $0x90] sm:$0xff] %vm427_vm0, %v3254_v49  ;;  %v2062_v26 = vmul.f32 1.442695, %v1831_v30  ;;  %v2248_v33 = vadd.f32 %v6154_v17, %v2247_v15  ;;  %v2125_v27 = vld [vmem:[#allocation3 + $0x68] sm:$0xff] }
 0x448   : > { %4591 = vpow2.f32 %v2056_v19  ;;  %v3114_v40 = vpop.f32.mrf.mxu2  ;;  %v2157_v30 = vmul.f32 %v7082_v46, %v2125_v27  ;;  %v2121_v49 = vld [vmem:[#allocation3 + $0x48] sm:$0xff] }
 0x449   : > { %4593 = vpow2.f32 %v2058_v36  ;;  %v3115_v22 = vadd.f32 %v3114_v40, %v3026_v54  ;;  %v3203_v28 = vpop.f32.mrf.mxu3  ;;  %2579 = vperm.xlu2 %4324, %v6408_v20   ;;  %v7083_v40 = vld [vmem:[#allocation117_spill] sm:$0xff] }
 0x44a   : > { %4595 = vpow2.f32 %v2060_v34 }
 0x44b   : > { %4597 = vpow2.f32 %v2062_v26  ;;  %v3204_v60 = vadd.f32 %v3203_v28, %v3115_v22  ;;  %v7084_v22 = vld [vmem:[#allocation94_spill] sm:$0xff] }
 0x44c   : > { %v1832_v15 = vsub.f32 %v7084_v22, %v6332_v61 }
 0x44d   : > { %v3255_v56 = vadd.f32 %v3204_v60, %v2611_v43 }
 0x44e   : > { %v4592_v42 = vpop.eup %4591  ;;  %2249 = vadd.xlane.f32.xlu1 %v2248_v33 }
 0x44f   : > { %v4594_v11 = vpop.eup %4593  ;;  %3287 = vst.msk [vmem:[#allocation4 + $0x98] sm:$0xff] %vm427_vm0, %v3255_v56  ;;  %v2672_v14 = vpack.c.bf16 %v4592_v42, %v6373_v10  ;;  %v2153_v10 = vmul.f32 %v7083_v40, %v2121_v49  ;;  %v7086_v56 = vld [vmem:[#allocation96_spill] sm:$0xff] }
 0x450   : > { %v4596_v34 = vpop.eup %4595  ;;  %v2673_v59 = vpack.c.bf16 %v4594_v11, %v6375_v8  ;;  %v2301_v9 = vadd.f32 %v4594_v11, %v4592_v42  ;;  %v7087_v42 = vld [vmem:[#allocation97_spill] sm:$0xff] }
 0x451   : > { %v4598_v19 = vpop.eup %4597  ;;  %2948 = vmatmul.bf16.gmra.mxu0 %v2672_v14  ;;  %v2674_v17 = vpack.c.bf16 %v4596_v34, %v6379_v58  ;;  %v7085_v58 = vld [vmem:[#allocation95_spill] sm:$0xff]  ;;  %v1835_v11 = vsub.f32 %v7087_v42, %v6332_v61  ;;  %v2064_v14 = vmul.f32 1.442695, %v1832_v15 }
 0x452   : > { %3037 = vmatmul.bf16.gmra.mxu1 %v2673_v59  ;;  %v2675_v26 = vpack.c.bf16 %v4598_v19, %v6382_v3  ;;  %v2302_v38 = vadd.f32 %v4596_v34, %v2301_v9  ;;  %v1833_v60 = vsub.f32 %v7085_v58, %v6332_v61  ;;  %v1834_v3 = vsub.f32 %v7086_v56, %v6332_v61  ;;  %v2420_v9 = vld [vmem:[#allocation4 + $0xa0] sm:$0xff] }
 0x453   : > { %v2245_v36 = vpop.xlane.xlu0 %2244  ;;  %3126 = vmatmul.bf16.gmra.mxu2 %v2674_v17  ;;  %v2225_v8 = vpop.xlane.xlu2 %2224  ;;  %4599 = vpow2.f32 %v2064_v14  ;;  %v2612_v58 = vmul.f32 %v6350_v45, %v2420_v9 }
 0x454   : > { %v2349_v54 = vadd.f32 %v2245_v36, %v2157_v30  ;;  %3215 = vmatmul.bf16.gmra.mxu3 %v2675_v26  ;;  %v6428_v28 = vadd.f32 %v4598_v19, %v2302_v38  ;;  %v2345_v43 = vadd.f32 %v2225_v8, %v2153_v10  ;;  %v2939_v33 = vpop.f32.mrf.mxu0  ;;  %v3028_v27 = vpop.f32.mrf.mxu1  ;;  %v2066_v34 = vmul.f32 1.442695, %v1833_v60  ;;  %v7088_v36 = vld [vmem:[#allocation98_spill] sm:$0xff]  ;;  %v7090_v38 = vld [vmem:[#allocation101_spill] sm:$0xff] }
 0x455   : > { %v2068_v46 = vmul.f32 1.442695, %v1834_v3  ;;  %v2070_v30 = vmul.f32 1.442695, %v1835_v11  ;;  %v3029_v59 = vadd.f32 %v3028_v27, %v2939_v33  ;;  %v7091_v10 = vld [vmem:[#allocation102_spill] sm:$0xff]  ;;  %v1502_v3 = vsub.f32 %v6085_v62, %v6089_v50 }
 0x456   : > { %2381 = vst.msk [vmem:[#allocation3 + $0x68] sm:$0xff] %vm362_vm1, %v2349_v54  ;;  %v7089_v54 = vld [vmem:[#allocation99_spill] sm:$0xff]  ;;  %4601 = vpow2.f32 %v2066_v34  ;;  %v3337_v34 = vld [vmem:[#allocation3 + $0x28] sm:$0xff] }
 0x457   : > { %2377 = vst.msk [vmem:[#allocation3 + $0x48] sm:$0xff] %vm362_vm1, %v2345_v43  ;;  %4603 = vpow2.f32 %v2068_v46 }
 0x458   : > { %4605 = vpow2.f32 %v2070_v30  ;;  %v1564_v30 = vmul.f32 1.442695, %v1502_v3 }
 0x459   : > { %v6445_v42 = vpop.eup %4599 }
 0x45b   : > { %v1706_v49 = vpop.permute.xlu2 %1705  ;;  %v3117_v19 = vpop.f32.mrf.mxu2 }
 0x45c   : > { %2274 = vadd.xlane.f32.xlu0 %v6265_v53  ;;  %v1836_v17 = vsub.f32 %v7088_v36, %v1706_v49  ;;  %v1837_v26 = vsub.f32 %v7089_v54, %v1706_v49  ;;  %v1838_v40 = vsub.f32 %v7090_v38, %v1706_v49  ;;  %v1839_v22 = vsub.f32 %v7091_v10, %v1706_v49  ;;  %v2941_v33 = vpop.f32.mrf.mxu0  ;;  %v3030_v27 = vpop.f32.mrf.mxu1 }
 0x45d   : > { %v3118_v61 = vadd.f32 %v3117_v19, %v3029_v59  ;;  %v3206_v15 = vpop.f32.mrf.mxu3  ;;  %v6447_v14 = vpop.eup %4601  ;;  %v3031_v45 = vadd.f32 %v3030_v27, %v2941_v33  ;;  %v2421_v59 = vld [vmem:[#allocation4 + $0xa8] sm:$0xff] }
 0x45e   : > { %v2072_v53 = vmul.f32 1.442695, %v1836_v17  ;;  %v2074_v8 = vmul.f32 1.442695, %v1837_v26  ;;  %v2076_v43 = vmul.f32 1.442695, %v1838_v40  ;;  %v6450_v46 = vpop.eup %4603  ;;  %v2613_v17 = vmul.f32 %v6384_v57, %v2421_v59 }
 0x45f   : > { %v3207_v60 = vadd.f32 %v3206_v15, %v3118_v61  ;;  %v2078_v56 = vmul.f32 1.442695, %v1839_v22  ;;  %v6452_v50 = vpop.eup %4605 }
 0x460   : > { %4607 = vpow2.f32 %v2072_v53 }
 0x461   : > { %v3256_v11 = vadd.f32 %v3207_v60, %v2612_v58  ;;  %4609 = vpow2.f32 %v2074_v8  ;;  %v6465_v58 = vpop.permute.xlu1 %2554  ;;  %v2123_v60 = vld [vmem:[#allocation3 + $0x58] sm:$0xff] }
 0x462   : > { %4611 = vpow2.f32 %v2076_v43 }
 0x463   : > { %3288 = vst.msk [vmem:[#allocation4 + $0xa0] sm:$0xff] %vm427_vm0, %v3256_v11  ;;  %4613 = vpow2.f32 %v2078_v56  ;;  %v3119_v62 = vpop.f32.mrf.mxu2  ;;  %v7092_v56 = vld [vmem:[#allocation67_spill] sm:$0xff]  ;;  %v3332_v11 = vld [vmem:[#allocation3] sm:$0xff] }
 0x464   : > { %v3120_v49 = vadd.f32 %v3119_v62, %v3031_v45  ;;  %4615 = vrcp.f32 %v3337_v34  ;;  %v2155_v3 = vmul.f32 %v7092_v56, %v2123_v60  ;;  %v1845_v62 = vsub.f32 %v5817_v4, %v6397_v12  ;;  %v7095_v56 = vld [vmem:[#allocation17_spill] sm:$0xff] }
 0x465   : > { %v3208_v19 = vpop.f32.mrf.mxu3  ;;  %4617 = vpow2.f32 %v1564_v30  ;;  %v1844_v30 = vsub.f32 %v5815_v51, %v6397_v12  ;;  %v2128_v51 = vld [vmem:[#allocation3 + $0x80] sm:$0xff] }
 0x466   : > { %v4608_v9 = vpop.eup %4607  ;;  %v3209_v54 = vadd.f32 %v3208_v19, %v3120_v49  ;;  %4619 = vrcp.f32 %v3332_v11  ;;  %v6473_v59 = vpop.permute.xlu0 %2589  ;;  %v7093_v49 = vld [vmem:[#allocation112_spill] sm:$0xff] }
 0x467   : > { %v4610_v36 = vpop.eup %4609  ;;  %1725 = vperm.xlu1 %4326, %v6174_v37   ;;  %v2676_v26 = vpack.c.bf16 %v4608_v9, %v6445_v42 }
 0x468   : > { %v4612_v38 = vpop.eup %4611  ;;  %v2677_v40 = vpack.c.bf16 %v4610_v36, %v6447_v14  ;;  %v2311_v10 = vadd.f32 %v4610_v36, %v4608_v9  ;;  %v3257_v61 = vadd.f32 %v3209_v54, %v2613_v17  ;;  %v1846_v9 = vsub.f32 %v7093_v49, %v6397_v12  ;;  %v2422_v36 = vld [vmem:[#allocation4 + $0xb0] sm:$0xff]  ;;  %v7094_v17 = vld [vmem:[#allocation113_spill] sm:$0xff] }
 0x469   : > { %v4614_v22 = vpop.eup %4613  ;;  %2953 = vmatmul.bf16.gmra.mxu0 %v2676_v26  ;;  %v2678_v15 = vpack.c.bf16 %v4612_v38, %v6450_v46  ;;  %v1847_v54 = vsub.f32 %v7094_v17, %v6397_v12  ;;  %v2088_v26 = vmul.f32 1.442695, %v1844_v30  ;;  %v7098_v30 = vld [vmem:[#allocation106_spill] sm:$0xff]  ;;  %v2423_v17 = vld [vmem:[#allocation4 + $0xb8] sm:$0xff] }
 0x46a   : > { %3042 = vmatmul.bf16.gmra.mxu1 %v2677_v40  ;;  %v2679_v53 = vpack.c.bf16 %v4614_v22, %v6452_v50  ;;  %v2312_v8 = vadd.f32 %v4612_v38, %v2311_v10  ;;  %3289 = vst.msk [vmem:[#allocation4 + $0xa8] sm:$0xff] %vm427_vm0, %v3257_v61  ;;  %v4616_v37 = vpop.eup %4615  ;;  %v2614_v61 = vmul.f32 %v6263_v44, %v2422_v36 }
 0x46b   : > { %3131 = vmatmul.bf16.gmra.mxu2 %v2678_v15  ;;  %v6463_v43 = vpop.eup %4617  ;;  %v2092_v15 = vmul.f32 1.442695, %v1846_v9  ;;  %4621 = vpow2.f32 %v2088_v26 }
 0x46c   : > { %3220 = vmatmul.bf16.gmra.mxu3 %v2679_v53  ;;  %v6461_v57 = vadd.f32 %v4614_v22, %v2312_v8  ;;  %v2090_v22 = vmul.f32 1.442695, %v1845_v62  ;;  %v7099_v62 = vld [vmem:[#allocation107_spill] sm:$0xff] }
 0x46e   : > { %4623 = vpow2.f32 %v2090_v22 }
 0x46f   : > { %2584 = vperm.xlu1 %4326, %v6463_v43   ;;  %4625 = vpow2.f32 %v2092_v15 }
 0x470   : > { %3455 = vperm.xlu0 %4325, %v4616_v37   ;;  %v2094_v37 = vmul.f32 1.442695, %v1847_v54 }
 0x472   : > { %2254 = vadd.xlane.f32.xlu2 %v6163_v5  ;;  %v4620_v5 = vpop.eup %4619  ;;  %4627 = vpow2.f32 %v2094_v37 }
 0x476   : > { %v2235_v33 = vpop.xlane.xlu1 %2234 }
 0x477   : > { %v2347_v27 = vadd.f32 %v2235_v33, %v2155_v3  ;;  %v2160_v3 = vmul.f32 %v7095_v56, %v2128_v51  ;;  %v6491_v51 = vpop.permute.xlu2 %2564 }
 0x479   : > { %2379 = vst.msk [vmem:[#allocation3 + $0x58] sm:$0xff] %vm362_vm1, %v2347_v27  ;;  %v7096_v27 = vld [vmem:[#allocation104_spill] sm:$0xff] }
 0x483   : > { %v2944_v45 = vpop.f32.mrf.mxu0 }
 0x484   : > { %v3033_v34 = vpop.f32.mrf.mxu1 }
 0x485   : > { %v3034_v19 = vadd.f32 %v3033_v34, %v2944_v45  ;;  %v7097_v45 = vld [vmem:[#allocation103_spill] sm:$0xff] }
 0x48a   : > { %3430 = vperm.xlu2 %4324, %v4620_v5  }
 0x48b   : > { %v3122_v38 = vpop.f32.mrf.mxu2  ;;  %v2946_v53 = vpop.f32.mrf.mxu0 }
 0x48c   : > { %v3123_v40 = vadd.f32 %v3122_v38, %v3034_v19  ;;  %v3211_v10 = vpop.f32.mrf.mxu3  ;;  %v3035_v8 = vpop.f32.mrf.mxu1 }
 0x48d   : > { %v3036_v9 = vadd.f32 %v3035_v8, %v2946_v53 }
 0x48e   : > { %v3212_v4 = vadd.f32 %v3211_v10, %v3123_v40  ;;  %v1711_v60 = vpop.permute.xlu1 %1710  ;;  %v6489_v10 = vpop.eup %4621 }
 0x48f   : > { %v1840_v11 = vsub.f32 %v7096_v27, %v1711_v60  ;;  %v1841_v34 = vsub.f32 %v7097_v45, %v1711_v60  ;;  %v1842_v5 = vsub.f32 %v7098_v30, %v1711_v60  ;;  %v1843_v44 = vsub.f32 %v7099_v62, %v1711_v60  ;;  %v2124_v60 = vld [vmem:[#allocation3 + $0x60] sm:$0xff]  ;;  %v7100_v27 = vld [vmem:[#allocation16_spill] sm:$0xff] }
 0x490   : > { %v3258_v12 = vadd.f32 %v3212_v4, %v2614_v61  ;;  %v2615_v61 = vmul.f32 %v6415_v29, %v2423_v17  ;;  %v6494_v4 = vpop.eup %4623 }
 0x491   : > { %v2260_v33 = vpop.xlane.xlu0 %2259  ;;  %v2080_v19 = vmul.f32 1.442695, %v1840_v11  ;;  %v2082_v36 = vmul.f32 1.442695, %v1841_v34  ;;  %v2084_v54 = vmul.f32 1.442695, %v1842_v5  ;;  %v6496_v53 = vpop.eup %4625  ;;  %v2156_v11 = vmul.f32 %v7100_v27, %v2124_v60 }
 0x492   : > { %v2352_v49 = vadd.f32 %v2260_v33, %v2160_v3  ;;  %3290 = vst.msk [vmem:[#allocation4 + $0xb0] sm:$0xff] %vm427_vm0, %v3258_v12  ;;  %v2086_v26 = vmul.f32 1.442695, %v1843_v44  ;;  %v6499_v37 = vpop.eup %4627 }
 0x493   : > { %v3124_v38 = vpop.f32.mrf.mxu2  ;;  %4629 = vpow2.f32 %v2080_v19  ;;  %v3340_v19 = vld [vmem:[#allocation3 + $0x40] sm:$0xff] }
 0x494   : > { %2384 = vst.msk [vmem:[#allocation3 + $0x80] sm:$0xff] %vm362_vm1, %v2352_v49  ;;  %v3125_v40 = vadd.f32 %v3124_v38, %v3036_v9  ;;  %4631 = vpow2.f32 %v2082_v36  ;;  %v3213_v22 = vpop.f32.mrf.mxu3  ;;  %v3398_v49 = vld [vmem:[#allocation4 + $0x10] sm:$0xff] }
 0x495   : > { %4633 = vpow2.f32 %v2084_v54 }
 0x496   : > { %v3214_v15 = vadd.f32 %v3213_v22, %v3125_v40  ;;  %4635 = vpow2.f32 %v2086_v26  ;;  %v7101_v26 = vld [vmem:[#allocation114_spill] sm:$0xff]  ;;  %v7102_v40 = vld [vmem:[#allocation115_spill] sm:$0xff] }
 0x497   : > { %4637 = vrcp.f32 %v3340_v19  ;;  %v7105_v19 = vld [vmem:[#allocation59_spill] sm:$0xff] }
 0x498   : > { %v3259_v8 = vadd.f32 %v3214_v15, %v2615_v61  ;;  %v7103_v61 = vld [vmem:[#allocation116_spill] sm:$0xff] }
 0x499   : > { %v4630_v56 = vpop.eup %4629  ;;  %2264 = vadd.xlane.f32.xlu1 %v6166_v25 }
 0x49a   : > { %2289 = vadd.xlane.f32.xlu0 %v6359_v7  ;;  %3291 = vst.msk [vmem:[#allocation4 + $0xb8] sm:$0xff] %vm427_vm0, %v3259_v8  ;;  %v4632_v3 = vpop.eup %4631  ;;  %v2680_v29 = vpack.c.bf16 %v6489_v10, %v4630_v56  ;;  %v7104_v8 = vld [vmem:[#allocation5_spill] sm:$0xff] }
 0x49b   : > { %v4634_v33 = vpop.eup %4633  ;;  %v2681_v12 = vpack.c.bf16 %v6494_v4, %v4632_v3  ;;  %v2316_v45 = vadd.f32 %v4632_v3, %v4630_v56 }
 0x49c   : > { %v4636_v34 = vpop.eup %4635  ;;  %2958 = vmatmul.bf16.gmra.mxu0 %v2680_v29  ;;  %v2682_v7 = vpack.c.bf16 %v6496_v53, %v4634_v33  ;;  %v2240_v30 = vpop.xlane.xlu2 %2239 }
 0x49d   : > { %3047 = vmatmul.bf16.gmra.mxu1 %v2681_v12  ;;  %v2683_v5 = vpack.c.bf16 %v6499_v37, %v4636_v34  ;;  %v2348_v62 = vadd.f32 %v2240_v30, %v2156_v11  ;;  %v2317_v25 = vadd.f32 %v4634_v33, %v2316_v45  ;;  %v3333_v33 = vld [vmem:[#allocation3 + $0x8] sm:$0xff]  ;;  %v4638_v12 = vpop.eup %4637 }
 0x49e   : > { %3136 = vmatmul.bf16.gmra.mxu2 %v2682_v7 }
 0x49f   : > { %3225 = vmatmul.bf16.gmra.mxu3 %v2683_v5  ;;  %2380 = vst.msk [vmem:[#allocation3 + $0x60] sm:$0xff] %vm362_vm1, %v2348_v62  ;;  %v6509_v44 = vadd.f32 %v4636_v34, %v2317_v25 }
 0x4a4   : > { %v3441_v9 = vpop.permute.xlu0 %3440  ;;  %v1721_v54 = vpop.permute.xlu2 %1720 }
 0x4a5   : > { %v3590_v36 = vmul.f32 %v3441_v9, %v3398_v49  ;;  %v1848_v38 = vsub.f32 %v7101_v26, %v1721_v54  ;;  %v1849_v22 = vsub.f32 %v7102_v40, %v1721_v54  ;;  %v1850_v15 = vsub.f32 %v7103_v61, %v1721_v54  ;;  %v6539_v49 = vpop.permute.xlu1 %2569  ;;  %v2126_v9 = vld [vmem:[#allocation3 + $0x70] sm:$0xff]  ;;  %v7106_v40 = vld [vmem:[#allocation6_spill] sm:$0xff] }
 0x4a6   : > { %v1851_v60 = vsub.f32 %v7104_v8, %v1721_v54  ;;  %v3335_v54 = vld [vmem:[#allocation3 + $0x18] sm:$0xff] }
 0x4a7   : > { %v3622_v17 = vpack.c.bf16 %v3590_v36, %v3590_v36  ;;  %v2096_v56 = vmul.f32 1.442695, %v1848_v38  ;;  %v2098_v3 = vmul.f32 1.442695, %v1849_v22  ;;  %v2100_v29 = vmul.f32 1.442695, %v1850_v15 }
 0x4a8   : > { %v2102_v27 = vmul.f32 1.442695, %v1851_v60  ;;  %v2158_v36 = vmul.f32 %v7105_v19, %v2126_v9  ;;  %v2131_v38 = vld [vmem:[#allocation3 + $0x98] sm:$0xff] }
 0x4a9   : > { %3655 = vst.msk [vmem:[%s6516_s8 + $0x8] sm:$0xf] %vm3652_vm2, %v3622_v17  ;;  %4639 = vpow2.f32 %v2096_v56  ;;  %v2163_v22 = vmul.f32 %v7106_v40, %v2131_v38  ;;  %v2276_v56 = vadd.f32 %v6292_v52, %v6289_v1  ;;  %v7108_v52 = vld [vmem:[#allocation119_spill] sm:$0xff] }
 0x4aa   : > { %4641 = vpow2.f32 %v2098_v3 }
 0x4ab   : > { %4643 = vrcp.f32 %v3333_v33 }
 0x4ac   : > { %4645 = vpow2.f32 %v2100_v29  ;;  %v2424_v29 = vld [vmem:[#allocation4 + $0xc0] sm:$0xff] }
 0x4ad   : > { %4647 = vpow2.f32 %v2102_v27 }
 0x4ae   : > { %3470 = vperm.xlu0 %4325, %v4638_v12   ;;  %4649 = vrcp.f32 %v3335_v54  ;;  %v2277_v12 = vadd.f32 %v6294_v55, %v2276_v56 }
 0x4af   : > { %v6524_v11 = vpop.eup %4639 }
 0x4b0   : > { %v6526_v45 = vpop.eup %4641 }
 0x4b1   : > { %v4644_v34 = vpop.eup %4643  ;;  %v2326_v7 = vadd.f32 %v6526_v45, %v6524_v11 }
 0x4b2   : > { %v6530_v30 = vpop.eup %4645  ;;  %3435 = vperm.xlu1 %4326, %v4644_v34  }
 0x4b3   : > { %2269 = vadd.xlane.f32.xlu2 %v6230_v6  ;;  %v2327_v5 = vadd.f32 %v6530_v30, %v2326_v7  ;;  %v6534_v62 = vpop.eup %4647  ;;  %v2616_v7 = vmul.f32 %v6465_v58, %v2424_v29 }
 0x4b4   : > { %v4650_v6 = vpop.eup %4649 }
 0x4b5   : > { %v6537_v25 = vadd.f32 %v6534_v62, %v2327_v5 }
 0x4c1   : > { %v2250_v17 = vpop.xlane.xlu1 %2249 }
 0x4c2   : > { %v2350_v26 = vadd.f32 %v2250_v17, %v2158_v36  ;;  %v2278_v17 = vadd.f32 %v6302_v47, %v2277_v12 }
 0x4c4   : > { %2382 = vst.msk [vmem:[#allocation3 + $0x70] sm:$0xff] %vm362_vm1, %v2350_v26  ;;  %v7107_v26 = vld [vmem:[#allocation118_spill] sm:$0xff] }
 0x4cb   : > { %3445 = vperm.xlu2 %4324, %v4650_v6   ;;  %v7109_v6 = vld [vmem:[#allocation120_spill] sm:$0xff] }
 0x4ce   : > { %v2949_v8 = vpop.f32.mrf.mxu0 }
 0x4cf   : > { %v2275_v61 = vpop.xlane.xlu0 %2274  ;;  %v3038_v60 = vpop.f32.mrf.mxu1 }
 0x4d0   : > { %v2355_v15 = vadd.f32 %v2275_v61, %v2163_v22  ;;  %v3039_v3 = vadd.f32 %v3038_v60, %v2949_v8  ;;  %v6556_v8 = vpop.permute.xlu2 %2579 }
 0x4d2   : > { %2387 = vst.msk [vmem:[#allocation3 + $0x98] sm:$0xff] %vm362_vm1, %v2355_v15  ;;  %v2425_v15 = vld [vmem:[#allocation4 + $0xc8] sm:$0xff] }
 0x4d6   : > { %v3127_v33 = vpop.f32.mrf.mxu2  ;;  %v2951_v9 = vpop.f32.mrf.mxu0 }
 0x4d7   : > { %v3128_v27 = vadd.f32 %v3127_v33, %v3039_v3  ;;  %v3216_v34 = vpop.f32.mrf.mxu3  ;;  %v3040_v19 = vpop.f32.mrf.mxu1  ;;  %v3401_v33 = vld [vmem:[#allocation4 + $0x28] sm:$0xff] }
 0x4d8   : > { %2304 = vadd.xlane.f32.xlu0 %v6428_v28  ;;  %v7110_v28 = vld [vmem:[#allocation121_spill] sm:$0xff]  ;;  %v3041_v55 = vadd.f32 %v3040_v19, %v2951_v9  ;;  %v2127_v9 = vld [vmem:[#allocation3 + $0x78] sm:$0xff] }
 0x4d9   : > { %v3217_v5 = vadd.f32 %v3216_v34, %v3128_v27  ;;  %v1726_v36 = vpop.permute.xlu1 %1725  ;;  %v3343_v27 = vld [vmem:[#allocation3 + $0x58] sm:$0xff]  ;;  %v2617_v34 = vmul.f32 %v6352_v48, %v2425_v15 }
 0x4da   : > { %v1852_v1 = vsub.f32 %v7107_v26, %v1726_v36  ;;  %v1853_v38 = vsub.f32 %v7108_v52, %v1726_v36  ;;  %v1854_v40 = vsub.f32 %v7109_v6, %v1726_v36  ;;  %v1855_v22 = vsub.f32 %v7110_v28, %v1726_v36 }
 0x4db   : > { %v3260_v54 = vadd.f32 %v3217_v5, %v2616_v7 }
 0x4dc   : > { %v2104_v61 = vmul.f32 1.442695, %v1852_v1  ;;  %v2106_v58 = vmul.f32 1.442695, %v1853_v38  ;;  %2279 = vadd.xlane.f32.xlu1 %v2278_v17  ;;  %v2108_v60 = vmul.f32 1.442695, %v1854_v40 }
 0x4dd   : > { %3292 = vst.msk [vmem:[#allocation4 + $0xc0] sm:$0xff] %vm427_vm0, %v3260_v54  ;;  %v2110_v47 = vmul.f32 1.442695, %v1855_v22  ;;  %v7111_v54 = vld [vmem:[#allocation7_spill] sm:$0xff] }
 0x4de   : > { %v3129_v56 = vpop.f32.mrf.mxu2  ;;  %4651 = vpow2.f32 %v2104_v61  ;;  %v2159_v26 = vmul.f32 %v7111_v54, %v2127_v9 }
 0x4df   : > { %v3130_v3 = vadd.f32 %v3129_v56, %v3041_v55  ;;  %4653 = vpow2.f32 %v2106_v58  ;;  %v3218_v29 = vpop.f32.mrf.mxu3 }
 0x4e0   : > { %4655 = vpow2.f32 %v2108_v60 }
 0x4e1   : > { %v3219_v7 = vadd.f32 %v3218_v29, %v3130_v3  ;;  %4657 = vpow2.f32 %v2110_v47  ;;  %v3396_v29 = vld [vmem:[#allocation4] sm:$0xff] }
 0x4e2   : > { %v3456_v12 = vpop.permute.xlu0 %3455  ;;  %4659 = vrcp.f32 %v3343_v27 }
 0x4e3   : > { %v3593_v5 = vmul.f32 %v3456_v12, %v3401_v33  ;;  %v3261_v19 = vadd.f32 %v3219_v7, %v2617_v34 }
 0x4e4   : > { %v4652_v17 = vpop.eup %4651 }
 0x4e5   : > { %v3625_v36 = vpack.c.bf16 %v3593_v5, %v3593_v5  ;;  %3293 = vst.msk [vmem:[#allocation4 + $0xc8] sm:$0xff] %vm427_vm0, %v3261_v19  ;;  %v4654_v1 = vpop.eup %4653  ;;  %v2255_v52 = vpop.xlane.xlu2 %2254  ;;  %v2684_v38 = vpack.c.bf16 %v4652_v17, %v6524_v11 }
 0x4e6   : > { %v4656_v48 = vpop.eup %4655  ;;  %v2351_v6 = vadd.f32 %v2255_v52, %v2159_v26  ;;  %v2685_v40 = vpack.c.bf16 %v4654_v1, %v6526_v45  ;;  %v2331_v28 = vadd.f32 %v4654_v1, %v4652_v17  ;;  %v2954_v58 = vpop.f32.mrf.mxu0  ;;  %v3336_v45 = vld [vmem:[#allocation3 + $0x20] sm:$0xff]  ;;  %v2427_v26 = vld [vmem:[#allocation4 + $0xd8] sm:$0xff] }
 0x4e7   : > { %3658 = vst.msk [vmem:[%s6516_s8 + $0x14] sm:$0xf] %vm3652_vm2, %v3625_v36  ;;  %v4658_v22 = vpop.eup %4657  ;;  %2963 = vmatmul.bf16.gmra.mxu0 %v2684_v38  ;;  %v2686_v55 = vpack.c.bf16 %v4656_v48, %v6530_v30  ;;  %v3043_v15 = vpop.f32.mrf.mxu1  ;;  %v2426_v30 = vld [vmem:[#allocation4 + $0xd0] sm:$0xff]  ;;  %4661 = vrcp.f32 %v3336_v45 }
 0x4e8   : > { %v4660_v61 = vpop.eup %4659  ;;  %2383 = vst.msk [vmem:[#allocation3 + $0x78] sm:$0xff] %vm362_vm1, %v2351_v6  ;;  %3052 = vmatmul.bf16.gmra.mxu1 %v2685_v40  ;;  %v2687_v60 = vpack.c.bf16 %v4658_v22, %v6534_v62  ;;  %v2332_v47 = vadd.f32 %v4656_v48, %v2331_v28  ;;  %v3044_v56 = vadd.f32 %v3043_v15, %v2954_v58  ;;  %v3338_v40 = vld [vmem:[#allocation3 + $0x30] sm:$0xff]  ;;  %v6577_v28 = vpop.permute.xlu1 %2584 }
 0x4e9   : > { %3141 = vmatmul.bf16.gmra.mxu2 %v2686_v55  ;;  %v2618_v62 = vmul.f32 %v6491_v51, %v2426_v30  ;;  %v2619_v48 = vmul.f32 %v6539_v49, %v2427_v26  ;;  %4663 = vrcp.f32 %v3338_v40  ;;  %v7112_v55 = vld [vmem:[#allocation9_spill] sm:$0xff] }
 0x4ea   : > { %3230 = vmatmul.bf16.gmra.mxu3 %v2687_v60  ;;  %v6568_v11 = vadd.f32 %v4658_v22, %v2332_v47  ;;  %v2134_v22 = vld [vmem:[#allocation3 + $0xb0] sm:$0xff]  ;;  %v7113_v47 = vld [vmem:[#allocation8_spill] sm:$0xff] }
 0x4ec   : > { %3485 = vperm.xlu0 %4325, %v4660_v61   ;;  %v2166_v61 = vmul.f32 %v7112_v55, %v2134_v22 }
 0x4ed   : > { %v3431_v3 = vpop.permute.xlu2 %3430  ;;  %v4662_v17 = vpop.eup %4661 }
 0x4ee   : > { %v3132_v33 = vpop.f32.mrf.mxu2  ;;  %v3588_v12 = vmul.f32 %v3431_v3, %v3396_v29  ;;  %v2956_v9 = vpop.f32.mrf.mxu0  ;;  %v2291_v3 = vadd.f32 %v6343_v39, %v6341_v0  ;;  %v2130_v39 = vld [vmem:[#allocation3 + $0x90] sm:$0xff] }
 0x4ef   : > { %v3133_v27 = vadd.f32 %v3132_v33, %v3044_v56  ;;  %v3221_v34 = vpop.f32.mrf.mxu3  ;;  %v3045_v19 = vpop.f32.mrf.mxu1 }
 0x4f0   : > { %v3620_v7 = vpack.c.bf16 %v3588_v12, %v3588_v12  ;;  %v3046_v54 = vadd.f32 %v3045_v19, %v2956_v9  ;;  %v4664_v15 = vpop.eup %4663  ;;  %v2292_v29 = vadd.f32 %v6345_v41, %v2291_v3  ;;  %v3404_v12 = vld [vmem:[#allocation4 + $0x40] sm:$0xff]  ;;  %v3339_v3 = vld [vmem:[#allocation3 + $0x38] sm:$0xff] }
 0x4f1   : > { %v3222_v5 = vadd.f32 %v3221_v34, %v3133_v27  ;;  %v2428_v19 = vld [vmem:[#allocation4 + $0xe0] sm:$0xff] }
 0x4f2   : > { %3653 = vst.msk [vmem:[%s6516_s8] sm:$0xf] %vm3652_vm2, %v3620_v7  ;;  %v2293_v34 = vadd.f32 %v6348_v31, %v2292_v29  ;;  %v3346_v7 = vld [vmem:[#allocation3 + $0x70] sm:$0xff]  ;;  %v2620_v41 = vmul.f32 %v6410_v35, %v2428_v19 }
 0x4f3   : > { %v3262_v36 = vadd.f32 %v3222_v5, %v2618_v62  ;;  %4665 = vrcp.f32 %v3346_v7 }
 0x4f4   : > { %2284 = vadd.xlane.f32.xlu2 %v6307_v63  ;;  %v2129_v63 = vld [vmem:[#allocation3 + $0x88] sm:$0xff]  ;;  %4667 = vrcp.f32 %v3339_v3 }
 0x4f5   : > { %3294 = vst.msk [vmem:[#allocation4 + $0xd0] sm:$0xff] %vm427_vm0, %v3262_v36  ;;  %3450 = vperm.xlu1 %4326, %v4662_v17   ;;  %v2161_v45 = vmul.f32 %v7113_v47, %v2129_v63 }
 0x4f6   : > { %v3134_v1 = vpop.f32.mrf.mxu2 }
 0x4f7   : > { %v3135_v52 = vadd.f32 %v3134_v1, %v3046_v54  ;;  %v3223_v38 = vpop.f32.mrf.mxu3  ;;  %v3397_v54 = vld [vmem:[#allocation4 + $0x8] sm:$0xff] }
 0x4f9   : > { %v3224_v51 = vadd.f32 %v3223_v38, %v3135_v52  ;;  %v7114_v38 = vld [vmem:[#allocation10_spill] sm:$0xff] }
 0x4fb   : > { %v3263_v6 = vadd.f32 %v3224_v51, %v2619_v48  ;;  %v2162_v48 = vmul.f32 %v7114_v38, %v2130_v39  ;;  %v4666_v51 = vpop.eup %4665 }
 0x4fd   : > { %3295 = vst.msk [vmem:[#allocation4 + $0xd8] sm:$0xff] %vm427_vm0, %v3263_v6 }
 0x50c   : > { %v2265_v56 = vpop.xlane.xlu1 %2264  ;;  %3460 = vperm.xlu2 %4324, %v4664_v15  }
 0x50d   : > { %v2290_v58 = vpop.xlane.xlu0 %2289  ;;  %v2353_v49 = vadd.f32 %v2265_v56, %v2161_v45 }
 0x50e   : > { %v2358_v60 = vadd.f32 %v2290_v58, %v2166_v61  ;;  %v2429_v61 = vld [vmem:[#allocation4 + $0xe8] sm:$0xff] }
 0x50f   : > { %2385 = vst.msk [vmem:[#allocation3 + $0x88] sm:$0xff] %vm362_vm1, %v2353_v49  ;;  %v3399_v49 = vld [vmem:[#allocation4 + $0x18] sm:$0xff] }
 0x510   : > { %2390 = vst.msk [vmem:[#allocation3 + $0xb0] sm:$0xff] %vm362_vm1, %v2358_v60  ;;  %v2621_v60 = vmul.f32 %v6556_v8, %v2429_v61 }
 0x516   : > { %2319 = vadd.xlane.f32.xlu0 %v6509_v44 }
 0x519   : > { %v2959_v30 = vpop.f32.mrf.mxu0 }
 0x51a   : > { %v3048_v33 = vpop.f32.mrf.mxu1 }
 0x51b   : > { %v3049_v5 = vadd.f32 %v3048_v33, %v2959_v30  ;;  %v4668_v33 = vpop.eup %4667 }
 0x51f   : > { %2294 = vadd.xlane.f32.xlu1 %v2293_v34 }
 0x520   : > { %v3471_v27 = vpop.permute.xlu0 %3470 }
 0x521   : > { %v3596_v62 = vmul.f32 %v3471_v27, %v3404_v12  ;;  %v3137_v44 = vpop.f32.mrf.mxu2  ;;  %v2961_v31 = vpop.f32.mrf.mxu0  ;;  %v3341_v12 = vld [vmem:[#allocation3 + $0x48] sm:$0xff] }
 0x522   : > { %v3138_v36 = vadd.f32 %v3137_v44, %v3049_v5  ;;  %v3226_v0 = vpop.f32.mrf.mxu3  ;;  %v3050_v1 = vpop.f32.mrf.mxu1  ;;  %v2137_v27 = vld [vmem:[#allocation3 + $0xc8] sm:$0xff]  ;;  %4669 = vrcp.f32 %v3341_v12 }
 0x523   : > { %v3628_v9 = vpack.c.bf16 %v3596_v62, %v3596_v62  ;;  %v3051_v55 = vadd.f32 %v3050_v1, %v2961_v31  ;;  %v2169_v8 = vmul.f32 %v6192_v21, %v2137_v27  ;;  %v2132_v62 = vld [vmem:[#allocation3 + $0xa0] sm:$0xff]  ;;  %v3407_v21 = vld [vmem:[#allocation4 + $0x58] sm:$0xff] }
 0x524   : > { %v3227_v17 = vadd.f32 %v3226_v0, %v3138_v36  ;;  %v3436_v26 = vpop.permute.xlu1 %3435  ;;  %v3349_v0 = vld [vmem:[#allocation3 + $0x88] sm:$0xff]  ;;  %v3400_v1 = vld [vmem:[#allocation4 + $0x20] sm:$0xff] }
 0x525   : > { %3661 = vst.msk [vmem:[%s6516_s8 + $0x20] sm:$0xf] %vm3652_vm2, %v3628_v9  ;;  %v3589_v52 = vmul.f32 %v3436_v26, %v3397_v54  ;;  %v2164_v9 = vmul.f32 %v6197_v16, %v2132_v62  ;;  %4671 = vrcp.f32 %v3349_v0  ;;  %v2133_v54 = vld [vmem:[#allocation3 + $0xa8] sm:$0xff]  ;;  %v3344_v62 = vld [vmem:[#allocation3 + $0x60] sm:$0xff]  ;;  %v3410_v0 = vld [vmem:[#allocation4 + $0x70] sm:$0xff] }
 0x526   : > { %v3264_v6 = vadd.f32 %v3227_v17, %v2620_v41  ;;  %v2270_v40 = vpop.xlane.xlu2 %2269 }
 0x527   : > { %v3621_v22 = vpack.c.bf16 %v3589_v52, %v3589_v52  ;;  %v2354_v63 = vadd.f32 %v2270_v40, %v2162_v48  ;;  %v2430_v40 = vld [vmem:[#allocation4 + $0xf0] sm:$0xff] }
 0x528   : > { %3296 = vst.msk [vmem:[#allocation4 + $0xe0] sm:$0xff] %vm427_vm0, %v3264_v6  ;;  %v4670_v5 = vpop.eup %4669 }
 0x529   : > { %3654 = vst.msk [vmem:[%s6516_s8 + $0x4] sm:$0xf] %vm3652_vm2, %v3621_v22  ;;  %v3139_v35 = vpop.f32.mrf.mxu2 }
 0x52a   : > { %3500 = vperm.xlu0 %4325, %v4666_v51   ;;  %2386 = vst.msk [vmem:[#allocation3 + $0x90] sm:$0xff] %vm362_vm1, %v2354_v63  ;;  %v3140_v58 = vadd.f32 %v3139_v35, %v3051_v55  ;;  %v3228_v15 = vpop.f32.mrf.mxu3 }
 0x52b   : > { %v4672_v26 = vpop.eup %4671 }
 0x52c   : > { %v3229_v47 = vadd.f32 %v3228_v15, %v3140_v58  ;;  %v3402_v58 = vld [vmem:[#allocation4 + $0x30] sm:$0xff] }
 0x52e   : > { %v3265_v45 = vadd.f32 %v3229_v47, %v2621_v60  ;;  %v3446_v56 = vpop.permute.xlu2 %3445 }
 0x52f   : > { %v3591_v29 = vmul.f32 %v3446_v56, %v3399_v49  ;;  %v3342_v56 = vld [vmem:[#allocation3 + $0x50] sm:$0xff] }
 0x530   : > { %3297 = vst.msk [vmem:[#allocation4 + $0xe8] sm:$0xff] %vm427_vm0, %v3265_v45 }
 0x531   : > { %v3623_v30 = vpack.c.bf16 %v3591_v29, %v3591_v29  ;;  %v2431_v29 = vld [vmem:[#allocation4 + $0xf8] sm:$0xff] }
 0x533   : > { %3656 = vst.msk [vmem:[%s6516_s8 + $0xc] sm:$0xf] %vm3652_vm2, %v3623_v30 }
 0x535   : > { %2299 = vadd.xlane.f32.xlu2 %v6389_v32  ;;  %v2306_v32 = vadd.f32 %v6447_v14, %v6445_v42  ;;  %v2165_v14 = vmul.f32 %v6217_v2, %v2133_v54  ;;  %v2622_v2 = vmul.f32 %v6577_v28, %v2430_v40  ;;  %v2623_v28 = vmul.f32 %v6473_v59, %v2431_v29  ;;  %v7115_v59 = vld [vmem:[#allocation11_spill] sm:$0xff] }
 0x537   : > { %v2307_v41 = vadd.f32 %v6450_v46, %v2306_v32 }
 0x538   : > { %3465 = vperm.xlu1 %4326, %v4668_v33  }
 0x539   : > { %v2308_v16 = vadd.f32 %v6452_v50, %v2307_v41 }
 0x54b   : > { %v2305_v34 = vpop.xlane.xlu0 %2304 }
 0x54c   : > { %v2361_v7 = vadd.f32 %v2305_v34, %v2169_v8 }
 0x54d   : > { %3475 = vperm.xlu2 %4324, %v4670_v5  }
 0x54e   : > { %2393 = vst.msk [vmem:[#allocation3 + $0xc8] sm:$0xff] %vm362_vm1, %v2361_v7  ;;  %v2140_v7 = vld [vmem:[#allocation3 + $0xe0] sm:$0xff] }
 0x54f   : > { %v2280_v19 = vpop.xlane.xlu1 %2279  ;;  %v2172_v5 = vmul.f32 %v6250_v24, %v2140_v7  ;;  %v2321_v24 = vadd.f32 %v6494_v4, %v6489_v10  ;;  %v3403_v10 = vld [vmem:[#allocation4 + $0x38] sm:$0xff]  ;;  %v3416_v7 = vld [vmem:[#allocation4 + $0xa0] sm:$0xff] }
 0x550   : > { %v2356_v44 = vadd.f32 %v2280_v19, %v2164_v9 }
 0x551   : > { %v2322_v54 = vadd.f32 %v6496_v53, %v2321_v24 }
 0x552   : > { %2388 = vst.msk [vmem:[#allocation3 + $0xa0] sm:$0xff] %vm362_vm1, %v2356_v44 }
 0x554   : > { %2334 = vadd.xlane.f32.xlu0 %v6568_v11 }
 0x559   : > { %v3352_v11 = vld [vmem:[#allocation3 + $0xa0] sm:$0xff] }
 0x55a   : > { %4673 = vrcp.f32 %v3352_v11 }
 0x55b   : > { %4675 = vrcp.f32 %v3342_v56 }
 0x55c   : > { %4677 = vrcp.f32 %v3344_v62 }
 0x55e   : > { %v3486_v36 = vpop.permute.xlu0 %3485 }
 0x55f   : > { %v3599_v39 = vmul.f32 %v3486_v36, %v3407_v21 }
 0x560   : > { %v4674_v6 = vpop.eup %4673 }
 0x561   : > { %v3631_v17 = vpack.c.bf16 %v3599_v39, %v3599_v39  ;;  %v4676_v34 = vpop.eup %4675 }
 0x562   : > { %2309 = vadd.xlane.f32.xlu1 %v2308_v16  ;;  %v4678_v44 = vpop.eup %4677 }
 0x563   : > { %3664 = vst.msk [vmem:[%s6516_s8 + $0x2c] sm:$0xf] %vm3652_vm2, %v3631_v17 }
 0x564   : > { %v2964_v31 = vpop.f32.mrf.mxu0 }
 0x565   : > { %v3053_v42 = vpop.f32.mrf.mxu1 }
 0x566   : > { %v3054_v50 = vadd.f32 %v3053_v42, %v2964_v31  ;;  %v2136_v31 = vld [vmem:[#allocation3 + $0xc0] sm:$0xff] }
 0x567   : > { %v3451_v52 = vpop.permute.xlu1 %3450  ;;  %v2285_v46 = vpop.xlane.xlu2 %2284  ;;  %v2168_v42 = vmul.f32 %v6286_v23, %v2136_v31  ;;  %v3348_v23 = vld [vmem:[#allocation3 + $0x80] sm:$0xff] }
 0x568   : > { %3515 = vperm.xlu0 %4325, %v4672_v26   ;;  %v3592_v38 = vmul.f32 %v3451_v52, %v3400_v1  ;;  %v2357_v48 = vadd.f32 %v2285_v46, %v2165_v14  ;;  %v2323_v26 = vadd.f32 %v6499_v37, %v2322_v54  ;;  %v3408_v31 = vld [vmem:[#allocation4 + $0x60] sm:$0xff] }
 0x56a   : > { %v3624_v51 = vpack.c.bf16 %v3592_v38, %v3592_v38  ;;  %2389 = vst.msk [vmem:[#allocation3 + $0xa8] sm:$0xff] %vm362_vm1, %v2357_v48  ;;  %v3405_v38 = vld [vmem:[#allocation4 + $0x48] sm:$0xff] }
 0x56c   : > { %3657 = vst.msk [vmem:[%s6516_s8 + $0x10] sm:$0xf] %vm3652_vm2, %v3624_v51  ;;  %v3142_v22 = vpop.f32.mrf.mxu2  ;;  %v2966_v15 = vpop.f32.mrf.mxu0  ;;  %v3345_v51 = vld [vmem:[#allocation3 + $0x68] sm:$0xff] }
 0x56d   : > { %v3143_v63 = vadd.f32 %v3142_v22, %v3054_v50  ;;  %v3231_v55 = vpop.f32.mrf.mxu3  ;;  %v3055_v60 = vpop.f32.mrf.mxu1 }
 0x56e   : > { %v3056_v3 = vadd.f32 %v3055_v60, %v2966_v15  ;;  %v2138_v60 = vld [vmem:[#allocation3 + $0xd0] sm:$0xff] }
 0x56f   : > { %v3232_v61 = vadd.f32 %v3231_v55, %v3143_v63  ;;  %v3461_v35 = vpop.permute.xlu2 %3460  ;;  %v3351_v63 = vld [vmem:[#allocation3 + $0x98] sm:$0xff] }
 0x570   : > { %3530 = vperm.xlu0 %4325, %v4674_v6   ;;  %v3594_v47 = vmul.f32 %v3461_v35, %v3402_v58  ;;  %v2143_v6 = vld [vmem:[#allocation3 + $0xf8] sm:$0xff]  ;;  %v3354_v35 = vld [vmem:[#allocation3 + $0xb0] sm:$0xff] }
 0x571   : > { %v3266_v45 = vadd.f32 %v3232_v61, %v2622_v2  ;;  %v2175_v40 = vmul.f32 %v6323_v18, %v2143_v6  ;;  %v3347_v61 = vld [vmem:[#allocation3 + $0x78] sm:$0xff]  ;;  %v3350_v58 = vld [vmem:[#allocation3 + $0x90] sm:$0xff]  ;;  %v2170_v18 = vmul.f32 %v6339_v13, %v2138_v60  ;;  %v3412_v60 = vld [vmem:[#allocation4 + $0x80] sm:$0xff] }
 0x572   : > { %v3626_v49 = vpack.c.bf16 %v3594_v47, %v3594_v47  ;;  %v3357_v47 = vld [vmem:[#allocation3 + $0xc8] sm:$0xff] }
 0x573   : > { %3298 = vst.msk [vmem:[#allocation4 + $0xf0] sm:$0xff] %vm427_vm0, %v3266_v45 }
 0x574   : > { %3659 = vst.msk [vmem:[%s6516_s8 + $0x18] sm:$0xf] %vm3652_vm2, %v3626_v49  ;;  %v3144_v30 = vpop.f32.mrf.mxu2  ;;  %v3353_v49 = vld [vmem:[#allocation3 + $0xa8] sm:$0xff] }
 0x575   : > { %v3145_v33 = vadd.f32 %v3144_v30, %v3056_v3  ;;  %v3233_v12 = vpop.f32.mrf.mxu3  ;;  %v3413_v30 = vld [vmem:[#allocation4 + $0x88] sm:$0xff] }
 0x576   : > { %2314 = vadd.xlane.f32.xlu2 %v6461_v57  ;;  %v2135_v57 = vld [vmem:[#allocation3 + $0xb8] sm:$0xff] }
 0x577   : > { %v3234_v27 = vadd.f32 %v3233_v12, %v3145_v33  ;;  %v2167_v32 = vmul.f32 %v7115_v59, %v2135_v57 }
 0x579   : > { %v3267_v8 = vadd.f32 %v3234_v27, %v2623_v28 }
 0x57b   : > { %3299 = vst.msk [vmem:[#allocation4 + $0xf8] sm:$0xff] %vm427_vm0, %v3267_v8  ;;  %3480 = vperm.xlu1 %4326, %v4676_v34  }
 0x589   : > { %v2320_v9 = vpop.xlane.xlu0 %2319 }
 0x58a   : > { %v2364_v19 = vadd.f32 %v2320_v9, %v2172_v5 }
 0x58c   : > { %2396 = vst.msk [vmem:[#allocation3 + $0xe0] sm:$0xff] %vm362_vm1, %v2364_v19 }
 0x58e   : > { %3490 = vperm.xlu2 %4324, %v4678_v44  }
 0x592   : > { %v2295_v21 = vpop.xlane.xlu1 %2294 }
 0x593   : > { %v2359_v36 = vadd.f32 %v2295_v21, %v2167_v32  ;;  %v3360_v27 = vld [vmem:[#allocation3 + $0xe0] sm:$0xff]  ;;  %v2139_v32 = vld [vmem:[#allocation3 + $0xd8] sm:$0xff] }
 0x595   : > { %2391 = vst.msk [vmem:[#allocation3 + $0xb8] sm:$0xff] %vm362_vm1, %v2359_v36  ;;  %v7116_v36 = vld [vmem:[#allocation12_spill] sm:$0xff] }
 0x59c   : > { %v3501_v39 = vpop.permute.xlu0 %3500  ;;  %v3355_v16 = vld [vmem:[#allocation3 + $0xb8] sm:$0xff] }
 0x59d   : > { %v3602_v41 = vmul.f32 %v3501_v39, %v3410_v0  ;;  %4679 = vrcp.f32 %v3355_v16  ;;  %v2171_v0 = vmul.f32 %v7116_v36, %v2139_v32 }
 0x59e   : > { %4681 = vrcp.f32 %v3345_v51 }
 0x59f   : > { %v3634_v17 = vpack.c.bf16 %v3602_v41, %v3602_v41  ;;  %4683 = vrcp.f32 %v3348_v23 }
 0x5a0   : > { %4685 = vrcp.f32 %v3351_v63 }
 0x5a1   : > { %3667 = vst.msk [vmem:[%s6516_s8 + $0x38] sm:$0xf] %vm3652_vm2, %v3634_v17  ;;  %4687 = vrcp.f32 %v3347_v61  ;;  %v3406_v17 = vld [vmem:[#allocation4 + $0x50] sm:$0xff] }
 0x5a2   : > { %4689 = vrcp.f32 %v3354_v35  ;;  %v3411_v35 = vld [vmem:[#allocation4 + $0x78] sm:$0xff] }
 0x5a3   : > { %v4680_v11 = vpop.eup %4679  ;;  %4691 = vrcp.f32 %v3350_v58 }
 0x5a4   : > { %3545 = vperm.xlu0 %4325, %v4680_v11   ;;  %v4682_v50 = vpop.eup %4681  ;;  %4693 = vrcp.f32 %v3357_v47 }
 0x5a5   : > { %2324 = vadd.xlane.f32.xlu1 %v2323_v26  ;;  %v4684_v55 = vpop.eup %4683  ;;  %4695 = vrcp.f32 %v3353_v49 }
 0x5a6   : > { %4697 = vrcp.f32 %v3360_v27 }
 0x5a8   : > { %v2300_v14 = vpop.xlane.xlu2 %2299 }
 0x5a9   : > { %v2360_v1 = vadd.f32 %v2300_v14, %v2168_v42 }
 0x5aa   : > { %v3466_v4 = vpop.permute.xlu1 %3465 }
 0x5ab   : > { %2392 = vst.msk [vmem:[#allocation3 + $0xc0] sm:$0xff] %vm362_vm1, %v2360_v1  ;;  %v3595_v52 = vmul.f32 %v3466_v4, %v3403_v10  ;;  %v2141_v4 = vld [vmem:[#allocation3 + $0xe8] sm:$0xff] }
 0x5ad   : > { %v3627_v46 = vpack.c.bf16 %v3595_v52, %v3595_v52  ;;  %v3419_v52 = vld [vmem:[#allocation4 + $0xb8] sm:$0xff] }
 0x5af   : > { %3660 = vst.msk [vmem:[%s6516_s8 + $0x1c] sm:$0xf] %vm3652_vm2, %v3627_v46 }
 0x5b0   : > { %v3476_v53 = vpop.permute.xlu2 %3475 }
 0x5b1   : > { %v3597_v48 = vmul.f32 %v3476_v53, %v3405_v38  ;;  %v2173_v38 = vmul.f32 %v6408_v20, %v2141_v4  ;;  %v3409_v20 = vld [vmem:[#allocation4 + $0x68] sm:$0xff]  ;;  %v3427_v4 = vld [vmem:[#allocation4 + $0xf8] sm:$0xff] }
 0x5b2   : > { %v3356_v13 = vld [vmem:[#allocation3 + $0xc0] sm:$0xff] }
 0x5b3   : > { %v3629_v37 = vpack.c.bf16 %v3597_v48, %v3597_v48  ;;  %4699 = vrcp.f32 %v3356_v13  ;;  %v3417_v13 = vld [vmem:[#allocation4 + $0xa8] sm:$0xff] }
 0x5b5   : > { %3662 = vst.msk [vmem:[%s6516_s8 + $0x24] sm:$0xf] %vm3652_vm2, %v3629_v37 }
 0x5b7   : > { %2329 = vadd.xlane.f32.xlu2 %v6537_v25  ;;  %v4686_v25 = vpop.eup %4685 }
 0x5b8   : > { %v4688_v15 = vpop.eup %4687 }
 0x5b9   : > { %v4690_v45 = vpop.eup %4689 }
 0x5ba   : > { %v4692_v3 = vpop.eup %4691 }
 0x5bb   : > { %v4694_v8 = vpop.eup %4693 }
 0x5bc   : > { %v4696_v34 = vpop.eup %4695 }
 0x5bd   : > { %v4698_v44 = vpop.eup %4697 }
 0x5be   : > { %3495 = vperm.xlu1 %4326, %v4682_v50   ;;  %v4700_v59 = vpop.eup %4699  ;;  %v2142_v50 = vld [vmem:[#allocation3 + $0xf0] sm:$0xff] }
 0x5bf   : > { %v2174_v6 = vmul.f32 %v6463_v43, %v2142_v50 }
 0x5c6   : > { %3510 = vperm.xlu1 %4326, %v4684_v55  }
 0x5c7   : > { %v2335_v22 = vpop.xlane.xlu0 %2334 }
 0x5c8   : > { %v2367_v2 = vadd.f32 %v2335_v22, %v2175_v40 }
 0x5ca   : > { %2399 = vst.msk [vmem:[#allocation3 + $0xf8] sm:$0xff] %vm362_vm1, %v2367_v2 }
 0x5ce   : > { %3525 = vperm.xlu1 %4326, %v4686_v25  }
 0x5cf   : > { %3505 = vperm.xlu2 %4324, %v4688_v15  }
 0x5d1   : > { %v3363_v57 = vld [vmem:[#allocation3 + $0xf8] sm:$0xff] }
 0x5d5   : > { %v2310_v56 = vpop.xlane.xlu1 %2309 }
 0x5d6   : > { %v2362_v29 = vadd.f32 %v2310_v56, %v2170_v18  ;;  %3540 = vperm.xlu1 %4326, %v4690_v45   ;;  %v3414_v56 = vld [vmem:[#allocation4 + $0x90] sm:$0xff] }
 0x5d7   : > { %3520 = vperm.xlu2 %4324, %v4692_v3  }
 0x5d8   : > { %2394 = vst.msk [vmem:[#allocation3 + $0xd0] sm:$0xff] %vm362_vm1, %v2362_v29 }
 0x5da   : > { %v3516_v33 = vpop.permute.xlu0 %3515 }
 0x5db   : > { %v3605_v12 = vmul.f32 %v3516_v33, %v3413_v30  ;;  %v3415_v33 = vld [vmem:[#allocation4 + $0x98] sm:$0xff] }
 0x5dd   : > { %v3637_v28 = vpack.c.bf16 %v3605_v12, %v3605_v12 }
 0x5de   : > { %3555 = vperm.xlu1 %4326, %v4694_v8  }
 0x5df   : > { %3670 = vst.msk [vmem:[%s6516_s8 + $0x44] sm:$0xf] %vm3652_vm2, %v3637_v28  ;;  %3535 = vperm.xlu2 %4324, %v4696_v34   ;;  %v3358_v5 = vld [vmem:[#allocation3 + $0xd0] sm:$0xff] }
 0x5e0   : > { %4701 = vrcp.f32 %v3358_v5 }
 0x5e1   : > { %4703 = vrcp.f32 %v3363_v57 }
 0x5e2   : > { %v3531_v62 = vpop.permute.xlu0 %3530 }
 0x5e3   : > { %v3608_v9 = vmul.f32 %v3531_v62, %v3416_v7  ;;  %v3418_v62 = vld [vmem:[#allocation4 + $0xb0] sm:$0xff] }
 0x5e5   : > { %v3640_v19 = vpack.c.bf16 %v3608_v9, %v3608_v9 }
 0x5e6   : > { %v4702_v21 = vpop.eup %4701  ;;  %3570 = vperm.xlu1 %4326, %v4698_v44   ;;  %v3420_v44 = vld [vmem:[#allocation4 + $0xc0] sm:$0xff] }
 0x5e7   : > { %3673 = vst.msk [vmem:[%s6516_s8 + $0x50] sm:$0xf] %vm3652_vm2, %v3640_v19  ;;  %3560 = vperm.xlu0 %4325, %v4702_v21   ;;  %3550 = vperm.xlu2 %4324, %v4700_v59   ;;  %v4704_v24 = vpop.eup %4703  ;;  %v3421_v21 = vld [vmem:[#allocation4 + $0xc8] sm:$0xff] }
 0x5e9   : > { %v2315_v39 = vpop.xlane.xlu2 %2314 }
 0x5ea   : > { %v2363_v41 = vadd.f32 %v2315_v39, %v2171_v0 }
 0x5ec   : > { %2395 = vst.msk [vmem:[#allocation3 + $0xd8] sm:$0xff] %vm362_vm1, %v2363_v41 }
 0x5ed   : > { %v3481_v16 = vpop.permute.xlu1 %3480 }
 0x5ee   : > { %v3598_v54 = vmul.f32 %v3481_v16, %v3406_v17  ;;  %3585 = vperm.xlu1 %4326, %v4704_v24   ;;  %v3423_v24 = vld [vmem:[#allocation4 + $0xd8] sm:$0xff] }
 0x5f0   : > { %v3630_v11 = vpack.c.bf16 %v3598_v54, %v3598_v54  ;;  %v3424_v54 = vld [vmem:[#allocation4 + $0xe0] sm:$0xff] }
 0x5f1   : > { %v3491_v26 = vpop.permute.xlu2 %3490 }
 0x5f2   : > { %3663 = vst.msk [vmem:[%s6516_s8 + $0x28] sm:$0xf] %vm3652_vm2, %v3630_v11  ;;  %v3600_v42 = vmul.f32 %v3491_v26, %v3408_v31  ;;  %v3422_v31 = vld [vmem:[#allocation4 + $0xd0] sm:$0xff] }
 0x5f3   : > { %v3359_v14 = vld [vmem:[#allocation3 + $0xd8] sm:$0xff] }
 0x5f4   : > { %v3632_v1 = vpack.c.bf16 %v3600_v42, %v3600_v42  ;;  %4705 = vrcp.f32 %v3359_v14 }
 0x5f6   : > { %3665 = vst.msk [vmem:[%s6516_s8 + $0x30] sm:$0xf] %vm3652_vm2, %v3632_v1 }
 0x5fa   : > { %v4706_v10 = vpop.eup %4705 }
 0x5fb   : > { %3565 = vperm.xlu2 %4324, %v4706_v10  }
 0x616   : > { %v3546_v46 = vpop.permute.xlu0 %3545 }
 0x617   : > { %v3611_v53 = vmul.f32 %v3546_v46, %v3419_v52 }
 0x618   : > { %v2325_v48 = vpop.xlane.xlu1 %2324 }
 0x619   : > { %v3643_v37 = vpack.c.bf16 %v3611_v53, %v3611_v53  ;;  %v2365_v51 = vadd.f32 %v2325_v48, %v2173_v38  ;;  %v3426_v48 = vld [vmem:[#allocation4 + $0xf0] sm:$0xff] }
 0x61b   : > { %3676 = vst.msk [vmem:[%s6516_s8 + $0x5c] sm:$0xf] %vm3652_vm2, %v3643_v37 }
 0x61c   : > { %2397 = vst.msk [vmem:[#allocation3 + $0xe8] sm:$0xff] %vm362_vm1, %v2365_v51 }
 0x623   : > { %v3361_v23 = vld [vmem:[#allocation3 + $0xe8] sm:$0xff] }
 0x624   : > { %4707 = vrcp.f32 %v3361_v23  ;;  %v3425_v23 = vld [vmem:[#allocation4 + $0xe8] sm:$0xff] }
 0x62a   : > { %v4708_v40 = vpop.eup %4707  ;;  %v2330_v22 = vpop.xlane.xlu2 %2329 }
 0x62b   : > { %3575 = vperm.xlu0 %4325, %v4708_v40   ;;  %v2366_v63 = vadd.f32 %v2330_v22, %v2174_v6 }
 0x62d   : > { %2398 = vst.msk [vmem:[#allocation3 + $0xf0] sm:$0xff] %vm362_vm1, %v2366_v63 }
 0x630   : > { %v3496_v55 = vpop.permute.xlu1 %3495 }
 0x631   : > { %v3601_v2 = vmul.f32 %v3496_v55, %v3409_v20 }
 0x632   : > { %v3506_v61 = vpop.permute.xlu2 %3505 }
 0x633   : > { %v3633_v25 = vpack.c.bf16 %v3601_v2, %v3601_v2  ;;  %v3603_v58 = vmul.f32 %v3506_v61, %v3411_v35 }
 0x634   : > { %v3362_v15 = vld [vmem:[#allocation3 + $0xf0] sm:$0xff] }
 0x635   : > { %3666 = vst.msk [vmem:[%s6516_s8 + $0x34] sm:$0xf] %vm3652_vm2, %v3633_v25  ;;  %v3635_v43 = vpack.c.bf16 %v3603_v58, %v3603_v58  ;;  %4709 = vrcp.f32 %v3362_v15 }
 0x637   : > { %3668 = vst.msk [vmem:[%s6516_s8 + $0x3c] sm:$0xf] %vm3652_vm2, %v3635_v43 }
 0x638   : > { %v3511_v18 = vpop.permute.xlu1 %3510 }
 0x639   : > { %v3604_v47 = vmul.f32 %v3511_v18, %v3412_v60 }
 0x63a   : > { %v3521_v45 = vpop.permute.xlu2 %3520 }
 0x63b   : > { %v4710_v49 = vpop.eup %4709  ;;  %v3636_v3 = vpack.c.bf16 %v3604_v47, %v3604_v47  ;;  %v3606_v29 = vmul.f32 %v3521_v45, %v3414_v56 }
 0x63c   : > { %3580 = vperm.xlu2 %4324, %v4710_v49  }
 0x63d   : > { %3669 = vst.msk [vmem:[%s6516_s8 + $0x40] sm:$0xf] %vm3652_vm2, %v3636_v3  ;;  %v3638_v30 = vpack.c.bf16 %v3606_v29, %v3606_v29 }
 0x63f   : > { %3671 = vst.msk [vmem:[%s6516_s8 + $0x48] sm:$0xf] %vm3652_vm2, %v3638_v30 }
 0x640   : > { %v3526_v12 = vpop.permute.xlu1 %3525 }
 0x641   : > { %v3607_v28 = vmul.f32 %v3526_v12, %v3415_v33 }
 0x642   : > { %v3536_v27 = vpop.permute.xlu2 %3535 }
 0x643   : > { %v3639_v8 = vpack.c.bf16 %v3607_v28, %v3607_v28  ;;  %v3609_v34 = vmul.f32 %v3536_v27, %v3417_v13 }
 0x645   : > { %3672 = vst.msk [vmem:[%s6516_s8 + $0x4c] sm:$0xf] %vm3652_vm2, %v3639_v8  ;;  %v3641_v7 = vpack.c.bf16 %v3609_v34, %v3609_v34 }
 0x647   : > { %3674 = vst.msk [vmem:[%s6516_s8 + $0x54] sm:$0xf] %vm3652_vm2, %v3641_v7 }
 0x648   : > { %v3541_v5 = vpop.permute.xlu1 %3540 }
 0x649   : > { %v3610_v9 = vmul.f32 %v3541_v5, %v3418_v62 }
 0x64a   : > { %v3551_v19 = vpop.permute.xlu2 %3550 }
 0x64b   : > { %v3642_v57 = vpack.c.bf16 %v3610_v9, %v3610_v9  ;;  %v3612_v59 = vmul.f32 %v3551_v19, %v3420_v44 }
 0x64d   : > { %3675 = vst.msk [vmem:[%s6516_s8 + $0x58] sm:$0xf] %vm3652_vm2, %v3642_v57  ;;  %v3644_v32 = vpack.c.bf16 %v3612_v59, %v3612_v59 }
 0x64f   : > { %3677 = vst.msk [vmem:[%s6516_s8 + $0x60] sm:$0xf] %vm3652_vm2, %v3644_v32 }
 0x650   : > { %v3556_v36 = vpop.permute.xlu1 %3555 }
 0x651   : > { %v3613_v0 = vmul.f32 %v3556_v36, %v3421_v21 }
 0x653   : > { %v3645_v39 = vpack.c.bf16 %v3613_v0, %v3613_v0 }
 0x655   : > { %3678 = vst.msk [vmem:[%s6516_s8 + $0x64] sm:$0xf] %vm3652_vm2, %v3645_v39  ;;  %v3566_v41 = vpop.permute.xlu2 %3565 }
 0x656   : > { %v3615_v17 = vmul.f32 %v3566_v41, %v3423_v24 }
 0x658   : > { %v3647_v16 = vpack.c.bf16 %v3615_v17, %v3615_v17  ;;  %v3571_v11 = vpop.permute.xlu1 %3570 }
 0x659   : > { %v3616_v26 = vmul.f32 %v3571_v11, %v3424_v54  ;;  %v3561_v42 = vpop.permute.xlu0 %3560 }
 0x65a   : > { %3680 = vst.msk [vmem:[%s6516_s8 + $0x6c] sm:$0xf] %vm3652_vm2, %v3647_v16  ;;  %v3614_v14 = vmul.f32 %v3561_v42, %v3422_v31 }
 0x65b   : > { %v3648_v1 = vpack.c.bf16 %v3616_v26, %v3616_v26 }
 0x65c   : > { %v3646_v10 = vpack.c.bf16 %v3614_v14, %v3614_v14 }
 0x65d   : > { %3681 = vst.msk [vmem:[%s6516_s8 + $0x70] sm:$0xf] %vm3652_vm2, %v3648_v1 }
 0x65e   : > { %3679 = vst.msk [vmem:[%s6516_s8 + $0x68] sm:$0xf] %vm3652_vm2, %v3646_v10 }
 0x660   : > { %v3586_v52 = vpop.permute.xlu1 %3585 }
 0x661   : > { %v3619_v46 = vmul.f32 %v3586_v52, %v3427_v4 }
 0x663   : > { %v3651_v53 = vpack.c.bf16 %v3619_v46, %v3619_v46 }
 0x665   : > { %3684 = vst.msk [vmem:[%s6516_s8 + $0x7c] sm:$0xf] %vm3652_vm2, %v3651_v53 }
 0x696   : > { %v3581_v38 = vpop.permute.xlu2 %3580 }
 0x697   : > { %v3618_v37 = vmul.f32 %v3581_v38, %v3426_v48 }
 0x699   : > { %v3650_v51 = vpack.c.bf16 %v3618_v37, %v3618_v37 }
 0x69b   : > { %3683 = vst.msk [vmem:[%s6516_s8 + $0x78] sm:$0xf] %vm3652_vm2, %v3650_v51 }
 0x69d   : > { %v3576_v50 = vpop.permute.xlu0 %3575 }
 0x69e   : > { %v3617_v6 = vmul.f32 %v3576_v50, %v3425_v23 }
 0x6a0   : > { %v3649_v40 = vpack.c.bf16 %v3617_v6, %v3617_v6 }
 0x6a2   : > { %3682 = vst.msk [vmem:[%s6516_s8 + $0x74] sm:$0xf] %vm3652_vm2, %v3649_v40 }
 0x6a3 PF: > { %s13_s16 = sadd.s32 1, %s4749_s16   ;;  %s7117_s12 = smov %s4741_s14 }
 0x6a4   : > { %p10_p7 = scmp.ge.s32.totalorder %s13_s16, 10   ;;  %s7118_s13 = smov %s4745_s15 }
 0x6a5   : > { %s7119_s14 = smov %s7122_s17  ;;  %s7120_s15 = smov %s7126_s18 }
 0x6a6   :  { %12 = sbr.rel (!%p10_p7) target bundleno = 3 (0x3), region = 68 }

</bundles_post_ra>
